<compile_context>
chip_gen: v7x
topology: tpu7x:2x2x1
jax: 0.10.0
libtpu: 0.0.40
codegen_flags: <defaults>
</compile_context>

<pallas_src>
import functools

import jax
import jax.numpy as jnp
import numpy as np
from jax.experimental import pallas as pl
from jax.experimental.pallas import tpu as pltpu


def _round_up(x, m):
    return ((x + m - 1) // m) * m


def _conv_bn_relu_kernel(x_ref, w_ref, s_ref, b_ref, o_ref, *, k, stride, Ho, Wo):
    """One (batch item n, Cout tile j) output block per grid step.

    x_ref: (1, s, s, Hs, Ws, Cin) bf16  space-to-depth padded input plane
    w_ref: (k, k, Cin, TN)        bf16  conv weights (HWIO), one Cout tile
    s_ref: (1, TN)                f32   folded BN scale
    b_ref: (1, TN)                f32   folded BN bias
    o_ref: (1, Ho, Wo, TN)        bf16  output plane tile
    """
    cin = x_ref.shape[-1]
    tn = o_ref.shape[-1]
    # f32 accumulator as a traced value; Mosaic places it (vregs for small
    # planes, VMEM otherwise).  Whole reduction happens in this invocation.
    acc = jnp.zeros((Ho * Wo, tn), jnp.float32)
    for kh in range(k):
        for kw in range(k):
            # Tap (kh, kw): thanks to the space-to-depth layout this is an
            # UNSTRIDED static VMEM slice for any stride.
            tap = x_ref[0, kh % stride, kw % stride,
                        kh // stride:kh // stride + Ho,
                        kw // stride:kw // stride + Wo, :]
            acc = acc + jnp.dot(tap.reshape(Ho * Wo, cin), w_ref[kh, kw],
                                preferred_element_type=jnp.float32)
    # Fused BatchNorm (folded scale/bias) + ReLU epilogue in f32, bf16 store.
    y = jnp.maximum(acc * s_ref[...] + b_ref[...], 0.0)
    o_ref[0] = y.reshape(Ho, Wo, tn).astype(o_ref.dtype)


def conv_bn_relu_nhwc(x_nhwc, weight_hwio, bn_scale, bn_bias, *, stride=1,
                      block_cout=None, matmul_dtype=jnp.bfloat16):
    """x_nhwc: (N, H, W, Cin).  weight_hwio: (k, k, Cin, Cout).
    Returns (N, Ho, Wo, Cout) bf16 = ReLU(BN(Conv(x))).  Channels-last so a
    multi-block network never pays per-layer relayouts."""
    N, H, W, Cin = x_nhwc.shape
    k = weight_hwio.shape[0]
    Cout = weight_hwio.shape[3]
    pad = (k - 1) // 2
    s = stride
    Ho = (H + 2 * pad - k) // s + 1
    Wo = (W + 2 * pad - k) // s + 1

    # ---- wrapper glue: bf16 cast FIRST, zero pad, space-to-depth ----------
    x = x_nhwc.astype(matmul_dtype)
    Hs = max(Ho + (k - 1) // s, -(-(H + 2 * pad) // s))
    Ws = max(Wo + (k - 1) // s, -(-(W + 2 * pad) // s))
    x = jnp.pad(x, ((0, 0),
                    (pad, Hs * s - H - pad),
                    (pad, Ws * s - W - pad),
                    (0, 0)))
    # x_s2d[n, a, b, i, j, c] = x_pad[n, i*s + a, j*s + b, c]
    x = x.reshape(N, Hs, s, Ws, s, Cin).transpose(0, 2, 4, 1, 3, 5)

    # ---- Cout padded to a lane-dense multiple of 128 (unmasked stores) ----
    Np = _round_up(Cout, 128)
    if block_cout is None:
        block_cout = 256 if Np % 256 == 0 else 128   # 128 is best on v5e
    tn = min(block_cout, Np)

    w = jnp.pad(weight_hwio.astype(matmul_dtype),
                ((0, 0), (0, 0), (0, 0), (0, Np - Cout)))
    scale2d = jnp.pad(bn_scale.astype(jnp.float32), (0, Np - Cout)).reshape(1, Np)
    bias2d = jnp.pad(bn_bias.astype(jnp.float32), (0, Np - Cout)).reshape(1, Np)

    grid = (N, Np // tn)   # Cout-tiles innermost: x plane reused, weights re-read per n

    itemsize = jnp.dtype(matmul_dtype).itemsize
    x_bytes = N * s * s * Hs * Ws * Cin * itemsize          # read once per batch item
    w_bytes = N * k * k * Cin * Np * itemsize               # re-fetched per batch item
    o_bytes = N * Ho * Wo * Np * itemsize
    cost = pl.CostEstimate(
        flops=2 * N * Ho * Wo * k * k * Cin * Np,
        transcendentals=0,
        bytes_accessed=x_bytes + w_bytes + o_bytes + 2 * Np * 4,
    )

    # Double-buffered per-step footprint + accumulator, clamped for v7x VMEM.
    blk_bytes = (s * s * Hs * Ws * Cin + k * k * Cin * tn + Ho * Wo * tn) * itemsize \
        + 2 * tn * 4
    acc_bytes = Ho * Wo * tn * 4
    vmem_limit = int(min(max(2 * blk_bytes + acc_bytes + (4 << 20), 32 << 20), 48 << 20))

    kernel = functools.partial(_conv_bn_relu_kernel, k=k, stride=s, Ho=Ho, Wo=Wo)

    out = pl.pallas_call(
        kernel,
        out_shape=jax.ShapeDtypeStruct((N, Ho, Wo, Np), matmul_dtype),
        grid_spec=pltpu.PrefetchScalarGridSpec(
            num_scalar_prefetch=0,
            grid=grid,
            in_specs=[
                pl.BlockSpec((1, s, s, Hs, Ws, Cin), lambda n, j: (n, 0, 0, 0, 0, 0)),
                pl.BlockSpec((k, k, Cin, tn), lambda n, j: (0, 0, 0, j)),
                pl.BlockSpec((1, tn), lambda n, j: (0, j)),
                pl.BlockSpec((1, tn), lambda n, j: (0, j)),
            ],
            out_specs=pl.BlockSpec((1, Ho, Wo, tn), lambda n, j: (n, 0, 0, j)),
        ),
        compiler_params=pltpu.CompilerParams(
            dimension_semantics=("parallel", "parallel"),
            vmem_limit_bytes=vmem_limit),
        cost_estimate=cost,
    )(x, w, scale2d, bias2d)

    return out[..., :Cout]


def conv_bn_relu(x_nchw, weight_hwio, bn_scale, bn_bias, *, stride=1, **kw):
    """NCHW convenience wrapper (matches the PyTorch module's layout).
    For a full-network composition use conv_bn_relu_nhwc end-to-end instead."""
    x = jnp.transpose(x_nchw, (0, 2, 3, 1))
    y = conv_bn_relu_nhwc(x, weight_hwio, bn_scale, bn_bias, stride=stride, **kw)
    return jnp.transpose(y, (0, 3, 1, 2))


def make_params(key, k, inp_dim, out_dim):
    """Deterministic synthetic parameters matching nn.Conv2d + nn.BatchNorm2d."""
    kw, kg, kb, km, kv = jax.random.split(key, 5)
    # Conv weight, PyTorch layout OIHW -> HWIO. No conv bias (with_bn=True).
    w_oihw = jax.random.normal(kw, (out_dim, inp_dim, k, k), jnp.float32) * 0.1
    w_hwio = jnp.transpose(w_oihw, (2, 3, 1, 0))
    # BatchNorm2d (eval mode): gamma, beta, running_mean, running_var, eps.
    gamma = 1.0 + 0.1 * jax.random.normal(kg, (out_dim,), jnp.float32)
    beta = 0.1 * jax.random.normal(kb, (out_dim,), jnp.float32)
    running_mean = 0.05 * jax.random.normal(km, (out_dim,), jnp.float32)
    running_var = 1.0 + 0.1 * jax.random.uniform(kv, (out_dim,), jnp.float32)
    eps = 1e-5
    scale = gamma / jnp.sqrt(running_var + eps)
    bias = beta - running_mean * scale
    return w_hwio, scale, bias


def reference(x_nchw, w_hwio, scale, bias, *, stride=1):
    """Pure-JAX reference: conv ('same' pad) + folded BN + ReLU (f32)."""
    k = w_hwio.shape[0]
    pad = (k - 1) // 2
    y = jax.lax.conv_general_dilated(
        x_nchw,
        jnp.transpose(w_hwio, (3, 2, 0, 1)),  # HWIO -> OIHW
        window_strides=(stride, stride),
        padding=((pad, pad), (pad, pad)),
        dimension_numbers=("NCHW", "OIHW", "NCHW"),
        precision=jax.lax.Precision.HIGHEST,
    )
    y = y * scale[None, :, None, None] + bias[None, :, None, None]
    return jnp.maximum(y, 0.0)


if __name__ == "__main__":
    key = jax.random.PRNGKey(0)
    kx, kp1, kp2, kp3 = jax.random.split(key, 4)

    N, Cin, H, W = 2, 4, 16, 16
    x = jax.random.normal(kx, (N, Cin, H, W), jnp.float32)

    # (k, Cout, stride) cases consistent with the module:
    #   convolution(3, 4, 8), convolution(3, 4, 8, stride=2),
    #   and the KAF_Hourglass stem convolution(7, 4, 128, stride=2).
    cases = [(3, 8, 1, kp1), (3, 8, 2, kp2), (7, 128, 2, kp3)]

    for (k, Cout, stride, kp) in cases:
        w_hwio, bn_scale, bn_bias = make_params(kp, k, Cin, Cout)
        fn = jax.jit(functools.partial(conv_bn_relu, stride=stride))
        out = jax.block_until_ready(fn(x, w_hwio, bn_scale, bn_bias))

        # Reference on bf16-rounded operands (kernel uses bf16 MXU operands
        # with f32 accumulation) and bf16-rounded output (kernel emits bf16),
        # so only accumulation-order / 1-ulp rounding error remains.
        x_r = x.astype(jnp.bfloat16).astype(jnp.float32)
        w_r = w_hwio.astype(jnp.bfloat16).astype(jnp.float32)
        ref = reference(x_r, w_r, bn_scale, bn_bias, stride=stride)
        ref = ref.astype(jnp.bfloat16).astype(jnp.float32)
        np.testing.assert_allclose(np.asarray(out.astype(jnp.float32)),
                                   np.asarray(ref), rtol=1e-2, atol=1e-2)

    print("KERNEL_OK")
</pallas_src>

<mosaic_0001>
module attributes {stable_mosaic.version = 11 : i64} {
  func.func @_conv_bn_relu_kernel(%arg0: i32, %arg1: i32, %arg2: memref<1x1x1x18x18x4xbf16, #tpu.memory_space<vmem>>, %arg3: memref<3x3x4x128xbf16, #tpu.memory_space<vmem>>, %arg4: memref<1x128xf32, #tpu.memory_space<vmem>>, %arg5: memref<1x128xf32, #tpu.memory_space<vmem>>, %arg6: memref<1x16x16x128xbf16, #tpu.memory_space<vmem>>) attributes {dimension_semantics = [#tpu.dimension_semantics<parallel>, #tpu.dimension_semantics<parallel>], iteration_bounds = array<i64: 2, 1>, scalar_prefetch = 0 : i64, scratch_operands = 0 : i64, tpu.core_type = #tpu.core_type<tc>, window_params = [{transform_indices = @transform_0, window_bounds = array<i64: 1, 1, 1, 18, 18, 4>}, {transform_indices = @transform_1, window_bounds = array<i64: 3, 3, 4, 128>}, {transform_indices = @transform_2, window_bounds = array<i64: 1, 128>}, {transform_indices = @transform_3, window_bounds = array<i64: 1, 128>}, {transform_indices = @transform_4, window_bounds = array<i64: 1, 16, 16, 128>}]} {
    %cst = arith.constant 0.000000e+00 : f32
    %0 = vector.broadcast %cst : f32 to vector<256x128xf32>
    %c0 = arith.constant 0 : index
    %c0_0 = arith.constant 0 : index
    %c0_1 = arith.constant 0 : index
    %c0_2 = arith.constant 0 : index
    %c0_3 = arith.constant 0 : index
    %c0_4 = arith.constant 0 : index
    %1 = vector.load %arg2[%c0, %c0_0, %c0_1, %c0_2, %c0_3, %c0_4] : memref<1x1x1x18x18x4xbf16, #tpu.memory_space<vmem>>, vector<1x1x1x16x16x4xbf16>
    %2 = vector.shape_cast %1 : vector<1x1x1x16x16x4xbf16> to vector<16x16x4xbf16>
    %3 = vector.shape_cast %2 : vector<16x16x4xbf16> to vector<256x4xbf16>
    %c0_5 = arith.constant 0 : index
    %c0_6 = arith.constant 0 : index
    %c0_7 = arith.constant 0 : index
    %c0_8 = arith.constant 0 : index
    %4 = vector.load %arg3[%c0_5, %c0_6, %c0_7, %c0_8] : memref<3x3x4x128xbf16, #tpu.memory_space<vmem>>, vector<1x1x4x128xbf16>
    %5 = vector.shape_cast %4 : vector<1x1x4x128xbf16> to vector<4x128xbf16>
    %cst_9 = arith.constant dense<0.000000e+00> : vector<256x128xf32>
    %6 = tpu.matmul %3, %5, %cst_9 {dimension_numbers = #tpu.dot_dimension_numbers<[1], [0], [0], [1], [0, 0, 1, 1], [], []>} : vector<256x4xbf16>, vector<4x128xbf16>, vector<256x128xf32> -> vector<256x128xf32>
    %7 = arith.addf %0, %6 : vector<256x128xf32>
    %c0_10 = arith.constant 0 : index
    %c0_11 = arith.constant 0 : index
    %c0_12 = arith.constant 0 : index
    %c0_13 = arith.constant 0 : index
    %c1 = arith.constant 1 : index
    %c0_14 = arith.constant 0 : index
    %8 = vector.load %arg2[%c0_10, %c0_11, %c0_12, %c0_13, %c1, %c0_14] : memref<1x1x1x18x18x4xbf16, #tpu.memory_space<vmem>>, vector<1x1x1x16x16x4xbf16>
    %9 = vector.shape_cast %8 : vector<1x1x1x16x16x4xbf16> to vector<16x16x4xbf16>
    %10 = vector.shape_cast %9 : vector<16x16x4xbf16> to vector<256x4xbf16>
    %c0_15 = arith.constant 0 : index
    %c1_16 = arith.constant 1 : index
    %c0_17 = arith.constant 0 : index
    %c0_18 = arith.constant 0 : index
    %11 = vector.load %arg3[%c0_15, %c1_16, %c0_17, %c0_18] : memref<3x3x4x128xbf16, #tpu.memory_space<vmem>>, vector<1x1x4x128xbf16>
    %12 = vector.shape_cast %11 : vector<1x1x4x128xbf16> to vector<4x128xbf16>
    %cst_19 = arith.constant dense<0.000000e+00> : vector<256x128xf32>
    %13 = tpu.matmul %10, %12, %cst_19 {dimension_numbers = #tpu.dot_dimension_numbers<[1], [0], [0], [1], [0, 0, 1, 1], [], []>} : vector<256x4xbf16>, vector<4x128xbf16>, vector<256x128xf32> -> vector<256x128xf32>
    %14 = arith.addf %7, %13 : vector<256x128xf32>
    %c0_20 = arith.constant 0 : index
    %c0_21 = arith.constant 0 : index
    %c0_22 = arith.constant 0 : index
    %c0_23 = arith.constant 0 : index
    %c2 = arith.constant 2 : index
    %c0_24 = arith.constant 0 : index
    %15 = vector.load %arg2[%c0_20, %c0_21, %c0_22, %c0_23, %c2, %c0_24] : memref<1x1x1x18x18x4xbf16, #tpu.memory_space<vmem>>, vector<1x1x1x16x16x4xbf16>
    %16 = vector.shape_cast %15 : vector<1x1x1x16x16x4xbf16> to vector<16x16x4xbf16>
    %17 = vector.shape_cast %16 : vector<16x16x4xbf16> to vector<256x4xbf16>
    %c0_25 = arith.constant 0 : index
    %c2_26 = arith.constant 2 : index
    %c0_27 = arith.constant 0 : index
    %c0_28 = arith.constant 0 : index
    %18 = vector.load %arg3[%c0_25, %c2_26, %c0_27, %c0_28] : memref<3x3x4x128xbf16, #tpu.memory_space<vmem>>, vector<1x1x4x128xbf16>
    %19 = vector.shape_cast %18 : vector<1x1x4x128xbf16> to vector<4x128xbf16>
    %cst_29 = arith.constant dense<0.000000e+00> : vector<256x128xf32>
    %20 = tpu.matmul %17, %19, %cst_29 {dimension_numbers = #tpu.dot_dimension_numbers<[1], [0], [0], [1], [0, 0, 1, 1], [], []>} : vector<256x4xbf16>, vector<4x128xbf16>, vector<256x128xf32> -> vector<256x128xf32>
    %21 = arith.addf %14, %20 : vector<256x128xf32>
    %c0_30 = arith.constant 0 : index
    %c0_31 = arith.constant 0 : index
    %c0_32 = arith.constant 0 : index
    %c1_33 = arith.constant 1 : index
    %c0_34 = arith.constant 0 : index
    %c0_35 = arith.constant 0 : index
    %22 = vector.load %arg2[%c0_30, %c0_31, %c0_32, %c1_33, %c0_34, %c0_35] : memref<1x1x1x18x18x4xbf16, #tpu.memory_space<vmem>>, vector<1x1x1x16x16x4xbf16>
    %23 = vector.shape_cast %22 : vector<1x1x1x16x16x4xbf16> to vector<16x16x4xbf16>
    %24 = vector.shape_cast %23 : vector<16x16x4xbf16> to vector<256x4xbf16>
    %c1_36 = arith.constant 1 : index
    %c0_37 = arith.constant 0 : index
    %c0_38 = arith.constant 0 : index
    %c0_39 = arith.constant 0 : index
    %25 = vector.load %arg3[%c1_36, %c0_37, %c0_38, %c0_39] : memref<3x3x4x128xbf16, #tpu.memory_space<vmem>>, vector<1x1x4x128xbf16>
    %26 = vector.shape_cast %25 : vector<1x1x4x128xbf16> to vector<4x128xbf16>
    %cst_40 = arith.constant dense<0.000000e+00> : vector<256x128xf32>
    %27 = tpu.matmul %24, %26, %cst_40 {dimension_numbers = #tpu.dot_dimension_numbers<[1], [0], [0], [1], [0, 0, 1, 1], [], []>} : vector<256x4xbf16>, vector<4x128xbf16>, vector<256x128xf32> -> vector<256x128xf32>
    %28 = arith.addf %21, %27 : vector<256x128xf32>
    %c0_41 = arith.constant 0 : index
    %c0_42 = arith.constant 0 : index
    %c0_43 = arith.constant 0 : index
    %c1_44 = arith.constant 1 : index
    %c1_45 = arith.constant 1 : index
    %c0_46 = arith.constant 0 : index
    %29 = vector.load %arg2[%c0_41, %c0_42, %c0_43, %c1_44, %c1_45, %c0_46] : memref<1x1x1x18x18x4xbf16, #tpu.memory_space<vmem>>, vector<1x1x1x16x16x4xbf16>
    %30 = vector.shape_cast %29 : vector<1x1x1x16x16x4xbf16> to vector<16x16x4xbf16>
    %31 = vector.shape_cast %30 : vector<16x16x4xbf16> to vector<256x4xbf16>
    %c1_47 = arith.constant 1 : index
    %c1_48 = arith.constant 1 : index
    %c0_49 = arith.constant 0 : index
    %c0_50 = arith.constant 0 : index
    %32 = vector.load %arg3[%c1_47, %c1_48, %c0_49, %c0_50] : memref<3x3x4x128xbf16, #tpu.memory_space<vmem>>, vector<1x1x4x128xbf16>
    %33 = vector.shape_cast %32 : vector<1x1x4x128xbf16> to vector<4x128xbf16>
    %cst_51 = arith.constant dense<0.000000e+00> : vector<256x128xf32>
    %34 = tpu.matmul %31, %33, %cst_51 {dimension_numbers = #tpu.dot_dimension_numbers<[1], [0], [0], [1], [0, 0, 1, 1], [], []>} : vector<256x4xbf16>, vector<4x128xbf16>, vector<256x128xf32> -> vector<256x128xf32>
    %35 = arith.addf %28, %34 : vector<256x128xf32>
    %c0_52 = arith.constant 0 : index
    %c0_53 = arith.constant 0 : index
    %c0_54 = arith.constant 0 : index
    %c1_55 = arith.constant 1 : index
    %c2_56 = arith.constant 2 : index
    %c0_57 = arith.constant 0 : index
    %36 = vector.load %arg2[%c0_52, %c0_53, %c0_54, %c1_55, %c2_56, %c0_57] : memref<1x1x1x18x18x4xbf16, #tpu.memory_space<vmem>>, vector<1x1x1x16x16x4xbf16>
    %37 = vector.shape_cast %36 : vector<1x1x1x16x16x4xbf16> to vector<16x16x4xbf16>
    %38 = vector.shape_cast %37 : vector<16x16x4xbf16> to vector<256x4xbf16>
    %c1_58 = arith.constant 1 : index
    %c2_59 = arith.constant 2 : index
    %c0_60 = arith.constant 0 : index
    %c0_61 = arith.constant 0 : index
    %39 = vector.load %arg3[%c1_58, %c2_59, %c0_60, %c0_61] : memref<3x3x4x128xbf16, #tpu.memory_space<vmem>>, vector<1x1x4x128xbf16>
    %40 = vector.shape_cast %39 : vector<1x1x4x128xbf16> to vector<4x128xbf16>
    %cst_62 = arith.constant dense<0.000000e+00> : vector<256x128xf32>
    %41 = tpu.matmul %38, %40, %cst_62 {dimension_numbers = #tpu.dot_dimension_numbers<[1], [0], [0], [1], [0, 0, 1, 1], [], []>} : vector<256x4xbf16>, vector<4x128xbf16>, vector<256x128xf32> -> vector<256x128xf32>
    %42 = arith.addf %35, %41 : vector<256x128xf32>
    %c0_63 = arith.constant 0 : index
    %c0_64 = arith.constant 0 : index
    %c0_65 = arith.constant 0 : index
    %c2_66 = arith.constant 2 : index
    %c0_67 = arith.constant 0 : index
    %c0_68 = arith.constant 0 : index
    %43 = vector.load %arg2[%c0_63, %c0_64, %c0_65, %c2_66, %c0_67, %c0_68] : memref<1x1x1x18x18x4xbf16, #tpu.memory_space<vmem>>, vector<1x1x1x16x16x4xbf16>
    %44 = vector.shape_cast %43 : vector<1x1x1x16x16x4xbf16> to vector<16x16x4xbf16>
    %45 = vector.shape_cast %44 : vector<16x16x4xbf16> to vector<256x4xbf16>
    %c2_69 = arith.constant 2 : index
    %c0_70 = arith.constant 0 : index
    %c0_71 = arith.constant 0 : index
    %c0_72 = arith.constant 0 : index
    %46 = vector.load %arg3[%c2_69, %c0_70, %c0_71, %c0_72] : memref<3x3x4x128xbf16, #tpu.memory_space<vmem>>, vector<1x1x4x128xbf16>
    %47 = vector.shape_cast %46 : vector<1x1x4x128xbf16> to vector<4x128xbf16>
    %cst_73 = arith.constant dense<0.000000e+00> : vector<256x128xf32>
    %48 = tpu.matmul %45, %47, %cst_73 {dimension_numbers = #tpu.dot_dimension_numbers<[1], [0], [0], [1], [0, 0, 1, 1], [], []>} : vector<256x4xbf16>, vector<4x128xbf16>, vector<256x128xf32> -> vector<256x128xf32>
    %49 = arith.addf %42, %48 : vector<256x128xf32>
    %c0_74 = arith.constant 0 : index
    %c0_75 = arith.constant 0 : index
    %c0_76 = arith.constant 0 : index
    %c2_77 = arith.constant 2 : index
    %c1_78 = arith.constant 1 : index
    %c0_79 = arith.constant 0 : index
    %50 = vector.load %arg2[%c0_74, %c0_75, %c0_76, %c2_77, %c1_78, %c0_79] : memref<1x1x1x18x18x4xbf16, #tpu.memory_space<vmem>>, vector<1x1x1x16x16x4xbf16>
    %51 = vector.shape_cast %50 : vector<1x1x1x16x16x4xbf16> to vector<16x16x4xbf16>
    %52 = vector.shape_cast %51 : vector<16x16x4xbf16> to vector<256x4xbf16>
    %c2_80 = arith.constant 2 : index
    %c1_81 = arith.constant 1 : index
    %c0_82 = arith.constant 0 : index
    %c0_83 = arith.constant 0 : index
    %53 = vector.load %arg3[%c2_80, %c1_81, %c0_82, %c0_83] : memref<3x3x4x128xbf16, #tpu.memory_space<vmem>>, vector<1x1x4x128xbf16>
    %54 = vector.shape_cast %53 : vector<1x1x4x128xbf16> to vector<4x128xbf16>
    %cst_84 = arith.constant dense<0.000000e+00> : vector<256x128xf32>
    %55 = tpu.matmul %52, %54, %cst_84 {dimension_numbers = #tpu.dot_dimension_numbers<[1], [0], [0], [1], [0, 0, 1, 1], [], []>} : vector<256x4xbf16>, vector<4x128xbf16>, vector<256x128xf32> -> vector<256x128xf32>
    %56 = arith.addf %49, %55 : vector<256x128xf32>
    %c0_85 = arith.constant 0 : index
    %c0_86 = arith.constant 0 : index
    %c0_87 = arith.constant 0 : index
    %c2_88 = arith.constant 2 : index
    %c2_89 = arith.constant 2 : index
    %c0_90 = arith.constant 0 : index
    %57 = vector.load %arg2[%c0_85, %c0_86, %c0_87, %c2_88, %c2_89, %c0_90] : memref<1x1x1x18x18x4xbf16, #tpu.memory_space<vmem>>, vector<1x1x1x16x16x4xbf16>
    %58 = vector.shape_cast %57 : vector<1x1x1x16x16x4xbf16> to vector<16x16x4xbf16>
    %59 = vector.shape_cast %58 : vector<16x16x4xbf16> to vector<256x4xbf16>
    %c2_91 = arith.constant 2 : index
    %c2_92 = arith.constant 2 : index
    %c0_93 = arith.constant 0 : index
    %c0_94 = arith.constant 0 : index
    %60 = vector.load %arg3[%c2_91, %c2_92, %c0_93, %c0_94] : memref<3x3x4x128xbf16, #tpu.memory_space<vmem>>, vector<1x1x4x128xbf16>
    %61 = vector.shape_cast %60 : vector<1x1x4x128xbf16> to vector<4x128xbf16>
    %cst_95 = arith.constant dense<0.000000e+00> : vector<256x128xf32>
    %62 = tpu.matmul %59, %61, %cst_95 {dimension_numbers = #tpu.dot_dimension_numbers<[1], [0], [0], [1], [0, 0, 1, 1], [], []>} : vector<256x4xbf16>, vector<4x128xbf16>, vector<256x128xf32> -> vector<256x128xf32>
    %63 = arith.addf %56, %62 : vector<256x128xf32>
    %c0_96 = arith.constant 0 : index
    %c0_97 = arith.constant 0 : index
    %64 = vector.load %arg4[%c0_96, %c0_97] : memref<1x128xf32, #tpu.memory_space<vmem>>, vector<1x128xf32>
    %65 = vector.broadcast %64 : vector<1x128xf32> to vector<256x128xf32>
    %66 = arith.mulf %63, %65 : vector<256x128xf32>
    %c0_98 = arith.constant 0 : index
    %c0_99 = arith.constant 0 : index
    %67 = vector.load %arg5[%c0_98, %c0_99] : memref<1x128xf32, #tpu.memory_space<vmem>>, vector<1x128xf32>
    %68 = vector.broadcast %67 : vector<1x128xf32> to vector<256x128xf32>
    %69 = arith.addf %66, %68 : vector<256x128xf32>
    %cst_100 = arith.constant 0.000000e+00 : f32
    %70 = vector.broadcast %cst_100 : f32 to vector<256x128xf32>
    %71 = arith.maximumf %69, %70 : vector<256x128xf32>
    %72 = vector.shape_cast %71 : vector<256x128xf32> to vector<16x16x128xf32>
    %73 = arith.truncf %72 : vector<16x16x128xf32> to vector<16x16x128xbf16>
    %c0_101 = arith.constant 0 : index
    %c0_102 = arith.constant 0 : index
    %c0_103 = arith.constant 0 : index
    %c0_104 = arith.constant 0 : index
    %74 = vector.load %arg6[%c0_101, %c0_102, %c0_103, %c0_104] : memref<1x16x16x128xbf16, #tpu.memory_space<vmem>>, vector<1x16x16x128xbf16>
    %75 = vector.shape_cast %74 : vector<1x16x16x128xbf16> to vector<16x16x128xbf16>
    %76 = vector.shape_cast %73 : vector<16x16x128xbf16> to vector<1x16x16x128xbf16>
    tpu.vector_store %arg6[%c0_101, %c0_102, %c0_103, %c0_104], %76 {strides = array<i32>} : memref<1x16x16x128xbf16, #tpu.memory_space<vmem>>, vector<1x16x16x128xbf16>,
    return
  }
  func.func @transform_0(%arg0: i32, %arg1: i32) -> (i32, i32, i32, i32, i32, i32) {
    %c0_i32 = arith.constant 0 : i32
    %c0_i32_0 = arith.constant 0 : i32
    %c0_i32_1 = arith.constant 0 : i32
    %c0_i32_2 = arith.constant 0 : i32
    %c0_i32_3 = arith.constant 0 : i32
    %c0_i32_4 = arith.constant 0 : i32
    return %arg0, %c0_i32, %c0_i32_0, %c0_i32_1, %c0_i32_2, %c0_i32_3 : i32, i32, i32, i32, i32, i32
  }
  func.func @transform_1(%arg0: i32, %arg1: i32) -> (i32, i32, i32, i32) {
    %c0_i32 = arith.constant 0 : i32
    %c0_i32_0 = arith.constant 0 : i32
    %c0_i32_1 = arith.constant 0 : i32
    %c0_i32_2 = arith.constant 0 : i32
    return %c0_i32, %c0_i32_0, %c0_i32_1, %arg1 : i32, i32, i32, i32
  }
  func.func @transform_2(%arg0: i32, %arg1: i32) -> (i32, i32) {
    %c0_i32 = arith.constant 0 : i32
    %c0_i32_0 = arith.constant 0 : i32
    return %c0_i32, %arg1 : i32, i32
  }
  func.func @transform_3(%arg0: i32, %arg1: i32) -> (i32, i32) {
    %c0_i32 = arith.constant 0 : i32
    %c0_i32_0 = arith.constant 0 : i32
    return %c0_i32, %arg1 : i32, i32
  }
  func.func @transform_4(%arg0: i32, %arg1: i32) -> (i32, i32, i32, i32) {
    %c0_i32 = arith.constant 0 : i32
    %c0_i32_0 = arith.constant 0 : i32
    %c0_i32_1 = arith.constant 0 : i32
    return %arg0, %c0_i32, %c0_i32_0, %arg1 : i32, i32, i32, i32
  }
}

</mosaic_0001>

<bundles_post_ra>
// kernel: conv_bn_relu.1
= control target key start
LH: loop header
LB: loop body
LE: loop exit
PB: predicated region body
PF: predicated region fallthrough
CT: control target
= control target key end

     0   :  { %s6827_s15 = smov 0   ;;  %s6829_s16 = smov 0   ;;  %s8668_s0 = inlined_call_operand.vmem [shape: bf16[2,1,1,18,18,4], index: 0, kind: input, shape index: {}]   ;;  %s8669_s1 = inlined_call_operand.vmem [shape: bf16[3,3,4,128], index: 1, kind: input, shape index: {}]   ;;  %s8670_s2 = inlined_call_operand.vmem [shape: f32[1,128], index: 2, kind: input, shape index: {}]   ;;  %s8671_s3 = inlined_call_operand.vmem [shape: f32[1,128], index: 3, kind: input, shape index: {}]   ;;  %s8672_s4 = inlined_call_operand.vmem [shape: bf16[2,16,16,128], index: 4, kind: output, shape index: {}]  }
   0x1   :  { %s6831_s17 = smov 0  }
   0x2 LB: > { %s26_s18 = sadd.s32 1, %s6796_s16  ;;  %p5217_p0 = scmp.ge.s32.totalorder %s6800_s17, 1  ;;  %s6800_s17 = sphi %s6831_s17, %s14_s17   ;;  %s6796_s16 = sphi %s6829_s16, %s8741_s16   ;;  %s6792_s15 = sphi %s6827_s15, %s8740_s15  }
   0x3   : > { %p28_p1 = scmp.ge.s32.totalorder %s26_s18, 2  ;;  %p201_p2 = scmp.lt.s32.totalorder %s6800_s17, 3 }
   0x5   : > { %s8743_s18 = smov (%p28_p1, %s26_s18), 0  ;;  %p202_p3 = pnand %p5217_p0, %p201_p2 }
   0x7   : > { %205 = sbr.rel (%p202_p3) target bundleno = 592 (0x250), region = 36 }
   0xe   : > { %v5221_v0 = vld [vmem:[%s8669_s1 + $0x2] sm:$0x3]  ;;  %vm799_vm0 = vcmask 1041408   ;;  %v5448_v1 = vld [vmem:[%s8669_s1 + $0x8] sm:$0x3]  ;;  %p240_p4 = scmp.lt.s32.totalorder %s6792_s15, 1 }
   0xf   : > { %6638 = vmatprep.subr.msk.bf16.mxu1 %vm799_vm0, %v5221_v0  ;;  %6642 = vmatprep.subr.msk.bf16.mxu0 %vm799_vm0, %v5448_v1  ;;  %v801_v2 = vsel %vm799_vm0, %v5221_v0, 0  ;;  %v6855_v3 = vsel %vm799_vm0, %v5448_v1, 0  ;;  %v296_v4 = vld [vmem:[%s8669_s1] sm:$0x3]  ;;  %v5513_v5 = vld [vmem:[%s8669_s1 + $0xa] sm:$0x3] }
  0x10   : > { %8686 = vst [vmem:[#allocation2_spill] sm:$0xff] %v6855_v3  ;;  %6075 = vmatpush3.bf16.msra.mxu1 %v801_v2  ;;  %6211 = vmatpush3.bf16.msra.mxu0 %v6855_v3  ;;  %s8745_s15 = smov (!%p240_p4, %s6792_s15), 1  ;;  %vm313_vm1 = vsmask.f32 3328  ;;  %vm314_vm2 = vsmask.f32 7440 }
  0x11   : > { %6639 = vmatprep.subr.msk.bf16.mxu1 %vm799_vm0, %v296_v4  ;;  %6644 = vmatprep.subr.msk.bf16.mxu0 %vm799_vm0, %v5513_v5  ;;  %s6648_s27 = smul.u32 216, %s8745_s15  ;;  %vm750_vm3 = vcmask 31744   ;;  %v6885_v17 = vsel %vm799_vm0, %v296_v4, 0  ;;  %v6891_v26 = vld [vmem:[%s8669_s1 + $0xc] sm:$0x3]  ;;  %vm6898_vm4 = vmor %vm313_vm1, %vm314_vm2  ;;  %v6904_v37 = vsel %vm799_vm0, %v5513_v5, 0 }
  0x12   : > { %v6908_v41 = vsel %vm799_vm0, %v6891_v26, 0  ;;  %vm1304_vm5 = vcmask 1042432   ;;  %vm1305_vm6 = vcmask 1046532  }
  0x13   : > { %s6872_s30 = scalar_lea.vmem %s8668_s0, %s6648_s27  ;;  %vm7124_vm7 = vmor %vm1304_vm5, %vm1305_vm6  ;;  %s5793_s27 = sshll.u32 %s8745_s15, 7 }
  0x14   : > { %v264_v6 = vld [vmem:[%s6872_s30] sm:$0xf]  ;;  %v265_v7 = vld [vmem:[%s6872_s30 + $0x4] sm:$0xf]  ;;  %v297_v8 = vld [vmem:[%s6872_s30 + $0x8] sm:$0x1] }
  0x15   : > { %v317_v9 = vshrl.u32 %v264_v6, 16  ;;  %v320_v10 = vshll.u32 %v264_v6, 16  ;;  %v326_v11 = vshll.u32 %v265_v7, 16  ;;  %v330_v12 = vshrl.u32 %v265_v7, 16  ;;  %v5400_v13 = vld [vmem:[%s6872_s30 + $0xc] sm:$0xf] }
  0x16   : > { %v336_v14 = vshll.u32 %v297_v8, 16  ;;  %v6879_v15 = vld [vmem:[%s6872_s30 + $0x10] sm:$0xf]  ;;  %v6882_v16 = vld [vmem:[%s6872_s30 + $0x14] sm:$0x1]  ;;  %v2121_v23 = vshrl.u32 %v5400_v13, 16 }
  0x17   : > { %v319_v18 = vrot.slane %v317_v9, 4  ;;  %v322_v19 = vrot.slane %v320_v10, 5  ;;  %v328_v20 = vrot.slane %v326_v11, 5  ;;  %v332_v21 = vrot.slane %v330_v12, 4  ;;  %v266_v31 = vld [vmem:[%s6872_s30 + $0xc] sm:$0xf] }
  0x18   : > { %v338_v22 = vrot.slane %v336_v14, 5  ;;  %v2124_v24 = vshll.u32 %v5400_v13, 16  ;;  %v2130_v25 = vshll.u32 %v6879_v15, 16  ;;  %v2134_v29 = vshrl.u32 %v6879_v15, 16  ;;  %v267_v36 = vld [vmem:[%s6872_s30 + $0x10] sm:$0xf] }
  0x19   : > { %v323_v27 = vor.u32 %v322_v19, %v319_v18  ;;  %v333_v28 = vor.u32 %v332_v21, %v328_v20  ;;  %v2140_v30 = vshll.u32 %v6882_v16, 16  ;;  %v2123_v33 = vrot.slane %v2121_v23, 4  ;;  %v298_v44 = vld [vmem:[%s6872_s30 + $0x14] sm:$0x1]  ;;  %v5403_v55 = vld [vmem:[%s6872_s30 + $0x18] sm:$0xf] }
  0x1a   : > { %v2126_v34 = vrot.slane %v2124_v24, 5  ;;  %v2132_v35 = vrot.slane %v2130_v25, 5  ;;  %v2136_v40 = vrot.slane %v2134_v29, 4  ;;  %v341_v45 = vshrl.u32 %v266_v31, 16  ;;  %v6917_v60 = vld [vmem:[%s6872_s30 + $0x1c] sm:$0xf] }
  0x1b   : > { %v324_v38 = vrot.slane %v323_v27, 4  ;;  %v334_v39 = vrot.slane %v333_v28, 4  ;;  %v2142_v43 = vrot.slane %v2140_v30, 5  ;;  %v344_v46 = vshll.u32 %v266_v31, 16  ;;  %v6925_v1 = vld [vmem:[%s6872_s30 + $0x20] sm:$0x1] }
  0x1c   : > { %v2127_v42 = vor.u32 %v2126_v34, %v2123_v33  ;;  %v2137_v49 = vor.u32 %v2136_v40, %v2132_v35  ;;  %v350_v50 = vshll.u32 %v267_v36, 16  ;;  %v343_v53 = vrot.slane %v341_v45, 4  ;;  %v268_v18 = vld [vmem:[%s6872_s30 + $0x18] sm:$0xf]  ;;  %v269_v23 = vld [vmem:[%s6872_s30 + $0x1c] sm:$0xf] }
  0x1d   : > { %v329_v47 = vsel %vm6898_vm4, %v324_v38, %v328_v20  ;;  %v339_v48 = vsel %vm6898_vm4, %v334_v39, %v338_v22  ;;  %v346_v54 = vrot.slane %v344_v46, 5  ;;  %v354_v58 = vshrl.u32 %v267_v36, 16  ;;  %v299_v31 = vld [vmem:[%s6872_s30 + $0x20] sm:$0x1]  ;;  %v5406_v40 = vld [vmem:[%s6872_s30 + $0x24] sm:$0xf] }
  0x1e   : > { %v5222_v51 = vcombine.low %v329_v47, %v339_v48  ;;  %v2128_v52 = vrot.slane %v2127_v42, 4  ;;  %v2138_v56 = vrot.slane %v2137_v49, 4  ;;  %v352_v57 = vrot.slane %v350_v50, 5  ;;  %v6948_v46 = vld [vmem:[%s6872_s30 + $0x28] sm:$0xf] }
  0x1f   : > { %v360_v59 = vshll.u32 %v298_v44, 16  ;;  %v2864_v62 = vrot.slane %v6879_v15, 5  ;;  %v2867_v63 = vrot.slane %v6882_v16, 5  ;;  %v347_v0 = vor.u32 %v346_v54, %v343_v53  ;;  %v6957_v54 = vld [vmem:[%s6872_s30 + $0x2c] sm:$0x1] }
  0x20   : > { %6076 = vmatprep.mubr.msk.bf16.mxu1 %vm750_vm3, %v5222_v51  ;;  %v2133_v61 = vsel %vm6898_vm4, %v2128_v52, %v2132_v35  ;;  %v2143_v2 = vsel %vm6898_vm4, %v2138_v56, %v2142_v43  ;;  %v356_v4 = vrot.slane %v354_v58, 4  ;;  %v2145_v6 = vshrl.u32 %v5403_v55, 16  ;;  %v5302_v51 = vld [vmem:[%s8669_s1 + $0x4] sm:$0x3]  ;;  %v7157_v16 = vld [vmem:[%s6872_s30 + $0x7c] sm:$0xf] }
  0x21   : > { %v362_v5 = vrot.slane %v360_v59, 5  ;;  %v5449_v7 = vcombine.low %v2133_v61, %v2143_v2  ;;  %v348_v8 = vrot.slane %v347_v0, 4  ;;  %v2148_v9 = vshll.u32 %v5403_v55, 16  ;;  %v270_v0 = vld [vmem:[%s6872_s30 + $0x24] sm:$0xf] }
  0x22   : > { %v2154_v10 = vshll.u32 %v6917_v60, 16  ;;  %v357_v11 = vor.u32 %v356_v4, %v352_v57  ;;  %v2147_v12 = vrot.slane %v2145_v6, 4  ;;  %v2158_v13 = vshrl.u32 %v6917_v60, 16 }
  0x23   : > { %v2164_v14 = vshll.u32 %v6925_v1, 16  ;;  %6212 = vmatprep.mubr.msk.bf16.mxu0 %vm750_vm3, %v5449_v7  ;;  %v353_v19 = vsel %vm6898_vm4, %v348_v8, %v352_v57  ;;  %v2150_v20 = vrot.slane %v2148_v9, 5  ;;  %v2871_v22 = vrot.slane %v6917_v60, 5  ;;  %v271_v7 = vld [vmem:[%s6872_s30 + $0x28] sm:$0xf] }
  0x24   : > { %v2156_v21 = vrot.slane %v2154_v10, 5  ;;  %v358_v24 = vrot.slane %v357_v11, 4  ;;  %v2160_v25 = vrot.slane %v2158_v13, 4  ;;  %v2874_v28 = vrot.slane %v6925_v1, 5  ;;  %v300_v13 = vld [vmem:[%s6872_s30 + $0x2c] sm:$0x1] }
  0x25   : > { %v2166_v27 = vrot.slane %v2164_v14, 5  ;;  %v2151_v29 = vor.u32 %v2150_v20, %v2147_v12  ;;  %v6941_v30 = vrot.slane %v2871_v22, 4  ;;  %v365_v33 = vshrl.u32 %v268_v18, 16 }
  0x26   : > { %v368_v34 = vshll.u32 %v268_v18, 16  ;;  %v363_v35 = vsel %vm6898_vm4, %v358_v24, %v362_v5  ;;  %v2161_v36 = vor.u32 %v2160_v25, %v2156_v21  ;;  %v374_v38 = vshll.u32 %v269_v23, 16  ;;  %v5409_v24 = vld [vmem:[%s6872_s30 + $0x30] sm:$0xf] }
  0x27   : > { %v378_v39 = vshrl.u32 %v269_v23, 16  ;;  %v5223_v42 = vcombine.low %v353_v19, %v363_v35  ;;  %v2152_v43 = vrot.slane %v2151_v29, 4  ;;  %v367_v44 = vrot.slane %v365_v33, 4  ;;  %v6977_v33 = vld [vmem:[%s6872_s30 + $0x34] sm:$0xf] }
  0x28   : > { %v370_v45 = vrot.slane %v368_v34, 5  ;;  %v2162_v47 = vrot.slane %v2161_v36, 4  ;;  %v376_v48 = vrot.slane %v374_v38, 5  ;;  %v384_v50 = vshll.u32 %v299_v31, 16 }
  0x29   : > { %v380_v49 = vrot.slane %v378_v39, 4  ;;  %6077 = vmatmul.mubr.msk.bf16.vlgmr.msra.gmra.mrb[0].mxu1 %vm750_vm3, %v5223_v42  ;;  %v2157_v52 = vsel %vm6898_vm4, %v2152_v43, %v2156_v21  ;;  %v2169_v55 = vshrl.u32 %v5406_v40, 16  ;;  %v2172_v56 = vshll.u32 %v5406_v40, 16  ;;  %v6985_v40 = vld [vmem:[%s6872_s30 + $0x38] sm:$0x1] }
  0x2a   : > { %v371_v53 = vor.u32 %v370_v45, %v367_v44  ;;  %6109 = vmatpush3.bf16.msra.mxu1 %v6885_v17  ;;  %v2167_v57 = vsel %vm6898_vm4, %v2162_v47, %v2166_v27  ;;  %v386_v59 = vrot.slane %v384_v50, 5  ;;  %v2178_v61 = vshll.u32 %v6948_v46, 16 }
  0x2b   : > { %v381_v58 = vor.u32 %v380_v49, %v376_v48  ;;  %v5450_v2 = vcombine.low %v2157_v52, %v2167_v57  ;;  %v2171_v5 = vrot.slane %v2169_v55, 4  ;;  %v2174_v6 = vrot.slane %v2172_v56, 5  ;;  %6640 = vmatprep.subr.msk.bf16.mxu1 %vm799_vm0, %v5302_v51  ;;  %v272_v52 = vld [vmem:[%s6872_s30 + $0x30] sm:$0xf] }
  0x2c   : > { %v372_v4 = vrot.slane %v371_v53, 4  ;;  %v2180_v9 = vrot.slane %v2178_v61, 5  ;;  %v2182_v17 = vshrl.u32 %v6948_v46, 16  ;;  %v2188_v10 = vshll.u32 %v6957_v54, 16 }
  0x2d   : > { %v382_v8 = vrot.slane %v381_v58, 4  ;;  %6213 = vmatmul.mubr.msk.bf16.vlgmr.msra.gmra.mrb[0].mxu0 %vm750_vm3, %v5450_v2  ;;  %v2175_v12 = vor.u32 %v2174_v6, %v2171_v5  ;;  %v389_v14 = vshrl.u32 %v270_v0, 16  ;;  %v392_v18 = vshll.u32 %v270_v0, 16  ;;  %v273_v58 = vld [vmem:[%s6872_s30 + $0x34] sm:$0xf] }
  0x2e   : > { %v377_v11 = vsel %vm6898_vm4, %v372_v4, %v376_v48  ;;  %6245 = vmatpush3.bf16.msra.mxu0 %v6904_v37  ;;  %v2184_v20 = vrot.slane %v2182_v17, 4  ;;  %v2190_v21 = vrot.slane %v2188_v10, 5  ;;  %v398_v23 = vshll.u32 %v271_v7, 16  ;;  %v301_v4 = vld [vmem:[%s6872_s30 + $0x38] sm:$0x1] }
  0x2f   : > { %v387_v19 = vsel %vm6898_vm4, %v382_v8, %v386_v59  ;;  %v2176_v27 = vrot.slane %v2175_v12, 4  ;;  %v391_v29 = vrot.slane %v389_v14, 4  ;;  %v394_v31 = vrot.slane %v392_v18, 5  ;;  %6645 = vmatprep.subr.msk.bf16.mxu0 %vm799_vm0, %v6891_v26  ;;  %v5412_v12 = vld [vmem:[%s6872_s30 + $0x3c] sm:$0xf] }
  0x30   : > { %v5224_v25 = vcombine.low %v377_v11, %v387_v19  ;;  %v2185_v34 = vor.u32 %v2184_v20, %v2180_v9  ;;  %v400_v35 = vrot.slane %v398_v23, 5  ;;  %v402_v37 = vshrl.u32 %v271_v7, 16  ;;  %v7002_v20 = vld [vmem:[%s6872_s30 + $0x40] sm:$0xf] }
  0x31   : > { %v408_v36 = vshll.u32 %v300_v13, 16  ;;  %v2181_v38 = vsel %vm6898_vm4, %v2176_v27, %v2180_v9  ;;  %v395_v39 = vor.u32 %v394_v31, %v391_v29  ;;  %v2193_v42 = vshrl.u32 %v5409_v24, 16 }
  0x32   : > { %6080 = vmatprep.mubr.msk.bf16.mxu1 %vm750_vm3, %v5224_v25  ;;  %v2196_v43 = vshll.u32 %v5409_v24, 16  ;;  %v2186_v44 = vrot.slane %v2185_v34, 4  ;;  %v404_v45 = vrot.slane %v402_v37, 4  ;;  %v2202_v26 = vshll.u32 %v6977_v33, 16  ;;  %v7007_v34 = vld [vmem:[%s6872_s30 + $0x44] sm:$0x1] }
  0x33   : > { %v410_v47 = vrot.slane %v408_v36, 5  ;;  %v396_v48 = vrot.slane %v395_v39, 4  ;;  %v2195_v49 = vrot.slane %v2193_v42, 4  ;;  %v2206_v51 = vshrl.u32 %v6977_v33, 16  ;;  %v274_v42 = vld [vmem:[%s6872_s30 + $0x3c] sm:$0xf] }
  0x34   : > { %v2198_v50 = vrot.slane %v2196_v43, 5  ;;  %v2191_v53 = vsel %vm6898_vm4, %v2186_v44, %v2190_v21  ;;  %v405_v55 = vor.u32 %v404_v45, %v400_v35  ;;  %v2204_v56 = vrot.slane %v2202_v26, 5  ;;  %v275_v26 = vld [vmem:[%s6872_s30 + $0x40] sm:$0xf] }
  0x35   : > { %v2212_v57 = vshll.u32 %v6985_v40, 16  ;;  %v5451_v59 = vcombine.low %v2181_v38, %v2191_v53  ;;  %v401_v61 = vsel %vm6898_vm4, %v396_v48, %v400_v35  ;;  %v2208_v2 = vrot.slane %v2206_v51, 4 }
  0x36   : > { %v2199_v0 = vor.u32 %v2198_v50, %v2195_v49  ;;  %v406_v5 = vrot.slane %v405_v55, 4  ;;  %v413_v7 = vshrl.u32 %v272_v52, 16  ;;  %v416_v8 = vshll.u32 %v272_v52, 16 }
  0x37   : > { %v2214_v6 = vrot.slane %v2212_v57, 5  ;;  %6216 = vmatprep.mubr.msk.bf16.mxu0 %vm750_vm3, %v5451_v59  ;;  %v2209_v17 = vor.u32 %v2208_v2, %v2204_v56  ;;  %v422_v10 = vshll.u32 %v273_v58, 16  ;;  %v426_v11 = vshrl.u32 %v273_v58, 16  ;;  %v5415_v2 = vld [vmem:[%s6872_s30 + $0x48] sm:$0xf] }
  0x38   : > { %v2200_v9 = vrot.slane %v2199_v0, 4  ;;  %v411_v13 = vsel %vm6898_vm4, %v406_v5, %v410_v47  ;;  %v415_v14 = vrot.slane %v413_v7, 4  ;;  %v418_v18 = vrot.slane %v416_v8, 5  ;;  %v7025_v8 = vld [vmem:[%s6872_s30 + $0x4c] sm:$0xf] }
  0x39   : > { %v432_v19 = vshll.u32 %v301_v4, 16  ;;  %v5225_v21 = vcombine.low %v401_v61, %v411_v13  ;;  %v2210_v24 = vrot.slane %v2209_v17, 4  ;;  %v424_v25 = vrot.slane %v422_v10, 5  ;;  %v302_v61 = vld [vmem:[%s6872_s30 + $0x44] sm:$0x1] }
  0x3a   : > { %v2205_v23 = vsel %vm6898_vm4, %v2200_v9, %v2204_v56  ;;  %v419_v27 = vor.u32 %v418_v18, %v415_v14  ;;  %v428_v29 = vrot.slane %v426_v11, 4  ;;  %v2217_v35 = vshrl.u32 %v5412_v12, 16 }
  0x3b   : > { %v434_v31 = vrot.slane %v432_v19, 5  ;;  %6081 = vmatmul.mubr.msk.bf16.gmra.mrb[4].mxu1 %vm750_vm3, %v5225_v21  ;;  %v2215_v37 = vsel %vm6898_vm4, %v2210_v24, %v2214_v6  ;;  %v2220_v36 = vshll.u32 %v5412_v12, 16  ;;  %v2226_v38 = vshll.u32 %v7002_v20, 16 }
  0x3c   : > { %v2230_v39 = vshrl.u32 %v7002_v20, 16  ;;  %v5452_v43 = vcombine.low %v2205_v23, %v2215_v37  ;;  %v420_v44 = vrot.slane %v419_v27, 4  ;;  %v429_v45 = vor.u32 %v428_v29, %v424_v25  ;;  %v7033_v23 = vld [vmem:[%s6872_s30 + $0x50] sm:$0x1]  ;;  %v7037_v27 = vld [vmem:[%s6872_s30 + $0x48] sm:$0xf] }
  0x3d   : > { %v2219_v47 = vrot.slane %v2217_v35, 4  ;;  %v2222_v48 = vrot.slane %v2220_v36, 5  ;;  %v2228_v49 = vrot.slane %v2226_v38, 5  ;;  %v2236_v51 = vshll.u32 %v7007_v34, 16  ;;  %v7040_v36 = vld [vmem:[%s6872_s30 + $0x4c] sm:$0xf] }
  0x3e   : > { %v2232_v50 = vrot.slane %v2230_v39, 4  ;;  %6217 = vmatmul.mubr.msk.bf16.gmra.mrb[4].mxu0 %vm750_vm3, %v5452_v43  ;;  %v425_v52 = vsel %vm6898_vm4, %v420_v44, %v424_v25  ;;  %v430_v53 = vrot.slane %v429_v45, 4  ;;  %v437_v55 = vshrl.u32 %v274_v42, 16 }
  0x3f   : > { %v440_v56 = vshll.u32 %v274_v42, 16  ;;  %v2223_v57 = vor.u32 %v2222_v48, %v2219_v47  ;;  %v2238_v59 = vrot.slane %v2236_v51, 5  ;;  %v446_v0 = vshll.u32 %v275_v26, 16 }
  0x40   : > { %v2233_v58 = vor.u32 %v2232_v50, %v2228_v49  ;;  %v435_v4 = vsel %vm6898_vm4, %v430_v53, %v434_v31  ;;  %v439_v5 = vrot.slane %v437_v55, 4  ;;  %v450_v7 = vshrl.u32 %v275_v26, 16  ;;  %v303_v26 = vld [vmem:[%s6872_s30 + $0x50] sm:$0x1]  ;;  %v5418_v53 = vld [vmem:[%s6872_s30 + $0x54] sm:$0xf] }
  0x41   : > { %v442_v6 = vrot.slane %v440_v56, 5  ;;  %v5226_v9 = vcombine.low %v425_v52, %v435_v4  ;;  %v2224_v17 = vrot.slane %v2223_v57, 4  ;;  %v448_v11 = vrot.slane %v446_v0, 5  ;;  %v7056_v4 = vld [vmem:[%s6872_s30 + $0x58] sm:$0xf] }
  0x42   : > { %v2234_v10 = vrot.slane %v2233_v58, 4  ;;  %v452_v13 = vrot.slane %v450_v7, 4  ;;  %v456_v14 = vshll.u32 %v302_v61, 16  ;;  %v2241_v18 = vshrl.u32 %v5415_v2, 16 }
  0x43   : > { %v443_v12 = vor.u32 %v442_v6, %v439_v5  ;;  %6084 = vmatprep.mubr.msk.bf16.mxu1 %vm750_vm3, %v5226_v9  ;;  %v2229_v19 = vsel %vm6898_vm4, %v2224_v17, %v2228_v49  ;;  %v2244_v24 = vshll.u32 %v5415_v2, 16  ;;  %v2250_v25 = vshll.u32 %v7025_v8, 16 }
  0x44   : > { %v2239_v21 = vsel %vm6898_vm4, %v2234_v10, %v2238_v59  ;;  %v453_v35 = vor.u32 %v452_v13, %v448_v11  ;;  %v458_v37 = vrot.slane %v456_v14, 5  ;;  %v2243_v38 = vrot.slane %v2241_v18, 4 }
  0x45   : > { %v5453_v29 = vcombine.low %v2229_v19, %v2239_v21  ;;  %v444_v31 = vrot.slane %v443_v12, 4  ;;  %v2246_v39 = vrot.slane %v2244_v24, 5  ;;  %v2252_v42 = vrot.slane %v2250_v25, 5  ;;  %v7062_v12 = vld [vmem:[%s6872_s30 + $0x5c] sm:$0x1] }
  0x46   : > { %v2254_v43 = vshrl.u32 %v7025_v8, 16  ;;  %v454_v45 = vrot.slane %v453_v35, 4  ;;  %v2260_v47 = vshll.u32 %v7033_v23, 16  ;;  %v461_v48 = vshrl.u32 %v7037_v27, 16  ;;  %v7066_v24 = vld [vmem:[%s6872_s30 + $0x54] sm:$0xf] }
  0x47   : > { %6220 = vmatprep.mubr.msk.bf16.mxu0 %vm750_vm3, %v5453_v29  ;;  %v449_v44 = vsel %vm6898_vm4, %v444_v31, %v448_v11  ;;  %v2247_v49 = vor.u32 %v2246_v39, %v2243_v38  ;;  %v464_v51 = vshll.u32 %v7037_v27, 16  ;;  %v470_v52 = vshll.u32 %v7040_v36, 16 }
  0x48   : > { %v2256_v50 = vrot.slane %v2254_v43, 4  ;;  %v459_v55 = vsel %vm6898_vm4, %v454_v45, %v458_v37  ;;  %v2262_v56 = vrot.slane %v2260_v47, 5  ;;  %v463_v57 = vrot.slane %v461_v48, 4  ;;  %v7072_v37 = vld [vmem:[%s6872_s30 + $0x58] sm:$0xf] }
  0x49   : > { %v474_v58 = vshrl.u32 %v7040_v36, 16  ;;  %v5227_v59 = vcombine.low %v449_v44, %v459_v55  ;;  %v2248_v61 = vrot.slane %v2247_v49, 4  ;;  %v466_v2 = vrot.slane %v464_v51, 5 }
  0x4a   : > { %v2257_v0 = vor.u32 %v2256_v50, %v2252_v42  ;;  %v472_v5 = vrot.slane %v470_v52, 5  ;;  %v480_v7 = vshll.u32 %v303_v26, 16  ;;  %v2265_v9 = vshrl.u32 %v5418_v53, 16  ;;  %v304_v26 = vld [vmem:[%s6872_s30 + $0x5c] sm:$0x1] }
  0x4b   : > { %v476_v6 = vrot.slane %v474_v58, 4  ;;  %6085 = vmatmul.mubr.msk.bf16.gmra.mrb[8].mxu1 %vm750_vm3, %v5227_v59  ;;  %v2253_v17 = vsel %vm6898_vm4, %v2248_v61, %v2252_v42  ;;  %v467_v11 = vor.u32 %v466_v2, %v463_v57  ;;  %v2268_v13 = vshll.u32 %v5418_v53, 16  ;;  %v5421_v53 = vld [vmem:[%s6872_s30 + $0x60] sm:$0xf]  ;;  %v7086_v59 = vld [vmem:[%s6872_s30 + $0x64] sm:$0xf] }
  0x4c   : > { %v2258_v10 = vrot.slane %v2257_v0, 4  ;;  %v482_v18 = vrot.slane %v480_v7, 5  ;;  %v2267_v19 = vrot.slane %v2265_v9, 4  ;;  %v2274_v21 = vshll.u32 %v7056_v4, 16  ;;  %v7093_v9 = vld [vmem:[%s6872_s30 + $0x68] sm:$0x1] }
  0x4d   : > { %v477_v14 = vor.u32 %v476_v6, %v472_v5  ;;  %v468_v29 = vrot.slane %v467_v11, 4  ;;  %v2270_v31 = vrot.slane %v2268_v13, 5  ;;  %v2278_v35 = vshrl.u32 %v7056_v4, 16 }
  0x4e   : > { %v2263_v25 = vsel %vm6898_vm4, %v2258_v10, %v2262_v56  ;;  %v2276_v42 = vrot.slane %v2274_v21, 5  ;;  %v2284_v43 = vshll.u32 %v7062_v12, 16  ;;  %v485_v48 = vshrl.u32 %v7066_v24, 16 }
  0x4f   : > { %v5454_v38 = vcombine.low %v2253_v17, %v2263_v25  ;;  %v478_v39 = vrot.slane %v477_v14, 4  ;;  %v473_v44 = vsel %vm6898_vm4, %v468_v29, %v472_v5  ;;  %v2271_v45 = vor.u32 %v2270_v31, %v2267_v19  ;;  %v7097_v19 = vld [vmem:[%s6872_s30 + $0x60] sm:$0xf] }
  0x50   : > { %v2280_v47 = vrot.slane %v2278_v35, 4  ;;  %v2286_v50 = vrot.slane %v2284_v43, 5  ;;  %v488_v51 = vshll.u32 %v7066_v24, 16  ;;  %v494_v52 = vshll.u32 %v7072_v37, 16  ;;  %v7103_v35 = vld [vmem:[%s6872_s30 + $0x64] sm:$0xf] }
  0x51   : > { %6221 = vmatmul.mubr.msk.bf16.gmra.mrb[8].mxu0 %vm750_vm3, %v5454_v38  ;;  %v483_v49 = vsel %vm6898_vm4, %v478_v39, %v482_v18  ;;  %v2272_v56 = vrot.slane %v2271_v45, 4  ;;  %v487_v58 = vrot.slane %v485_v48, 4  ;;  %v498_v2 = vshrl.u32 %v7072_v37, 16 }
  0x52   : > { %v5228_v55 = vcombine.low %v473_v44, %v483_v49  ;;  %v2281_v57 = vor.u32 %v2280_v47, %v2276_v42  ;;  %v490_v61 = vrot.slane %v488_v51, 5  ;;  %v496_v0 = vrot.slane %v494_v52, 5 }
  0x53   : > { %v504_v5 = vshll.u32 %v304_v26, 16  ;;  %v2277_v6 = vsel %vm6898_vm4, %v2272_v56, %v2276_v42  ;;  %v2289_v17 = vshrl.u32 %v5421_v53, 16  ;;  %v2292_v10 = vshll.u32 %v5421_v53, 16 }
  0x54   : > { %6088 = vmatprep.mubr.msk.bf16.mxu1 %vm750_vm3, %v5228_v55  ;;  %v2282_v7 = vrot.slane %v2281_v57, 4  ;;  %v491_v11 = vor.u32 %v490_v61, %v487_v58  ;;  %v500_v13 = vrot.slane %v498_v2, 4  ;;  %v2298_v18 = vshll.u32 %v7086_v59, 16  ;;  %v5481_v58 = vld [vmem:[%s6872_s30 + $0xc] sm:$0xe] }
  0x55   : > { %v506_v14 = vrot.slane %v504_v5, 5  ;;  %v2291_v25 = vrot.slane %v2289_v17, 4  ;;  %v2294_v29 = vrot.slane %v2292_v10, 5  ;;  %v2302_v31 = vshrl.u32 %v7086_v59, 16 }
  0x56   : > { %v2287_v21 = vsel %vm6898_vm4, %v2282_v7, %v2286_v50  ;;  %v492_v39 = vrot.slane %v491_v11, 4  ;;  %v501_v42 = vor.u32 %v500_v13, %v496_v0  ;;  %v2300_v43 = vrot.slane %v2298_v18, 5  ;;  %v305_v50 = vld [vmem:[%s6872_s30 + $0x68] sm:$0x1] }
  0x57   : > { %v5455_v38 = vcombine.low %v2277_v6, %v2287_v21  ;;  %v2295_v44 = vor.u32 %v2294_v29, %v2291_v25  ;;  %v2304_v45 = vrot.slane %v2302_v31, 4  ;;  %v2308_v47 = vshll.u32 %v7093_v9, 16  ;;  %v7131_v29 = vld [vmem:[%s6872_s30 + $0x70] sm:$0xf] }
  0x58   : > { %v509_v26 = vshrl.u32 %v7097_v19, 16  ;;  %v497_v48 = vsel %vm6898_vm4, %v492_v39, %v496_v0  ;;  %v502_v49 = vrot.slane %v501_v42, 4  ;;  %v512_v51 = vshll.u32 %v7097_v19, 16  ;;  %v7118_v0 = vld [vmem:[%s6872_s30 + $0x6c] sm:$0xf] }
  0x59   : > { %6224 = vmatprep.mubr.msk.bf16.mxu0 %vm750_vm3, %v5455_v38  ;;  %v518_v52 = vshll.u32 %v7103_v35, 16  ;;  %v2296_v53 = vrot.slane %v2295_v44, 4  ;;  %v2305_v55 = vor.u32 %v2304_v45, %v2300_v43  ;;  %v2310_v56 = vrot.slane %v2308_v47, 5 }
  0x5a   : > { %v511_v57 = vrot.slane %v509_v26, 4  ;;  %v507_v61 = vsel %vm6898_vm4, %v502_v49, %v506_v14  ;;  %v514_v2 = vrot.slane %v512_v51, 5  ;;  %v522_v6 = vshrl.u32 %v7103_v35, 16  ;;  %v306_v26 = vld [vmem:[%s6872_s30 + $0x74] sm:$0x1] }
  0x5b   : > { %v520_v5 = vrot.slane %v518_v52, 5  ;;  %v5229_v7 = vcombine.low %v497_v48, %v507_v61  ;;  %v2301_v17 = vsel %vm6898_vm4, %v2296_v53, %v2300_v43  ;;  %v2306_v10 = vrot.slane %v2305_v55, 4  ;;  %v5482_v48 = vld [vmem:[%s6872_s30 + $0x18] sm:$0xe] }
  0x5c   : > { %v528_v11 = vshll.u32 %v305_v50, 16  ;;  %v515_v14 = vor.u32 %v514_v2, %v511_v57  ;;  %v524_v18 = vrot.slane %v522_v6, 4  ;;  %v5497_v21 = vrot.slane %v5481_v58, 9  ;;  %v7150_v53 = vld [vmem:[%s6872_s30 + $0x78] sm:$0xf] }
  0x5d   : > { %v2866_v25 = vrot.slane %v2864_v62, 4  ;;  %6089 = vmatmul.mubr.msk.bf16.gmra.mrb[12].mxu1 %vm750_vm3, %v5229_v7  ;;  %v2311_v31 = vsel %vm6898_vm4, %v2306_v10, %v2310_v56  ;;  %v533_v39 = vshrl.u32 %v7118_v0, 16  ;;  %v536_v42 = vshll.u32 %v7118_v0, 16  ;;  %v307_v57 = vld [vmem:[%s6872_s30 + $0x80] sm:$0x1] }
  0x5e   : > { %v530_v38 = vrot.slane %v528_v11, 5  ;;  %v5456_v43 = vcombine.low %v2301_v17, %v2311_v31  ;;  %v516_v44 = vrot.slane %v515_v14, 4  ;;  %v525_v45 = vor.u32 %v524_v18, %v520_v5  ;;  %v5483_v10 = vld [vmem:[%s6872_s30 + $0x24] sm:$0xe] }
  0x5f   : > { %v2865_v47 = vsel %vm7124_vm7, %v5497_v21, %v2864_v62  ;;  %v2868_v49 = vsel %vm7124_vm7, %v2866_v25, %v2867_v63  ;;  %v535_v50 = vrot.slane %v533_v39, 4  ;;  %v538_v51 = vrot.slane %v536_v42, 5  ;;  %v7176_v39 = vld [vmem:[%s6872_s30 + $0x84] sm:$0xf] }
  0x60   : > { %v542_v52 = vshll.u32 %v7131_v29, 16  ;;  %6225 = vmatmul.mubr.msk.bf16.gmra.mrb[12].mxu0 %vm750_vm3, %v5456_v43  ;;  %v521_v15 = vsel %vm6898_vm4, %v516_v44, %v520_v5  ;;  %v526_v62 = vrot.slane %v525_v45, 4  ;;  %v5514_v55 = vcombine.low %v2865_v47, %v2868_v49  ;;  %v7184_v43 = vld [vmem:[%s6872_s30 + $0x88] sm:$0xf] }
  0x61   : > { %v546_v56 = vshrl.u32 %v7131_v29, 16  ;;  %v539_v63 = vor.u32 %v538_v51, %v535_v50  ;;  %v552_v61 = vshll.u32 %v306_v26, 16  ;;  %v5498_v2 = vrot.slane %v5482_v48, 9 }
  0x62   : > { %v544_v58 = vrot.slane %v542_v52, 5  ;;  %v531_v6 = vsel %vm6898_vm4, %v526_v62, %v530_v38  ;;  %6246 = vmatprep.mubr.msk.bf16.mxu0 %vm750_vm3, %v5514_v55  ;;  %v2875_v5 = vsel %vm7124_vm7, %v6941_v30, %v2874_v28  ;;  %v557_v17 = vshrl.u32 %v7150_v53, 16  ;;  %v308_v52 = vld [vmem:[%s6872_s30 + $0x8c] sm:$0x1] }
  0x63   : > { %v548_v7 = vrot.slane %v546_v56, 4  ;;  %v5230_v11 = vcombine.low %v521_v15, %v531_v6  ;;  %v540_v14 = vrot.slane %v539_v63, 4  ;;  %v554_v18 = vrot.slane %v552_v61, 5 }
  0x64   : > { %v2872_v21 = vsel %vm7124_vm7, %v5498_v2, %v2871_v22  ;;  %v559_v38 = vrot.slane %v557_v17, 4  ;;  %v560_v1 = vshll.u32 %v7150_v53, 16  ;;  %v566_v30 = vshll.u32 %v7157_v16, 16  ;;  %v7189_v22 = vld [vmem:[%s8669_s1 + $0xe] sm:$0x3] }
  0x65   : > { %v549_v25 = vor.u32 %v548_v7, %v544_v58  ;;  %v5515_v31 = vcombine.low %v2872_v21, %v2875_v5  ;;  %6092 = vmatprep.mubr.msk.bf16.mxu1 %vm750_vm3, %v5230_v11  ;;  %v545_v28 = vsel %vm6898_vm4, %v540_v14, %v544_v58  ;;  %v570_v60 = vshrl.u32 %v7157_v16, 16  ;;  %v7208_v5 = vld [vmem:[%s6872_s30 + $0x90] sm:$0xf] }
  0x66   : > { %v576_v42 = vshll.u32 %v307_v57, 16  ;;  %v562_v45 = vrot.slane %v560_v1, 5  ;;  %v5499_v47 = vrot.slane %v5483_v10, 9  ;;  %v2878_v26 = vrot.slane %v6948_v46, 5  ;;  %v5484_v57 = vld [vmem:[%s6872_s30 + $0x30] sm:$0xe] }
  0x67   : > { %v550_v44 = vrot.slane %v549_v25, 4  ;;  %v568_v48 = vrot.slane %v566_v30, 5  ;;  %v572_v49 = vrot.slane %v570_v60, 4  ;;  %v2881_v51 = vrot.slane %v6957_v54, 5  ;;  %v7220_v30 = vld [vmem:[%s6872_s30 + $0x94] sm:$0xf] }
  0x68   : > { %v578_v50 = vrot.slane %v576_v42, 5  ;;  %6247 = vmatmul.mubr.msk.bf16.vlgmr.msra.gmra.mrb[0].mxu0 %vm750_vm3, %v5515_v31  ;;  %v563_v62 = vor.u32 %v562_v45, %v559_v38  ;;  %v2879_v55 = vsel %vm7124_vm7, %v5499_v47, %v2878_v26  ;;  %v2880_v56 = vrot.slane %v2878_v26, 4  ;;  %v309_v60 = vld [vmem:[%s6872_s30 + $0x98] sm:$0x1]  ;;  %v5485_v26 = vld [vmem:[%s6872_s30 + $0x3c] sm:$0xe] }
  0x69   : > { %v555_v15 = vsel %vm6898_vm4, %v550_v44, %v554_v18  ;;  %6279 = vmatpush3.bf16.msra.mxu0 %v6908_v41  ;;  %v573_v46 = vor.u32 %v572_v49, %v568_v48  ;;  %v581_v58 = vshrl.u32 %v7176_v39, 16  ;;  %v584_v54 = vshll.u32 %v7176_v39, 16 }
  0x6a   : > { %v5231_v63 = vcombine.low %v545_v28, %v555_v15  ;;  %v564_v61 = vrot.slane %v563_v62, 4  ;;  %v2882_v2 = vsel %vm7124_vm7, %v2880_v56, %v2881_v51  ;;  %v590_v6 = vshll.u32 %v7184_v43, 16  ;;  %6646 = vmatprep.subr.msk.bf16.mxu0 %vm799_vm0, %v7189_v22 }
  0x6b   : > { %v594_v7 = vshrl.u32 %v7184_v43, 16  ;;  %v574_v41 = vrot.slane %v573_v46, 4  ;;  %v5516_v17 = vcombine.low %v2879_v55, %v2882_v2  ;;  %v583_v10 = vrot.slane %v581_v58, 4  ;;  %v7240_v46 = vld [vmem:[%s6872_s30 + $0xa0] sm:$0xf] }
  0x6c   : > { %6093 = vmatmul.mubr.msk.bf16.gmra.mrb[16].mxu1 %vm750_vm3, %v5231_v63  ;;  %v586_v11 = vrot.slane %v584_v54, 5  ;;  %v569_v14 = vsel %vm6898_vm4, %v564_v61, %v568_v48  ;;  %v592_v18 = vrot.slane %v590_v6, 5  ;;  %v600_v25 = vshll.u32 %v308_v52, 16  ;;  %v7229_v52 = vld [vmem:[%s6872_s30 + $0x9c] sm:$0xf] }
  0x6d   : > { %v596_v21 = vrot.slane %v594_v7, 4  ;;  %v579_v31 = vsel %vm6898_vm4, %v574_v41, %v578_v50  ;;  %6250 = vmatprep.mubr.msk.bf16.mxu0 %vm750_vm3, %v5516_v17  ;;  %v5500_v1 = vrot.slane %v5484_v57, 9  ;;  %v2885_v28 = vrot.slane %v6977_v33, 5 }
  0x6e   : > { %v587_v38 = vor.u32 %v586_v11, %v583_v10  ;;  %v5232_v42 = vcombine.low %v569_v14, %v579_v31  ;;  %v602_v45 = vrot.slane %v600_v25, 5  ;;  %v2888_v47 = vrot.slane %v6985_v40, 5  ;;  %v310_v10 = vld [vmem:[%s6872_s30 + $0xa4] sm:$0x1]  ;;  %v5486_v11 = vld [vmem:[%s6872_s30 + $0x48] sm:$0xe] }
  0x6f   : > { %v597_v44 = vor.u32 %v596_v21, %v592_v18  ;;  %v2886_v49 = vsel %vm7124_vm7, %v5500_v1, %v2885_v28  ;;  %v2887_v50 = vrot.slane %v2885_v28, 4  ;;  %v605_v51 = vshrl.u32 %v7208_v5, 16 }
  0x70   : > { %v588_v48 = vrot.slane %v587_v38, 4  ;;  %6096 = vmatprep.mubr.msk.bf16.mxu1 %vm750_vm3, %v5232_v42  ;;  %v608_v15 = vshll.u32 %v7208_v5, 16  ;;  %v614_v62 = vshll.u32 %v7220_v30, 16  ;;  %v618_v40 = vshrl.u32 %v7220_v30, 16 }
  0x71   : > { %v598_v33 = vrot.slane %v597_v44, 4  ;;  %v2889_v56 = vsel %vm7124_vm7, %v2887_v50, %v2888_v47  ;;  %v607_v57 = vrot.slane %v605_v51, 4  ;;  %v624_v63 = vshll.u32 %v309_v60, 16 }
  0x72   : > { %v593_v55 = vsel %vm6898_vm4, %v588_v48, %v592_v18  ;;  %v5517_v54 = vcombine.low %v2886_v49, %v2889_v56  ;;  %v610_v61 = vrot.slane %v608_v15, 5  ;;  %v616_v2 = vrot.slane %v614_v62, 5  ;;  %v7266_v56 = vld [vmem:[%s6872_s30 + $0xac] sm:$0xf] }
  0x73   : > { %v603_v58 = vsel %vm6898_vm4, %v598_v33, %v602_v45  ;;  %v620_v7 = vrot.slane %v618_v40, 4  ;;  %v626_v41 = vrot.slane %v624_v63, 5  ;;  %v5501_v17 = vrot.slane %v5485_v26, 9  ;;  %v7261_v33 = vld [vmem:[%s6872_s30 + $0xa8] sm:$0xf] }
  0x74   : > { %v5233_v6 = vcombine.low %v593_v55, %v603_v58  ;;  %6251 = vmatmul.mubr.msk.bf16.gmra.mrb[4].mxu0 %vm750_vm3, %v5517_v54  ;;  %v611_v14 = vor.u32 %v610_v61, %v607_v57  ;;  %v2892_v18 = vrot.slane %v7002_v20, 5  ;;  %v2895_v21 = vrot.slane %v7007_v34, 5  ;;  %v311_v61 = vld [vmem:[%s6872_s30 + $0xb0] sm:$0x1] }
  0x75   : > { %v629_v25 = vshrl.u32 %v7229_v52, 16  ;;  %v621_v31 = vor.u32 %v620_v7, %v616_v2  ;;  %v632_v38 = vshll.u32 %v7229_v52, 16  ;;  %v638_v1 = vshll.u32 %v7240_v46, 16 }
  0x76   : > { %6097 = vmatmul.mubr.msk.bf16.gmra.mrb[20].mxu1 %vm750_vm3, %v5233_v6  ;;  %v642_v28 = vshrl.u32 %v7240_v46, 16  ;;  %v612_v60 = vrot.slane %v611_v14, 4  ;;  %v2893_v42 = vsel %vm7124_vm7, %v5501_v17, %v2892_v18  ;;  %v2894_v20 = vrot.slane %v2892_v18, 4  ;;  %v7281_v14 = vld [vmem:[%s6872_s30 + $0xb4] sm:$0xf] }
  0x77   : > { %v631_v44 = vrot.slane %v629_v25, 4  ;;  %v622_v34 = vrot.slane %v621_v31, 4  ;;  %v634_v45 = vrot.slane %v632_v38, 5  ;;  %v640_v47 = vrot.slane %v638_v1, 5 }
  0x78   : > { %v644_v26 = vrot.slane %v642_v28, 4  ;;  %v617_v48 = vsel %vm6898_vm4, %v612_v60, %v616_v2  ;;  %v2896_v49 = vsel %vm7124_vm7, %v2894_v20, %v2895_v21  ;;  %v648_v50 = vshll.u32 %v310_v10, 16  ;;  %v5487_v2 = vld [vmem:[%s6872_s30 + $0x54] sm:$0xe] }
  0x79   : > { %v5502_v51 = vrot.slane %v5486_v11, 9  ;;  %v627_v15 = vsel %vm6898_vm4, %v622_v34, %v626_v41  ;;  %v5518_v62 = vcombine.low %v2893_v42, %v2896_v49  ;;  %v635_v40 = vor.u32 %v634_v45, %v631_v44  ;;  %v7290_v42 = vld [vmem:[%s6872_s30 + $0xb8] sm:$0xf]  ;;  %v312_v49 = vld [vmem:[%s6872_s30 + $0xbc] sm:$0x1] }
  0x7a   : > { %v645_v55 = vor.u32 %v644_v26, %v640_v47  ;;  %v5234_v57 = vcombine.low %v617_v48, %v627_v15  ;;  %v650_v63 = vrot.slane %v648_v50, 5  ;;  %v2899_v58 = vrot.slane %v7025_v8, 5 }
  0x7b   : > { %v2902_v54 = vrot.slane %v7033_v23, 5  ;;  %6254 = vmatprep.mubr.msk.bf16.mxu0 %vm750_vm3, %v5518_v62  ;;  %v636_v6 = vrot.slane %v635_v40, 4  ;;  %v653_v41 = vshrl.u32 %v7261_v33, 16  ;;  %v656_v17 = vshll.u32 %v7261_v33, 16 }
  0x7c   : > { %v646_v7 = vrot.slane %v645_v55, 4  ;;  %6100 = vmatprep.mubr.msk.bf16.mxu1 %vm750_vm3, %v5234_v57  ;;  %v2900_v10 = vsel %vm7124_vm7, %v5502_v51, %v2899_v58  ;;  %v2901_v11 = vrot.slane %v2899_v58, 4  ;;  %v662_v8 = vshll.u32 %v7266_v56, 16  ;;  %v5488_v55 = vld [vmem:[%s6872_s30 + $0x60] sm:$0xe] }
  0x7d   : > { %v666_v23 = vshrl.u32 %v7266_v56, 16  ;;  %v641_v18 = vsel %vm6898_vm4, %v636_v6, %v640_v47  ;;  %v655_v25 = vrot.slane %v653_v41, 4  ;;  %v658_v31 = vrot.slane %v656_v17, 5  ;;  %v5489_v6 = vld [vmem:[%s6872_s30 + $0x6c] sm:$0xe] }
  0x7e   : > { %v651_v21 = vsel %vm6898_vm4, %v646_v7, %v650_v63  ;;  %v2903_v1 = vsel %vm7124_vm7, %v2901_v11, %v2902_v54  ;;  %v664_v28 = vrot.slane %v662_v8, 5  ;;  %v672_v34 = vshll.u32 %v311_v61, 16  ;;  %v5425_v11 = vld [vmem:[%s6872_s30 + $0x70] sm:$0xf]  ;;  %v5426_v8 = vld [vmem:[%s6872_s30 + $0x74] sm:$0x1] }
  0x7f   : > { %v5235_v38 = vcombine.low %v641_v18, %v651_v21  ;;  %v668_v60 = vrot.slane %v666_v23, 4  ;;  %v5519_v20 = vcombine.low %v2900_v10, %v2903_v1  ;;  %v659_v44 = vor.u32 %v658_v31, %v655_v25 }
  0x80   : > { %v5503_v45 = vrot.slane %v5487_v2, 9  ;;  %v2906_v26 = vrot.slane %v7056_v4, 5  ;;  %v2909_v48 = vrot.slane %v7062_v12, 5  ;;  %v677_v50 = vshrl.u32 %v7281_v14, 16 }
  0x81   : > { %6101 = vmatmul.mubr.msk.bf16.gmra.mrb[24].mxu1 %vm750_vm3, %v5235_v38  ;;  %v669_v47 = vor.u32 %v668_v60, %v664_v28  ;;  %6255 = vmatmul.mubr.msk.bf16.gmra.mrb[8].mxu0 %vm750_vm3, %v5519_v20  ;;  %v660_v51 = vrot.slane %v659_v44, 4  ;;  %v674_v15 = vrot.slane %v672_v34, 5  ;;  %v680_v62 = vshll.u32 %v7281_v14, 16 }
  0x82   : > { %v686_v40 = vshll.u32 %v7290_v42, 16  ;;  %v2907_v4 = vsel %vm7124_vm7, %v5503_v45, %v2906_v26  ;;  %v2908_v12 = vrot.slane %v2906_v26, 4  ;;  %v679_v63 = vrot.slane %v677_v50, 4 }
  0x83   : > { %v670_v57 = vrot.slane %v669_v47, 4  ;;  %v665_v58 = vsel %vm6898_vm4, %v660_v51, %v664_v28  ;;  %v682_v54 = vrot.slane %v680_v62, 5  ;;  %v690_v2 = vshrl.u32 %v7290_v42, 16  ;;  %v5490_v47 = vld [vmem:[%s6872_s30 + $0x78] sm:$0xe] }
  0x84   : > { %v688_v61 = vrot.slane %v686_v40, 5  ;;  %v2910_v41 = vsel %vm7124_vm7, %v2908_v12, %v2909_v48  ;;  %v696_v17 = vshll.u32 %v312_v49, 16  ;;  %v5504_v10 = vrot.slane %v5488_v55, 9  ;;  %v6721_v51 = vld [vmem:[%s6872_s30] sm:$0xf] }
  0x85   : > { %v675_v7 = vsel %vm6898_vm4, %v670_v57, %v674_v15  ;;  %v5520_v18 = vcombine.low %v2907_v4, %v2910_v41  ;;  %v683_v21 = vor.u32 %v682_v54, %v679_v63  ;;  %v692_v25 = vrot.slane %v690_v2, 4  ;;  %v7328_v15 = vld [vmem:[%s6872_s30 + $0x4] sm:$0xf]  ;;  %v7332_v40 = vld [vmem:[%s6872_s30 + $0x7c] sm:$0xf] }
  0x86   : > { %v5236_v23 = vcombine.low %v665_v58, %v675_v7  ;;  %v698_v31 = vrot.slane %v696_v17, 5  ;;  %v2913_v38 = vrot.slane %v7086_v59, 5  ;;  %v2916_v1 = vrot.slane %v7093_v9, 5  ;;  %v7335_v55 = vld [vmem:[%s6872_s30 + $0x80] sm:$0x1] }
  0x87   : > { %v5505_v28 = vrot.slane %v5489_v6, 9  ;;  %6258 = vmatprep.mubr.msk.bf16.mxu0 %vm750_vm3, %v5520_v18  ;;  %v684_v60 = vrot.slane %v683_v21, 4  ;;  %v693_v20 = vor.u32 %v692_v25, %v688_v61  ;;  %v2920_v44 = vrot.slane %v5425_v11, 5  ;;  %v5431_v57 = vld [vmem:[%s6872_s30 + $0x88] sm:$0xf] }
  0x88   : > { %6104 = vmatprep.mubr.msk.bf16.mxu1 %vm750_vm3, %v5236_v23  ;;  %v2923_v34 = vrot.slane %v5426_v8, 5  ;;  %v2914_v45 = vsel %vm7124_vm7, %v5504_v10, %v2913_v38  ;;  %v2915_v59 = vrot.slane %v2913_v38, 4  ;;  %v5254_v62 = vcombine.low %v6721_v51, %v7328_v15  ;;  %v5432_v54 = vld [vmem:[%s6872_s30 + $0x8c] sm:$0x1]  ;;  %v5434_v17 = vld [vmem:[%s6872_s30 + $0x94] sm:$0xf] }
  0x89   : > { %v689_v9 = vsel %vm6898_vm4, %v684_v60, %v688_v61  ;;  %v694_v26 = vrot.slane %v693_v20, 4  ;;  %v2921_v48 = vsel %vm7124_vm7, %v5505_v28, %v2920_v44  ;;  %v2922_v49 = vrot.slane %v2920_v44, 4  ;;  %v5491_v61 = vld [vmem:[%s6872_s30 + $0x84] sm:$0xe]  ;;  %v5492_v23 = vld [vmem:[%s6872_s30 + $0x90] sm:$0xe] }
  0x8a   : > { %v2917_v50 = vsel %vm7124_vm7, %v2915_v59, %v2916_v1  ;;  %v5506_v58 = vrot.slane %v5490_v47, 9  ;;  %v2927_v7 = vrot.slane %v7332_v40, 5  ;;  %v2930_v41 = vrot.slane %v7335_v55, 5  ;;  %v5435_v25 = vld [vmem:[%s6872_s30 + $0x98] sm:$0x1] }
  0x8b   : > { %v699_v4 = vsel %vm6898_vm4, %v694_v26, %v698_v31  ;;  %v5521_v12 = vcombine.low %v2914_v45, %v2917_v50  ;;  %v2924_v63 = vsel %vm7124_vm7, %v2922_v49, %v2923_v34  ;;  %v5507_v10 = vrot.slane %v5491_v61, 9  ;;  %v5437_v31 = vld [vmem:[%s6872_s30 + $0xa0] sm:$0xf]  ;;  %v5438_v60 = vld [vmem:[%s6872_s30 + $0xa4] sm:$0x1] }
  0x8c   : > { %v5237_v2 = vcombine.low %v689_v9, %v699_v4  ;;  %v5522_v6 = vcombine.low %v2921_v48, %v2924_v63  ;;  %v2934_v11 = vrot.slane %v5431_v57, 5  ;;  %v2937_v8 = vrot.slane %v5432_v54, 5  ;;  %v5493_v20 = vld [vmem:[%s6872_s30 + $0x9c] sm:$0xe]  ;;  %v6723_v44 = vld [vmem:[%s6872_s30 + $0xc] sm:$0xf] }
  0x8d   : > { %6259 = vmatmul.mubr.msk.bf16.gmra.mrb[12].mxu0 %vm750_vm3, %v5521_v12  ;;  %v2928_v18 = vsel %vm7124_vm7, %v5506_v58, %v2927_v7  ;;  %v2929_v21 = vrot.slane %v2927_v7, 4  ;;  %v2941_v28 = vrot.slane %v5434_v17, 5  ;;  %v7362_v34 = vld [vmem:[%s6872_s30 + $0x10] sm:$0xf]  ;;  %v6725_v47 = vld [vmem:[%s6872_s30 + $0x18] sm:$0xf] }
  0x8e   : > { %6105 = vmatmul.mubr.msk.bf16.gmra.mrb[28].mxu1 %vm750_vm3, %v5237_v2  ;;  %6262 = vmatprep.mubr.msk.bf16.mxu0 %vm750_vm3, %v5522_v6  ;;  %v2935_v38 = vsel %vm7124_vm7, %v5507_v10, %v2934_v11  ;;  %v2936_v1 = vrot.slane %v2934_v11, 4  ;;  %v5255_v45 = vcombine.low %v6723_v44, %v7362_v34  ;;  %v7369_v9 = vld [vmem:[%s6872_s30 + $0x1c] sm:$0xf]  ;;  %v5508_v48 = vrot.slane %v5492_v23, 9  ;;  %v5440_v57 = vld [vmem:[%s6872_s30 + $0xac] sm:$0xf] }
  0x8f   : > { %6110 = vmatprep.mubr.msk.bf16.mxu1 %vm750_vm3, %v5254_v62  ;;  %v2931_v59 = vsel %vm7124_vm7, %v2929_v21, %v2930_v41  ;;  %v5256_v26 = vcombine.low %v6725_v47, %v7369_v9  ;;  %v2943_v51 = vrot.slane %v2941_v28, 4  ;;  %v2944_v62 = vrot.slane %v5435_v25, 5  ;;  %v6727_v54 = vld [vmem:[%s8669_s1 + $0x4] sm:$0x3]  ;;  %v5443_v2 = vld [vmem:[%s6872_s30 + $0xb8] sm:$0xf] }
  0x90   : > { %v5523_v49 = vcombine.low %v2928_v18, %v2931_v59  ;;  %v2938_v50 = vsel %vm7124_vm7, %v2936_v1, %v2937_v8  ;;  %v5509_v12 = vrot.slane %v5493_v20, 9  ;;  %v2948_v63 = vrot.slane %v5437_v31, 5  ;;  %v7384_v7 = vld [vmem:[%s8669_s1 + $0x6] sm:$0x3]  ;;  %v5441_v10 = vld [vmem:[%s6872_s30 + $0xb0] sm:$0x1] }
  0x91   : > { %v5524_v4 = vcombine.low %v2935_v38, %v2938_v50  ;;  %v2951_v58 = vrot.slane %v5438_v60, 5  ;;  %v1518_v61 = vsel %vm799_vm0, %v6727_v54, 0  ;;  %v2942_v41 = vsel %vm7124_vm7, %v5508_v48, %v2941_v28  ;;  %v5494_v11 = vld [vmem:[%s6872_s30 + $0xa8] sm:$0xe]  ;;  %v5444_v25 = vld [vmem:[%s6872_s30 + $0xbc] sm:$0x1] }
  0x92   : > { %v2950_v6 = vrot.slane %v2948_v63, 4  ;;  %v2945_v17 = vsel %vm7124_vm7, %v2943_v51, %v2944_v62  ;;  %v2955_v8 = vrot.slane %v5440_v57, 5  ;;  %v2949_v23 = vsel %vm7124_vm7, %v5509_v12, %v2948_v63  ;;  %v5495_v31 = vld [vmem:[%s6872_s30 + $0xb4] sm:$0xe]  ;;  %v6728_v38 = vld [vmem:[%s6872_s30 + $0x24] sm:$0xf] }
  0x93   : > { %v2962_v21 = vrot.slane %v5443_v2, 5  ;;  %v7405_v1 = vld [vmem:[%s6872_s30 + $0x28] sm:$0xf]  ;;  %v5525_v60 = vcombine.low %v2942_v41, %v2945_v17  ;;  %v5510_v44 = vrot.slane %v5494_v11, 9  ;;  %v2958_v59 = vrot.slane %v5441_v10, 5 }
  0x94   : > { %v2952_v18 = vsel %vm7124_vm7, %v2950_v6, %v2951_v58  ;;  %v5257_v28 = vcombine.low %v6728_v38, %v7405_v1  ;;  %v6730_v47 = vld [vmem:[%s6872_s30 + $0x30] sm:$0xf]  ;;  %v2965_v51 = vrot.slane %v5444_v25, 5  ;;  %v5446_v62 = vld [vmem:[%s6872_s30 + $0xc4] sm:$0xf]  ;;  %v2350_v25 = vshrl.u32 %v7332_v40, 16 }
  0x95   : > { %6263 = vmatmul.mubr.msk.bf16.gmra.mrb[16].mxu0 %vm750_vm3, %v5523_v49  ;;  %v5526_v20 = vcombine.low %v2949_v23, %v2952_v18  ;;  %v5511_v49 = vrot.slane %v5495_v31, 9  ;;  %v2964_v50 = vrot.slane %v2962_v21, 4  ;;  %v2956_v57 = vsel %vm7124_vm7, %v5510_v44, %v2955_v8  ;;  %v5496_v12 = vld [vmem:[%s6872_s30 + $0xc0] sm:$0xe]  ;;  %v6732_v41 = vld [vmem:[%s6872_s30 + $0x3c] sm:$0xf] }
  0x96   : > { %6111 = vmatmul.mubr.msk.bf16.vlgmr.msra.gmra.mrb[0].mxu1 %vm750_vm3, %v5255_v45  ;;  %6266 = vmatprep.mubr.msk.bf16.mxu0 %vm750_vm3, %v5524_v4  ;;  %v2957_v45 = vrot.slane %v2955_v8, 4  ;;  %v2969_v63 = vrot.slane %v5446_v62, 5  ;;  %v5512_v6 = vrot.slane %v5496_v12, 9  ;;  %v7430_v17 = vld [vmem:[%s6872_s30 + $0x40] sm:$0xf]  ;;  %v5260_v18 = vcombine.low %v7037_v27, %v7040_v36  ;;  %v6684_v62 = vld [vmem:[%s6872_s30 + $0x24] sm:$0xff]  }
  0x97   : > { %6143 = vmatpush3.bf16.msra.mxu1 %v1518_v61  ;;  %6114 = vmatprep.mubr.msk.bf16.mxu1 %vm750_vm3, %v5256_v26  ;;  %v7410_v26 = vld [vmem:[%s6872_s30 + $0x34] sm:$0xf]  ;;  %v2963_v58 = vsel %vm7124_vm7, %v5511_v49, %v2962_v21  ;;  %v2966_v54 = vsel %vm7124_vm7, %v2964_v50, %v2965_v51  ;;  %v5447_v61 = vld [vmem:[%s6872_s30 + $0xc8] sm:$0x1]  ;;  %v5259_v10 = vcombine.low %v6732_v41, %v7430_v17  ;;  %v2346_v21 = vshll.u32 %v7332_v40, 16 }
  0x98   : > { %6641 = vmatprep.subr.msk.bf16.mxu1 %vm799_vm0, %v7384_v7  ;;  %v5258_v48 = vcombine.low %v6730_v47, %v7410_v26  ;;  %v2959_v4 = vsel %vm7124_vm7, %v2957_v45, %v2958_v59  ;;  %v5528_v11 = vcombine.low %v2963_v58, %v2966_v54  ;;  %v2971_v8 = vrot.slane %v2969_v63, 4  ;;  %v1256_v45 = vld [vmem:[%s6872_s30] sm:$0xe]  ;;  %v1257_v59 = vld [vmem:[%s6872_s30 + $0xc] sm:$0xe] }
  0x99   : > { %v5527_v2 = vcombine.low %v2956_v57, %v2959_v4  ;;  %v2972_v23 = vrot.slane %v5447_v61, 5  ;;  %v2970_v31 = vsel %vm7124_vm7, %v5512_v6, %v2969_v63  ;;  %v7445_v27 = vrot.slane %v2346_v21, 5  ;;  %v1260_v41 = vld [vmem:[%s6872_s30 + $0x30] sm:$0xe] }
  0x9a   : > { %v2352_v36 = vrot.slane %v2350_v25, 4  ;;  %v5262_v44 = vcombine.low %v7097_v19, %v7103_v35  ;;  %v2356_v47 = vshll.u32 %v7335_v55, 16  ;;  %v5286_v19 = vrot.slane %v1256_v45, 9 }
  0x9b   : > { %v2973_v38 = vsel %vm7124_vm7, %v2971_v8, %v2972_v23  ;;  %8691 = vst [vmem:[#allocation3_spill] sm:$0xff] %v7445_v27  ;;  %v5287_v35 = vrot.slane %v1257_v59, 9  ;;  %v1323_v4 = vrot.slane %v7369_v9, 5  ;;  %v1330_v12 = vrot.slane %v7405_v1, 5  ;;  %v1261_v8 = vld [vmem:[%s6872_s30 + $0x3c] sm:$0xe] }
  0x9c   : > { %v5529_v40 = vcombine.low %v2970_v31, %v2973_v38  ;;  %v2353_v49 = vor.u32 %v2352_v36, %v7445_v27  ;;  %v7465_v51 = vrot.slane %v2356_v47, 5  ;;  %v5263_v58 = vcombine.low %v7118_v0, %v7131_v29  ;;  %v1262_v31 = vld [vmem:[%s6872_s30 + $0x48] sm:$0xe]  ;;  %v6738_v59 = vld [vmem:[%s6872_s30 + $0x38] sm:$0x1] }
  0x9d   : > { %6267 = vmatmul.mubr.msk.bf16.gmra.mrb[20].mxu0 %vm750_vm3, %v5525_v60  ;;  %v5261_v60 = vcombine.low %v7066_v24, %v7072_v37  ;;  %v6735_v24 = vld [vmem:[%s6872_s30 + $0x14] sm:$0x1]  ;;  %v4158_v54 = vsel %vm799_vm0, %v7189_v22, 0  ;;  %v5264_v61 = vcombine.low %v7150_v53, %v7157_v16  ;;  %v5265_v6 = vcombine.low %v7176_v39, %v7184_v43  ;;  %v6736_v16 = vld [vmem:[%s6872_s30 + $0x20] sm:$0x1] }
  0x9e   : > { %6115 = vmatmul.mubr.msk.bf16.gmra.mrb[4].mxu1 %vm750_vm3, %v5257_v28  ;;  %6270 = vmatprep.mubr.msk.bf16.mxu0 %vm750_vm3, %v5526_v20  ;;  %v1316_v28 = vrot.slane %v7362_v34, 5  ;;  %v6682_v20 = vld [vmem:[%s6872_s30 + $0x18] sm:$0xff]   ;;  %v6734_v34 = vld [vmem:[%s6872_s30 + $0x8] sm:$0x1]  ;;  %v1319_v37 = vrot.slane %v6735_v24, 5  ;;  %8692 = vst [vmem:[#allocation4_spill] sm:$0xff] %v7465_v51  ;;  %v5266_v9 = vcombine.low %v7208_v5, %v7220_v30 }
  0x9f   : > { %6118 = vmatprep.mubr.msk.bf16.mxu1 %vm750_vm3, %v5258_v48  ;;  %v1309_v48 = vrot.slane %v7328_v15, 5  ;;  %v1312_v50 = vrot.slane %v6734_v34, 5  ;;  %v1258_v15 = vld [vmem:[%s6872_s30 + $0x18] sm:$0xe]  ;;  %v7470_v63 = vrot.slane %v2353_v49, 4  ;;  %v1326_v22 = vrot.slane %v6736_v16, 5 }
  0xa0   : > { %v1318_v55 = vrot.slane %v1316_v28, 4  ;;  %v5288_v1 = vrot.slane %v1258_v15, 9  ;;  %v7492_v29 = vsel %vm7124_vm7, %v5287_v35, %v1316_v28  ;;  %v1332_v25 = vrot.slane %v1330_v12, 4  ;;  %v5611_v24 = vld [vmem:[%s6872_s30 + $0x18] sm:$0xf] }
  0xa1   : > { %v1311_v57 = vrot.slane %v1309_v48, 4  ;;  %8693 = vst [vmem:[#allocation5_spill] sm:$0xff] %v7470_v63  ;;  %v7488_v0 = vsel %vm7124_vm7, %v5286_v19, %v1309_v48  ;;  %v1340_v47 = vrot.slane %v6738_v59, 5  ;;  %v7529_v49 = vsel %vm799_vm0, %v7384_v7, 0  ;;  %v5612_v7 = vld [vmem:[%s6872_s30 + $0x1c] sm:$0xf] }
  0xa2   : > { %v7496_v53 = vsel %vm7124_vm7, %v1318_v55, %v1319_v37  ;;  %v7533_v34 = vsel %vm7124_vm7, %v5288_v1, %v1323_v4  ;;  %v6688_v37 = vld [vmem:[%s6872_s30 + $0x3c] sm:$0xff]   ;;  %v5291_v35 = vrot.slane %v1261_v8, 9  ;;  %v6739_v55 = vld [vmem:[%s6872_s30 + $0x44] sm:$0x1]  ;;  %v3679_v8 = vshll.u32 %v5611_v24, 16 }
  0xa3   : > { %v7507_v23 = vsel %vm7124_vm7, %v1311_v57, %v1312_v50  ;;  %v1263_v50 = vld [vmem:[%s6872_s30 + $0x54] sm:$0xe]  ;;  %v1347_v15 = vrot.slane %v6739_v55, 5  ;;  %v5615_v39 = vld [vmem:[%s6872_s30 + $0x28] sm:$0xf] }
  0xa4   : > { %v6746_v5 = vld [vmem:[%s6872_s30 + $0x70] sm:$0xf] }
  0xa5   : > { %6271 = vmatmul.mubr.msk.bf16.gmra.mrb[24].mxu0 %vm750_vm3, %v5527_v2  ;;  %v1259_v2 = vld [vmem:[%s6872_s30 + $0x24] sm:$0xe]  ;;  %v1372_v30 = vrot.slane %v6746_v5, 5 }
  0xa6   : > { %6119 = vmatmul.mubr.msk.bf16.gmra.mrb[8].mxu1 %vm750_vm3, %v5259_v10  ;;  %6274 = vmatprep.mubr.msk.bf16.mxu0 %vm750_vm3, %v5528_v11  ;;  %v1337_v10 = vrot.slane %v7410_v26, 5  ;;  %v6686_v11 = vld [vmem:[%s6872_s30 + $0x30] sm:$0xff]   ;;  %v5289_v21 = vrot.slane %v1259_v2, 9 }
  0xa7   : > { %6122 = vmatprep.mubr.msk.bf16.mxu1 %vm750_vm3, %v5260_v18  ;;  %v7503_v26 = vld [vmem:[%s8669_s1 + $0x10] sm:$0x3]  ;;  %v1325_v18 = vrot.slane %v1323_v4, 4  ;;  %v1374_v48 = vrot.slane %v1372_v30, 4 }
  0xa8   : > { %v1339_v45 = vrot.slane %v1337_v10, 4  ;;  %v7540_v19 = vsel %vm7124_vm7, %v5289_v21, %v1330_v12  ;;  %v3689_v21 = vshrl.u32 %v5612_v7, 16 }
  0xa9   : > { %v7549_v4 = vsel %vm7124_vm7, %v1325_v18, %v1326_v22  ;;  %v3676_v22 = vshrl.u32 %v5611_v24, 16  ;;  %v3685_v18 = vshll.u32 %v5612_v7, 16  ;;  %v5614_v24 = vld [vmem:[%s6872_s30 + $0x24] sm:$0xf] }
  0xaa   : > { %v7562_v1 = vsel %vm7124_vm7, %v1339_v45, %v1340_v47 }
  0xab   : > { %v3678_v43 = vrot.slane %v3676_v22, 4  ;;  %v7604_v7 = vrot.slane %v3685_v18, 5  ;;  %v3703_v22 = vshll.u32 %v5614_v24, 16  ;;  %v3713_v18 = vshrl.u32 %v5615_v39, 16 }
  0xad   : > { %6275 = vmatmul.mubr.msk.bf16.gmra.mrb[28].mxu0 %vm750_vm3, %v5529_v40  ;;  %v6737_v40 = vld [vmem:[%s6872_s30 + $0x2c] sm:$0x1]  ;;  %v3705_v27 = vrot.slane %v3703_v22, 5 }
  0xae   : > { %6123 = vmatmul.mubr.msk.bf16.gmra.mrb[12].mxu1 %vm750_vm3, %v5261_v60  ;;  %6280 = vmatprep.mubr.msk.bf16.mxu0 %vm750_vm3, %v6682_v20  ;;  %v1333_v28 = vrot.slane %v6737_v40, 5  ;;  %v1344_v60 = vrot.slane %v7430_v17, 5  ;;  %v6742_v40 = vld [vmem:[%s6872_s30 + $0x50] sm:$0x1]  ;;  %v6747_v17 = vld [vmem:[%s6872_s30 + $0x74] sm:$0x1] }
  0xaf   : > { %6126 = vmatprep.mubr.msk.bf16.mxu1 %vm750_vm3, %v5262_v44  ;;  %v5290_v44 = vrot.slane %v1260_v41, 9  ;;  %v5293_v41 = vrot.slane %v1263_v50, 9  ;;  %v1264_v50 = vld [vmem:[%s6872_s30 + $0x60] sm:$0xe]  ;;  %v5616_v20 = vld [vmem:[%s6872_s30 + $0x2c] sm:$0x1] }
  0xb0   : > { %v1346_v12 = vrot.slane %v1344_v60, 4  ;;  %v7575_v45 = vsel %vm7124_vm7, %v5291_v35, %v1344_v60  ;;  %v6743_v35 = vld [vmem:[%s6872_s30 + $0x5c] sm:$0x1] }
  0xb1   : > { %v7558_v2 = vsel %vm7124_vm7, %v5290_v44, %v1337_v10  ;;  %v1361_v55 = vrot.slane %v6743_v35, 5  ;;  %v1265_v35 = vld [vmem:[%s6872_s30 + $0x6c] sm:$0xe] }
  0xb2   : > { %v7579_v59 = vsel %vm7124_vm7, %v1346_v12, %v1347_v15  ;;  %v6744_v15 = vld [vmem:[%s6872_s30 + $0x64] sm:$0xf]  ;;  %v3691_v12 = vrot.slane %v3689_v21, 4  ;;  %v5295_v5 = vrot.slane %v1265_v35, 9 }
  0xb3   : > { %v6694_v21 = vld [vmem:[%s6872_s30 + $0x60] sm:$0xff]  }
  0xb5   : > { %6281 = vmatmul.mubr.msk.bf16.vlgmr.msra.gmra.mrb[0].mxu0 %vm750_vm3, %v6684_v62  ;;  %v6740_v62 = vld [vmem:[%s6872_s30 + $0x4c] sm:$0xf] }
  0xb6   : > { %6127 = vmatmul.mubr.msk.bf16.gmra.mrb[16].mxu1 %vm750_vm3, %v5263_v58  ;;  %6313 = vmatpush3.bf16.msra.mxu0 %v4158_v54  ;;  %v1351_v57 = vrot.slane %v6740_v62, 5  ;;  %v7553_v58 = vsel %vm7124_vm7, %v1332_v25, %v1333_v28  ;;  %v5292_v54 = vrot.slane %v1262_v31, 9  ;;  %v1354_v28 = vrot.slane %v6742_v40, 5 }
  0xb7   : > { %6130 = vmatprep.mubr.msk.bf16.mxu1 %vm750_vm3, %v5264_v61  ;;  %6284 = vmatprep.mubr.msk.bf16.mxu0 %vm750_vm3, %v6686_v11  ;;  %v6690_v61 = vld [vmem:[%s6872_s30 + $0x48] sm:$0xff]   ;;  %v6741_v11 = vld [vmem:[%s6872_s30 + $0x58] sm:$0xf]  ;;  %v1365_v62 = vrot.slane %v6744_v15, 5  ;;  %v5618_v15 = vld [vmem:[%s6872_s30 + $0x34] sm:$0xf] }
  0xb8   : > { %6647 = vmatprep.subr.msk.bf16.mxu0 %vm799_vm0, %v7503_v26  ;;  %v1358_v16 = vrot.slane %v6741_v11, 5  ;;  %v1353_v31 = vrot.slane %v1351_v57, 4  ;;  %v7583_v47 = vsel %vm7124_vm7, %v5292_v54, %v1351_v57  ;;  %v5613_v57 = vld [vmem:[%s6872_s30 + $0x20] sm:$0x1]  ;;  %v5617_v54 = vld [vmem:[%s6872_s30 + $0x30] sm:$0xf] }
  0xb9   : > { %v5294_v11 = vrot.slane %v1264_v50, 9  ;;  %v3727_v50 = vshll.u32 %v5617_v54, 16  ;;  %v3695_v25 = vshll.u32 %v5613_v57, 16  ;;  %v3733_v36 = vshll.u32 %v5618_v15, 16 }
  0xba   : > { %v7594_v60 = vsel %vm7124_vm7, %v5293_v41, %v1358_v16  ;;  %v7610_v41 = vsel %vm7124_vm7, %v1353_v31, %v1354_v28  ;;  %v1367_v31 = vrot.slane %v1365_v62, 4  ;;  %v3724_v28 = vshrl.u32 %v5617_v54, 16 }
  0xbb   : > { %v7652_v35 = vrot.slane %v3733_v36, 5 }
  0xbd   : > { %6285 = vmatmul.mubr.msk.bf16.gmra.mrb[4].mxu0 %vm750_vm3, %v6688_v37  ;;  %v1360_v37 = vrot.slane %v1358_v16, 4  ;;  %v6745_v16 = vld [vmem:[%s6872_s30 + $0x68] sm:$0x1] }
  0xbe   : > { %6131 = vmatmul.mubr.msk.bf16.gmra.mrb[20].mxu1 %vm750_vm3, %v5265_v6  ;;  %6288 = vmatprep.mubr.msk.bf16.mxu0 %vm750_vm3, %v6690_v61  ;;  %v3681_v6 = vrot.slane %v3679_v8, 5  ;;  %v6692_v61 = vld [vmem:[%s6872_s30 + $0x54] sm:$0xff]   ;;  %v1368_v40 = vrot.slane %v6745_v16, 5  ;;  %v3709_v8 = vshll.u32 %v5615_v39, 16  ;;  %v3692_v16 = vor.u32 %v3691_v12, %v7604_v7 }
  0xbf   : > { %6134 = vmatprep.mubr.msk.bf16.mxu1 %vm750_vm3, %v5266_v9  ;;  %v3700_v9 = vshrl.u32 %v5614_v24, 16  ;;  %v7619_v44 = vsel %vm7124_vm7, %v1360_v37, %v1361_v55  ;;  %v1375_v24 = vrot.slane %v6747_v17, 5  ;;  %v3737_v39 = vshrl.u32 %v5618_v15, 16 }
  0xc0   : > { %v3682_v10 = vor.u32 %v3681_v6, %v3678_v43  ;;  %v7625_v37 = vrot.slane %v3709_v8, 5  ;;  %v3715_v55 = vrot.slane %v3713_v18, 4  ;;  %v8694_v43 = vcombine.low %v7229_v52, %v7240_v46  ;;  %v6748_v8 = vld [vmem:[%s6872_s30 + $0x7c] sm:$0xf]  ;;  %v7661_v18 = vld [vmem:[%s6872_s30 + $0x38] sm:$0x1] }
  0xc1   : > { %v3702_v38 = vrot.slane %v3700_v9, 4  ;;  %v7634_v17 = vsel %vm7124_vm7, %v5294_v11, %v1365_v62  ;;  %v7638_v57 = vsel %vm7124_vm7, %v1367_v31, %v1368_v40  ;;  %v3726_v6 = vrot.slane %v3724_v28, 4  ;;  %8696 = vst [vmem:[#allocation6_spill] sm:$0xff] %v7661_v18 }
  0xc2   : > { %v3729_v12 = vrot.slane %v3727_v50, 5  ;;  %v8695_v52 = vcombine.low %v7261_v33, %v7266_v56  ;;  %v3683_v46 = vrot.slane %v3682_v10, 4  ;;  %v3693_v54 = vrot.slane %v3692_v16, 4  ;;  %v6696_v33 = vld [vmem:[%s6872_s30 + $0x6c] sm:$0xff]   ;;  %v1267_v16 = vld [vmem:[%s6872_s30 + $0x84] sm:$0xe] }
  0xc3   : > { %v3719_v62 = vshll.u32 %v5616_v20, 16  ;;  %v7646_v11 = vsel %vm7124_vm7, %v5295_v5, %v1372_v30  ;;  %v7650_v40 = vsel %vm7124_vm7, %v1374_v48, %v1375_v24  ;;  %v3739_v9 = vrot.slane %v3737_v39, 4  ;;  %v6697_v48 = vld [vmem:[%s6872_s30 + $0x78] sm:$0xff]  }
  0xc4   : > { %v3706_v10 = vor.u32 %v3705_v27, %v3702_v38  ;;  %v3716_v20 = vor.u32 %v3715_v55, %v7625_v37  ;;  %v1379_v30 = vrot.slane %v6748_v8, 5  ;;  %v3730_v38 = vor.u32 %v3729_v12, %v3726_v6  ;;  %v5620_v5 = vld [vmem:[%s6872_s30 + $0x3c] sm:$0xf] }
  0xc5   : > { %6289 = vmatmul.mubr.msk.bf16.gmra.mrb[8].mxu0 %vm750_vm3, %v6692_v61  ;;  %v3697_v61 = vrot.slane %v3695_v25, 5  ;;  %v1266_v25 = vld [vmem:[%s6872_s30 + $0x78] sm:$0xe]  ;;  %v7677_v50 = vrot.slane %v3719_v62, 5  ;;  %v3740_v39 = vor.u32 %v3739_v9, %v7652_v35  ;;  %v3743_v55 = vshll.u32 %v7661_v18, 16 }
  0xc6   : > { %6135 = vmatmul.mubr.msk.bf16.gmra.mrb[24].mxu1 %vm750_vm3, %v8694_v43  ;;  %6292 = vmatprep.mubr.msk.bf16.mxu0 %vm750_vm3, %v6694_v21  ;;  %v3688_v21 = vsel %vm6898_vm4, %v3683_v46, %v7604_v7  ;;  %v5296_v24 = vrot.slane %v1266_v25, 9  ;;  %v6749_v43 = vld [vmem:[%s6872_s30 + $0x88] sm:$0xf]  ;;  %v7685_v7 = vld [vmem:[%s6872_s30 + $0x40] sm:$0xf]  ;;  %v3707_v12 = vrot.slane %v3706_v10, 4  ;;  %v8698_v62 = vcombine.low %v7281_v14, %v7290_v42 }
  0xc7   : > { %6138 = vmatprep.mubr.msk.bf16.mxu1 %vm750_vm3, %v8695_v52  ;;  %v3698_v31 = vsel %vm6898_vm4, %v3693_v54, %v3697_v61  ;;  %v1386_v6 = vrot.slane %v6749_v43, 5  ;;  %8697 = vst [vmem:[#allocation7_spill] sm:$0xff] %v7685_v7  ;;  %v3717_v52 = vrot.slane %v3716_v20, 4  ;;  %v1381_v46 = vrot.slane %v1379_v30, 4  ;;  %v6750_v54 = vld [vmem:[%s6872_s30 + $0x80] sm:$0x1] }
  0xc8   : > { %v1382_v61 = vrot.slane %v6750_v54, 5  ;;  %v3731_v9 = vrot.slane %v3730_v38, 4  ;;  %v5297_v25 = vrot.slane %v1267_v16, 9  ;;  %v3748_v8 = vshrl.u32 %v5620_v5, 16  ;;  %v6698_v10 = vld [vmem:[%s6872_s30 + $0x84] sm:$0xff]  }
  0xc9   : > { %v3751_v43 = vshll.u32 %v5620_v5, 16  ;;  %v7699_v20 = vcombine.low %v3688_v21, %v3698_v31  ;;  %v7703_v14 = vsel %vm799_vm0, %v7503_v26, 0  ;;  %v3761_v38 = vshrl.u32 %v7685_v7, 16  ;;  %v6699_v21 = vld [vmem:[%s6872_s30 + $0x90] sm:$0xff]   ;;  %v6755_v18 = vld [vmem:[%s6872_s30 + $0xa0] sm:$0xf] }
  0xca   : > { %v3741_v16 = vrot.slane %v3740_v39, 4  ;;  %v3745_v5 = vrot.slane %v3743_v55, 5  ;;  %v1388_v54 = vrot.slane %v1386_v6, 4  ;;  %v3712_v31 = vsel %vm6898_vm4, %v3707_v12, %v7625_v37 }
  0xcb   : > { %v3722_v26 = vsel %vm6898_vm4, %v3717_v52, %v7677_v50  ;;  %v7718_v39 = vsel %vm7124_vm7, %v5296_v24, %v1379_v30  ;;  %v7722_v55 = vsel %vm7124_vm7, %v1381_v46, %v1382_v61  ;;  %v3736_v37 = vsel %vm6898_vm4, %v3731_v9, %v7652_v35  ;;  %v5626_v30 = vld [vmem:[%s6872_s30 + $0x54] sm:$0xf]  ;;  %v7739_v24 = vld [vmem:[%s6872_s30 + $0x58] sm:$0xf]  ;;  %v7744_v61 = vld [vmem:[%s6872_s30 + $0x90] sm:$0xe] }
  0xcc   : > { %v7735_v12 = vsel %vm7124_vm7, %v5297_v25, %v1386_v6  ;;  %v3750_v50 = vrot.slane %v3748_v8, 4  ;;  %v3753_v52 = vrot.slane %v3751_v43, 5  ;;  %v3763_v46 = vrot.slane %v3761_v38, 4 }
  0xcd   : > { %6293 = vmatmul.mubr.msk.bf16.gmra.mrb[12].mxu0 %vm750_vm3, %v6696_v33  ;;  %v8699_v33 = vcombine.low %v7488_v0, %v7507_v23  ;;  %v6751_v0 = vld [vmem:[%s6872_s30 + $0x8c] sm:$0x1]  ;;  %v3746_v36 = vsel %vm6898_vm4, %v3741_v16, %v3745_v5  ;;  %v3796_v25 = vshrl.u32 %v5626_v30, 16  ;;  %v3799_v8 = vshll.u32 %v5626_v30, 16 }
  0xce   : > { %6139 = vmatmul.mubr.msk.bf16.gmra.mrb[28].mxu1 %vm750_vm3, %v8698_v62  ;;  %6296 = vmatprep.mubr.msk.bf16.mxu0 %vm750_vm3, %v6697_v48  ;;  %v3757_v48 = vshll.u32 %v7685_v7, 16  ;;  %v1389_v23 = vrot.slane %v6751_v0, 5  ;;  %v5623_v62 = vld [vmem:[%s6872_s30 + $0x48] sm:$0xf]  ;;  %v7728_v0 = vld [vmem:[%s6872_s30 + $0x4c] sm:$0xf]  ;;  %v8701_v38 = vcombine.low %v7492_v29, %v7496_v53  ;;  %v7762_v16 = vcombine.low %v3712_v31, %v3722_v26 }
  0xcf   : > { %6144 = vmatprep.mubr.msk.bf16.mxu1 %vm750_vm3, %v8699_v33  ;;  %v7725_v33 = vld [vmem:[%s6872_s30 + $0x44] sm:$0x1]  ;;  %v3772_v27 = vshrl.u32 %v5623_v62, 16  ;;  %v3775_v15 = vshll.u32 %v5623_v62, 16  ;;  %v3781_v6 = vshll.u32 %v7728_v0, 16  ;;  %v3785_v9 = vshrl.u32 %v7728_v0, 16 }
  0xd0   : > { %8700 = vst [vmem:[#allocation8_spill] sm:$0xff] %v7725_v33  ;;  %v7741_v28 = vrot.slane %v3757_v48, 5  ;;  %v7750_v35 = vsel %vm7124_vm7, %v1388_v54, %v1389_v23  ;;  %v3805_v43 = vshll.u32 %v7739_v24, 16  ;;  %v3809_v48 = vshrl.u32 %v7739_v24, 16  ;;  %v5629_v31 = vld [vmem:[%s6872_s30 + $0x60] sm:$0xf] }
  0xd1   : > { %v3767_v5 = vshll.u32 %v7725_v33, 16  ;;  %v5298_v54 = vrot.slane %v7744_v61, 9  ;;  %v8702_v23 = vcombine.low %v7533_v34, %v7549_v4  ;;  %v7773_v29 = vcombine.low %v3736_v37, %v3746_v36  ;;  %v6700_v26 = vld [vmem:[%s6872_s30 + $0x9c] sm:$0xff]   ;;  %v6701_v30 = vld [vmem:[%s6872_s30 + $0xa8] sm:$0xff]  }
  0xd2   : > { %v3754_v53 = vor.u32 %v3753_v52, %v3750_v50  ;;  %v3774_v62 = vrot.slane %v3772_v27, 4  ;;  %v7784_v34 = vrot.slane %v3781_v6, 5  ;;  %v3787_v4 = vrot.slane %v3785_v9, 4  ;;  %v6752_v36 = vld [vmem:[%s8669_s1 + $0x8] sm:$0x3] }
  0xd3   : > { %v3798_v27 = vrot.slane %v3796_v25, 4  ;;  %v3801_v37 = vrot.slane %v3799_v8, 5  ;;  %v7793_v50 = vrot.slane %v3805_v43, 5  ;;  %v3811_v52 = vrot.slane %v3809_v48, 4  ;;  %v6753_v6 = vld [vmem:[%s6872_s30 + $0x94] sm:$0xf] }
  0xd4   : > { %v7799_v9 = vld [vmem:[%s6872_s30 + $0x64] sm:$0xf]  ;;  %v3820_v61 = vshrl.u32 %v5629_v31, 16  ;;  %v7801_v22 = vrot.slane %v3754_v53, 4  ;;  %v1400_v25 = vrot.slane %v6755_v18, 5  ;;  %v3788_v43 = vor.u32 %v3787_v4, %v7784_v34 }
  0xd5   : > { %6297 = vmatmul.mubr.msk.bf16.gmra.mrb[16].mxu0 %vm750_vm3, %v6698_v10  ;;  %8703 = vst [vmem:[#allocation9_spill] sm:$0xff] %v7799_v9  ;;  %v3823_v10 = vshll.u32 %v5629_v31, 16  ;;  %v3802_v31 = vor.u32 %v3801_v37, %v3798_v27  ;;  %v3812_v53 = vor.u32 %v3811_v52, %v7793_v50  ;;  %v8704_v18 = vcombine.low %v7540_v19, %v7553_v58  ;;  %v6702_v37 = vld [vmem:[%s6872_s30 + $0xb4] sm:$0xff]  }
  0xd6   : > { %6145 = vmatmul.mubr.msk.bf16.vlgmr.msra.gmra.mrb[0].mxu1 %vm750_vm3, %v8701_v38  ;;  %6300 = vmatprep.mubr.msk.bf16.mxu0 %vm750_vm3, %v6699_v21  ;;  %v3777_v21 = vrot.slane %v3775_v15, 5  ;;  %v7782_v38 = vld [vmem:[%s6872_s30 + $0x50] sm:$0x1]  ;;  %v7791_v15 = vld [vmem:[%s6872_s30 + $0x5c] sm:$0x1]  ;;  %v8705_v27 = vcombine.low %v7558_v2, %v7562_v1  ;;  %v1402_v52 = vrot.slane %v1400_v25, 4 }
  0xd7   : > { %6177 = vmatpush3.bf16.msra.mxu1 %v7529_v49  ;;  %6148 = vmatprep.mubr.msk.bf16.mxu1 %vm750_vm3, %v8702_v23  ;;  %v3764_v49 = vor.u32 %v3763_v46, %v7741_v28  ;;  %v7795_v46 = vrot.slane %v3767_v5, 5  ;;  %v1393_v23 = vrot.slane %v6753_v6, 5  ;;  %v3791_v48 = vshll.u32 %v7782_v38, 16  ;;  %v1269_v5 = vld [vmem:[%s6872_s30 + $0x9c] sm:$0xe] }
  0xd8   : > { %6643 = vmatprep.subr.msk.bf16.mxu1 %vm799_vm0, %v6752_v36  ;;  %v6754_v36 = vld [vmem:[%s6872_s30 + $0x98] sm:$0x1]  ;;  %v3778_v7 = vor.u32 %v3777_v21, %v3774_v62  ;;  %v3815_v6 = vshll.u32 %v7791_v15, 16  ;;  %v3833_v62 = vshrl.u32 %v7799_v9, 16  ;;  %v3825_v4 = vrot.slane %v3823_v10, 5 }
  0xd9   : > { %v1396_v33 = vrot.slane %v6754_v36, 5  ;;  %v3765_v8 = vrot.slane %v3764_v49, 4  ;;  %v3829_v36 = vshll.u32 %v7799_v9, 16  ;;  %v7820_v21 = vsel %vm7124_vm7, %v5298_v54, %v1393_v23  ;;  %v7831_v2 = vld [vmem:[%s6872_s30 + $0x68] sm:$0x1] }
  0xda   : > { %v3822_v49 = vrot.slane %v3820_v61, 4  ;;  %v3779_v19 = vrot.slane %v3778_v7, 4  ;;  %v5299_v58 = vrot.slane %v1269_v5, 9  ;;  %v3789_v3 = vrot.slane %v3788_v43, 4  ;;  %8706 = vst [vmem:[#allocation10_spill] sm:$0xff] %v7831_v2  ;;  %v6703_v5 = vld [vmem:[%s6872_s30 + $0xc0] sm:$0xff]  }
  0xdb   : > { %v3793_v54 = vrot.slane %v3791_v48, 5  ;;  %v3817_v63 = vrot.slane %v3815_v6, 5  ;;  %v1407_v61 = vrot.slane %v7266_v56, 5  ;;  %v3803_v10 = vrot.slane %v3802_v31, 4  ;;  %v1271_v31 = vld [vmem:[%s6872_s30 + $0xb4] sm:$0xe] }
  0xdc   : > { %v3813_v51 = vrot.slane %v3812_v53, 4  ;;  %v7833_v1 = vrot.slane %v3829_v36, 5  ;;  %v3835_v7 = vrot.slane %v3833_v62, 4  ;;  %v3760_v43 = vsel %vm6898_vm4, %v7801_v22, %v7741_v28  ;;  %v6757_v62 = vld [vmem:[%s6872_s30 + $0xb0] sm:$0x1] }
  0xdd   : > { %6301 = vmatmul.mubr.msk.bf16.gmra.mrb[20].mxu0 %vm750_vm3, %v6700_v26  ;;  %v1395_v26 = vrot.slane %v1393_v23, 4  ;;  %v1270_v23 = vld [vmem:[%s6872_s30 + $0xa8] sm:$0xe]  ;;  %v3770_v48 = vsel %vm6898_vm4, %v3765_v8, %v7795_v46  ;;  %v3826_v6 = vor.u32 %v3825_v4, %v3822_v49  ;;  %v3784_v53 = vsel %vm6898_vm4, %v3779_v19, %v7784_v34  ;;  %v5632_v46 = vld [vmem:[%s6872_s30 + $0x6c] sm:$0xf] }
  0xde   : > { %6149 = vmatmul.mubr.msk.bf16.gmra.mrb[4].mxu1 %vm750_vm3, %v8704_v18  ;;  %6304 = vmatprep.mubr.msk.bf16.mxu0 %vm750_vm3, %v6701_v30  ;;  %v6756_v18 = vld [vmem:[%s6872_s30 + $0xa4] sm:$0x1]  ;;  %v7853_v36 = vsel %vm7124_vm7, %v5299_v58, %v1400_v25  ;;  %v5300_v28 = vrot.slane %v1270_v23, 9  ;;  %v1409_v8 = vrot.slane %v1407_v61, 4  ;;  %v3839_v49 = vshll.u32 %v7831_v2, 16 }
  0xdf   : > { %6152 = vmatprep.mubr.msk.bf16.mxu1 %vm750_vm3, %v8705_v27  ;;  %v1403_v30 = vrot.slane %v6756_v18, 5  ;;  %v7845_v56 = vsel %vm7124_vm7, %v1395_v26, %v1396_v33  ;;  %v3794_v33 = vsel %vm6898_vm4, %v3789_v3, %v3793_v54  ;;  %v1410_v26 = vrot.slane %v6757_v62, 5  ;;  %v5635_v18 = vld [vmem:[%s6872_s30 + $0x78] sm:$0xf]  ;;  %v7908_v54 = vld [vmem:[%s6872_s30 + $0xbc] sm:$0x1] }
  0xe0   : > { %v3808_v34 = vsel %vm6898_vm4, %v3803_v10, %v7793_v50  ;;  %v3818_v25 = vsel %vm6898_vm4, %v3813_v51, %v3817_v63  ;;  %v3836_v4 = vor.u32 %v3835_v7, %v7833_v1  ;;  %v5301_v27 = vrot.slane %v1271_v31, 9  ;;  %v7882_v51 = vld [vmem:[%s6872_s30 + $0x70] sm:$0xf]  ;;  %v7912_v10 = vld [vmem:[%s6872_s30 + $0x7c] sm:$0xf] }
  0xe1   : > { %v7857_v22 = vsel %vm7124_vm7, %v1402_v52, %v1403_v30  ;;  %v8708_v3 = vcombine.low %v7575_v45, %v7579_v59  ;;  %v7878_v19 = vrot.slane %v3826_v6, 4  ;;  %v1414_v50 = vrot.slane %v7290_v42, 5  ;;  %8709 = vst [vmem:[#allocation12_spill] sm:$0xff] %v7882_v51  ;;  %8711 = vst [vmem:[#allocation13_spill] sm:$0xff] %v7912_v10  ;;  %v5638_v7 = vld [vmem:[%s6872_s30 + $0x84] sm:$0xf] }
  0xe2   : > { %8707 = vst [vmem:[#allocation11_spill] sm:$0xff] %v7857_v22  ;;  %v3844_v63 = vshrl.u32 %v5632_v46, 16  ;;  %v8710_v45 = vcombine.low %v7583_v47, %v7610_v41  ;;  %v7890_v58 = vcombine.low %v3784_v53, %v3794_v33  ;;  %v7896_v42 = vsel %vm7124_vm7, %v5300_v28, %v1407_v61  ;;  %v6704_v61 = vld [vmem:[%s6872_s30 + $0xcc] sm:$0xff]   ;;  %v7924_v31 = vld [vmem:[%s6872_s30 + $0x88] sm:$0xf] }
  0xe3   : > { %v7899_v30 = vcombine.low %v3808_v34, %v3818_v25  ;;  %v7903_v47 = vsel %vm7124_vm7, %v1409_v8, %v1410_v26  ;;  %v7905_v41 = vrot.slane %v3839_v49, 5  ;;  %v3853_v6 = vshll.u32 %v7882_v51, 16  ;;  %8712 = vst [vmem:[#allocation14_spill] sm:$0xff] %v7924_v31  ;;  %v5641_v62 = vld [vmem:[%s6872_s30 + $0x90] sm:$0xf] }
  0xe4   : > { %v7930_v28 = vrot.slane %v1414_v50, 4  ;;  %v7932_v33 = vrot.slane %v3844_v63, 4  ;;  %v3857_v8 = vshrl.u32 %v7882_v51, 16  ;;  %v3868_v26 = vshrl.u32 %v5635_v18, 16  ;;  %v7939_v25 = vld [vmem:[%s6872_s30 + $0x94] sm:$0xf] }
  0xe5   : > { %6305 = vmatmul.mubr.msk.bf16.gmra.mrb[24].mxu0 %vm750_vm3, %v6702_v37  ;;  %v7876_v37 = vcombine.low %v3760_v43, %v3770_v48  ;;  %v7920_v43 = vsel %vm7124_vm7, %v5301_v27, %v1414_v50  ;;  %v3847_v48 = vshll.u32 %v5632_v46, 16  ;;  %v3871_v49 = vshll.u32 %v5635_v18, 16  ;;  %8713 = vst [vmem:[#allocation15_spill] sm:$0xff] %v7939_v25  ;;  %v7977_v2 = vld [vmem:[%s6872_s30 + $0x8c] sm:$0x1] }
  0xe6   : > { %6153 = vmatmul.mubr.msk.bf16.gmra.mrb[8].mxu1 %vm750_vm3, %v8708_v3  ;;  %6308 = vmatprep.mubr.msk.bf16.mxu0 %vm750_vm3, %v6703_v5  ;;  %v7916_v5 = vrot.slane %v3836_v4, 4  ;;  %v3877_v46 = vshll.u32 %v7912_v10, 16  ;;  %v3881_v34 = vshrl.u32 %v7912_v10, 16  ;;  %v3892_v4 = vshrl.u32 %v5638_v7, 16 }
  0xe7   : > { %6156 = vmatprep.mubr.msk.bf16.mxu1 %vm750_vm3, %v8710_v45  ;;  %v3895_v27 = vshll.u32 %v5638_v7, 16  ;;  %v3901_v3 = vshll.u32 %v7924_v31, 16  ;;  %v3905_v50 = vshrl.u32 %v7924_v31, 16  ;;  %v7949_v45 = vld [vmem:[%s6872_s30 + $0x74] sm:$0x1]  ;;  %v3849_v18 = vrot.slane %v3847_v48, 5 }
  0xe8   : > { %v3916_v52 = vshrl.u32 %v5641_v62, 16  ;;  %v3919_v53 = vshll.u32 %v5641_v62, 16  ;;  %v8714_v7 = vcombine.low %v7594_v60, %v7619_v44  ;;  %v3859_v59 = vrot.slane %v3857_v8, 4  ;;  %v5644_v48 = vld [vmem:[%s6872_s30 + $0x9c] sm:$0xf] }
  0xe9   : > { %v3925_v63 = vshll.u32 %v7939_v25, 16  ;;  %v3929_v23 = vshrl.u32 %v7939_v25, 16  ;;  %v8715_v62 = vcombine.low %v7634_v17, %v7638_v57  ;;  %v7967_v44 = vld [vmem:[%s6872_s30 + $0x80] sm:$0x1]  ;;  %v3870_v60 = vrot.slane %v3868_v26, 4 }
  0xea   : > { %8716 = vst [vmem:[#allocation16_spill] sm:$0xff] %v7967_v44  ;;  %v3894_v31 = vrot.slane %v3892_v4, 4  ;;  %v3897_v8 = vrot.slane %v3895_v27, 5  ;;  %v7971_v10 = vrot.slane %v3901_v3, 5  ;;  %v3907_v51 = vrot.slane %v3905_v50, 4 }
  0xeb   : > { %v7974_v25 = vld [vmem:[%s6872_s30 + $0xa0] sm:$0xf]  ;;  %v3918_v17 = vrot.slane %v3916_v52, 4  ;;  %v3921_v57 = vrot.slane %v3919_v53, 5  ;;  %v3943_v9 = vshll.u32 %v5644_v48, 16  ;;  %v3850_v26 = vor.u32 %v3849_v18, %v7932_v33 }
  0xec   : > { %v3887_v27 = vshll.u32 %v7967_v44, 16  ;;  %v7986_v3 = vld [vmem:[%s6872_s30 + $0x98] sm:$0x1]  ;;  %v3949_v50 = vshll.u32 %v7974_v25, 16  ;;  %v3953_v52 = vshrl.u32 %v7974_v25, 16  ;;  %v3898_v22 = vor.u32 %v3897_v8, %v3894_v31 }
  0xed   : > { %6309 = vmatmul.mubr.msk.bf16.gmra.mrb[28].mxu0 %vm750_vm3, %v6704_v61  ;;  %v7957_v61 = vrot.slane %v3853_v6, 5  ;;  %v3883_v6 = vrot.slane %v3881_v34, 4  ;;  %v3931_v34 = vrot.slane %v3929_v23, 4  ;;  %v3911_v33 = vshll.u32 %v7977_v2, 16 }
  0xee   : > { %6157 = vmatmul.mubr.msk.bf16.gmra.mrb[12].mxu1 %vm750_vm3, %v8714_v7  ;;  %6314 = vmatprep.mubr.msk.bf16.mxu0 %vm750_vm3, %v7699_v20  ;;  %v3873_v7 = vrot.slane %v3871_v49, 5  ;;  %v7969_v20 = vrot.slane %v3877_v46, 5  ;;  %v3863_v49 = vshll.u32 %v7949_v45, 16  ;;  %v7981_v46 = vrot.slane %v3925_v63, 5 }
  0xef   : > { %6160 = vmatprep.mubr.msk.bf16.mxu1 %vm750_vm3, %v8715_v62  ;;  %v3940_v62 = vshrl.u32 %v5644_v48, 16  ;;  %v3860_v4 = vor.u32 %v3859_v59, %v7957_v61  ;;  %v3908_v23 = vor.u32 %v3907_v51, %v7971_v10  ;;  %v3922_v59 = vor.u32 %v3921_v57, %v3918_v17  ;;  %v8019_v57 = vld [vmem:[%s6872_s30 + $0xa4] sm:$0x1] }
  0xf0   : > { %v3874_v53 = vor.u32 %v3873_v7, %v3870_v60  ;;  %v3884_v48 = vor.u32 %v3883_v6, %v7969_v20  ;;  %v3945_v18 = vrot.slane %v3943_v9, 5  ;;  %v8717_v44 = vcombine.low %v7646_v11, %v7650_v40 }
  0xf1   : > { %v3942_v63 = vrot.slane %v3940_v62, 4  ;;  %v8718_v31 = vrot.slane %v7908_v54, 5  ;;  %v3865_v51 = vrot.slane %v3863_v49, 5  ;;  %v3932_v60 = vor.u32 %v3931_v34, %v7981_v46  ;;  %v8022_v34 = vld [vmem:[%s6872_s30 + $0xac] sm:$0xf] }
  0xf2   : > { %v3935_v9 = vshll.u32 %v7986_v3, 16  ;;  %v8719_v11 = vcombine.low %v7718_v39, %v7722_v55  ;;  %v3851_v40 = vrot.slane %v3850_v26, 4  ;;  %v8015_v54 = vrot.slane %v3949_v50, 5 }
  0xf3   : > { %v3875_v7 = vrot.slane %v3874_v53, 4  ;;  %v3885_v6 = vrot.slane %v3884_v48, 4  ;;  %v3889_v8 = vrot.slane %v3887_v27, 5  ;;  %v3913_v17 = vrot.slane %v3911_v33, 5  ;;  %v8032_v48 = vld [vmem:[%s6872_s30 + $0xb0] sm:$0x1] }
  0xf4   : > { %v3899_v39 = vrot.slane %v3898_v22, 4  ;;  %v3909_v55 = vrot.slane %v3908_v23, 4  ;;  %v3923_v62 = vrot.slane %v3922_v59, 4  ;;  %v3946_v49 = vor.u32 %v3945_v18, %v3942_v63 }
  0xf5   : > { %6315 = vmatmul.mubr.msk.bf16.vlgmr.msra.gmra.mrb[0].mxu0 %vm750_vm3, %v7762_v16  ;;  %v8005_v16 = vsel %vm7124_vm7, %v7930_v28, %v8718_v31  ;;  %v3955_v28 = vrot.slane %v3953_v52, 4  ;;  %v3937_v26 = vrot.slane %v3935_v9, 5  ;;  %v3856_v52 = vsel %vm6898_vm4, %v3851_v40, %v7957_v61 }
  0xf6   : > { %6161 = vmatmul.mubr.msk.bf16.gmra.mrb[16].mxu1 %vm750_vm3, %v8717_v44  ;;  %6347 = vmatpush3.bf16.msra.mxu0 %v7703_v14  ;;  %v3861_v14 = vrot.slane %v3860_v4, 4  ;;  %v5647_v44 = vld [vmem:[%s6872_s30 + $0xa8] sm:$0xf]  ;;  %v3959_v22 = vshll.u32 %v8019_v57, 16  ;;  %v3880_v33 = vsel %vm6898_vm4, %v3875_v7, %v7969_v20  ;;  %v3890_v23 = vsel %vm6898_vm4, %v3885_v6, %v3889_v8 }
  0xf7   : > { %6164 = vmatprep.mubr.msk.bf16.mxu1 %vm750_vm3, %v8719_v11  ;;  %6318 = vmatprep.mubr.msk.bf16.mxu0 %vm750_vm3, %v7773_v29  ;;  %v3933_v29 = vrot.slane %v3932_v60, 4  ;;  %v3964_v4 = vshrl.u32 %v5647_v44, 16  ;;  %v3967_v50 = vshll.u32 %v5647_v44, 16  ;;  %v3956_v53 = vor.u32 %v3955_v28, %v8015_v54  ;;  %v5696_v11 = vld [vmem:[%s6872_s30 + $0x48] sm:$0xe] }
  0xf8   : > { %v3866_v27 = vsel %vm6898_vm4, %v3861_v14, %v3865_v51  ;;  %v3973_v59 = vshll.u32 %v8022_v34, 16  ;;  %v3977_v61 = vshrl.u32 %v8022_v34, 16  ;;  %v3904_v63 = vsel %vm6898_vm4, %v3899_v39, %v7971_v10  ;;  %v8097_v39 = vld [vmem:[%s6872_s30 + $0xb8] sm:$0xf] }
  0xf9   : > { %v3914_v18 = vsel %vm6898_vm4, %v3909_v55, %v3913_v17  ;;  %v3928_v20 = vsel %vm6898_vm4, %v3923_v62, %v7981_v46  ;;  %v3947_v31 = vrot.slane %v3946_v49, 4  ;;  %v8720_v51 = vcombine.low %v7735_v12, %v7750_v35 }
  0xfa   : > { %v3966_v10 = vrot.slane %v3964_v4, 4  ;;  %v3969_v60 = vrot.slane %v3967_v50, 5  ;;  %v3983_v9 = vshll.u32 %v8032_v48, 16  ;;  %v8721_v46 = vcombine.low %v7820_v21, %v7845_v56  ;;  %v5650_v21 = vld [vmem:[%s6872_s30 + $0xb4] sm:$0xf] }
  0xfb   : > { %v5317_v12 = vcombine.low %v7896_v42, %v7903_v47  ;;  %v8722_v35 = vsel %vm6898_vm4, %v7916_v5, %v7905_v41  ;;  %v3957_v14 = vrot.slane %v3956_v53, 4  ;;  %v3961_v28 = vrot.slane %v3959_v22, 5  ;;  %v5698_v4 = vld [vmem:[%s6872_s30 + $0x60] sm:$0xe]  ;;  %v5699_v53 = vld [vmem:[%s6872_s30 + $0x6c] sm:$0xe] }
  0xfc   : > { %v5318_v56 = vcombine.low %v7920_v43, %v8005_v16  ;;  %v8080_v44 = vcombine.low %v3856_v52, %v3866_v27  ;;  %v8082_v42 = vrot.slane %v3973_v59, 5  ;;  %v3979_v47 = vrot.slane %v3977_v61, 4  ;;  %v8731_v16 = vld [vmem:[#allocation4_spill] sm:$0xff] }
  0xfd   : > { %6319 = vmatmul.mubr.msk.bf16.gmra.mrb[4].mxu0 %vm750_vm3, %v7876_v37  ;;  %v3938_v37 = vsel %vm6898_vm4, %v3933_v29, %v3937_v26  ;;  %v8084_v41 = vcombine.low %v3880_v33, %v3890_v23  ;;  %v8086_v5 = vcombine.low %v3904_v63, %v3914_v18  ;;  %v3952_v6 = vsel %vm6898_vm4, %v3947_v31, %v8015_v54  ;;  %v8724_v23 = vld [vmem:[#allocation11_spill] sm:$0xff]  ;;  %v5653_v63 = vld [vmem:[%s6872_s30 + $0xc0] sm:$0xf]  ;;  %v8726_v18 = vld [vmem:[#allocation9_spill] sm:$0xff] }
  0xfe   : > { %6165 = vmatmul.mubr.msk.bf16.gmra.mrb[20].mxu1 %vm750_vm3, %v8720_v51  ;;  %6322 = vmatprep.mubr.msk.bf16.mxu0 %vm750_vm3, %v7890_v58  ;;  %v8723_v58 = vsel %vm6898_vm4, %v7878_v19, %v7833_v1  ;;  %v8088_v7 = vcombine.low %v3928_v20, %v3938_v37  ;;  %v5712_v1 = vrot.slane %v5696_v11, 9  ;;  %v5697_v19 = vld [vmem:[%s6872_s30 + $0x54] sm:$0xe]  ;;  %v3970_v8 = vor.u32 %v3969_v60, %v3966_v10  ;;  %v8727_v31 = vld [vmem:[#allocation10_spill] sm:$0xff] }
  0xff   : > { %6168 = vmatprep.mubr.msk.bf16.mxu1 %vm750_vm3, %v8721_v46  ;;  %v5666_v40 = vcombine.low %v8723_v58, %v8722_v35  ;;  %v8094_v17 = vrot.slane %v3983_v9, 5  ;;  %v3988_v55 = vshrl.u32 %v5650_v21, 16  ;;  %v3962_v62 = vsel %vm6898_vm4, %v3957_v14, %v3961_v28  ;;  %v8728_v9 = vld [vmem:[#allocation12_spill] sm:$0xff]  ;;  %v8146_v35 = vld [vmem:[%s6872_s30 + $0xbc] sm:$0x1] }
 0x100   : > { %v3991_v49 = vshll.u32 %v5650_v21, 16  ;;  %v4447_v29 = vrot.slane %v7728_v0, 5  ;;  %v4450_v26 = vrot.slane %v7782_v38, 5  ;;  %v3980_v50 = vor.u32 %v3979_v47, %v8082_v42  ;;  %v8149_v58 = vld [vmem:[%s6872_s30 + $0xc4] sm:$0xf] }
 0x101   : > { %v5713_v52 = vrot.slane %v5697_v19, 9  ;;  %v4454_v54 = vrot.slane %v7739_v24, 5  ;;  %v4457_v27 = vrot.slane %v7791_v15, 5  ;;  %v3997_v22 = vshll.u32 %v8097_v39, 16  ;;  %v5700_v19 = vld [vmem:[%s6872_s30 + $0x78] sm:$0xe] }
 0x102   : > { %v4001_v33 = vshrl.u32 %v8097_v39, 16  ;;  %v8114_v0 = vsel %vm7124_vm7, %v5712_v1, %v4447_v29  ;;  %v4449_v38 = vrot.slane %v4447_v29, 4  ;;  %v8725_v59 = vcombine.low %v7853_v36, %v8724_v23  ;;  %v8729_v23 = vld [vmem:[#allocation13_spill] sm:$0xff] }
 0x103   : > { %v8121_v24 = vcombine.low %v3952_v6, %v3962_v62  ;;  %v8125_v15 = vsel %vm7124_vm7, %v5713_v52, %v4454_v54  ;;  %v5714_v61 = vrot.slane %v5698_v4, 9  ;;  %v4461_v20 = vrot.slane %v8726_v18, 5  ;;  %v6705_v6 = vld [vmem:[%s6872_s30 + $0xc] sm:$0xff]  }
 0x104   : > { %v8131_v36 = vsel %vm7124_vm7, %v4449_v38, %v4450_v26  ;;  %v4464_v51 = vrot.slane %v8727_v31, 5  ;;  %v5715_v37 = vrot.slane %v5699_v53, 9  ;;  %v4468_v11 = vrot.slane %v8728_v9, 5 }
 0x105   : > { %6323 = vmatmul.mubr.msk.bf16.gmra.mrb[8].mxu0 %vm750_vm3, %v7899_v30  ;;  %v4456_v30 = vrot.slane %v4454_v54, 4  ;;  %v5729_v10 = vcombine.low %v8114_v0, %v8131_v36  ;;  %v4471_v46 = vrot.slane %v7949_v45, 5  ;;  %v8155_v14 = vsel %vm7124_vm7, %v5714_v61, %v4461_v20 }
 0x106   : > { %6169 = vmatmul.mubr.msk.bf16.gmra.mrb[24].mxu1 %vm750_vm3, %v8725_v59  ;;  %6326 = vmatprep.mubr.msk.bf16.mxu0 %vm750_vm3, %v5666_v40  ;;  %v4463_v28 = vrot.slane %v4461_v20, 4  ;;  %v8157_v21 = vrot.slane %v3988_v55, 4  ;;  %v4012_v47 = vshrl.u32 %v5653_v63, 16  ;;  %v8161_v45 = vsel %vm7124_vm7, %v5715_v37, %v4468_v11  ;;  %v5427_v55 = vld [vmem:[%s6872_s30 + $0x78] sm:$0xf]  ;;  %v8730_v59 = vld [vmem:[#allocation16_spill] sm:$0xff] }
 0x107   : > { %6172 = vmatprep.mubr.msk.bf16.mxu1 %vm750_vm3, %v5317_v12  ;;  %v8139_v60 = vsel %vm7124_vm7, %v4456_v30, %v4457_v27  ;;  %v8143_v12 = vrot.slane %v3970_v8, 4  ;;  %v4470_v1 = vrot.slane %v4468_v11, 4  ;;  %v8165_v8 = vrot.slane %v3980_v50, 4 }
 0x108   : > { %v5730_v40 = vcombine.low %v8125_v15, %v8139_v60  ;;  %v8167_v62 = vrot.slane %v3991_v49, 5  ;;  %v4015_v29 = vshll.u32 %v5653_v63, 16  ;;  %v8171_v26 = vsel %vm7124_vm7, %v4463_v28, %v4464_v51  ;;  %v8733_v28 = vld [vmem:[#allocation14_spill] sm:$0xff] }
 0x109   : > { %v8174_v4 = vrot.slane %v3997_v22, 5  ;;  %v8176_v52 = vrot.slane %v4001_v33, 4  ;;  %v5731_v54 = vcombine.low %v8155_v14, %v8171_v26  ;;  %v8182_v27 = vsel %vm7124_vm7, %v4470_v1, %v4471_v46  ;;  %v5701_v33 = vld [vmem:[%s6872_s30 + $0x84] sm:$0xe]  ;;  %v6706_v1 = vld [vmem:[%s6872_s30 + $0x18] sm:$0xff]  }
 0x10a   : > { %v4007_v49 = vshll.u32 %v8146_v35, 16  ;;  %v4021_v50 = vshll.u32 %v8149_v58, 16  ;;  %v5732_v53 = vcombine.low %v8161_v45, %v8182_v27  ;;  %v5716_v22 = vrot.slane %v5700_v19, 9  ;;  %v6768_v60 = vld [vmem:[%s6872_s30 + $0xa0] sm:$0xf] }
 0x10b   : > { %v4014_v38 = vrot.slane %v4012_v47, 4  ;;  %v4478_v30 = vrot.slane %v8730_v59, 5  ;;  %v2337_v61 = vshrl.u32 %v5427_v55, 16  ;;  %v4017_v63 = vrot.slane %v4015_v29, 5  ;;  %v5656_v29 = vld [vmem:[%s6872_s30 + $0xcc] sm:$0xf] }
 0x10c   : > { %v4025_v18 = vshrl.u32 %v8149_v58, 16  ;;  %v2340_v43 = vshll.u32 %v5427_v55, 16  ;;  %v5717_v37 = vrot.slane %v5701_v33, 9  ;;  %v3976_v9 = vsel %vm6898_vm4, %v8143_v12, %v8082_v42  ;;  %v8225_v55 = vld [vmem:[%s6872_s30 + $0xd0] sm:$0xf] }
 0x10d   : > { %6327 = vmatmul.mubr.msk.bf16.gmra.mrb[12].mxu0 %vm750_vm3, %v8080_v44  ;;  %v4475_v44 = vrot.slane %v8729_v23, 5  ;;  %v2339_v51 = vrot.slane %v2337_v61, 4  ;;  %v3994_v11 = vor.u32 %v8167_v62, %v8157_v21  ;;  %v4482_v47 = vrot.slane %v8733_v28, 5  ;;  %v6707_v21 = vld [vmem:[%s6872_s30 + $0x24] sm:$0xff]   ;;  %v6772_v27 = vld [vmem:[%s6872_s30 + $0xac] sm:$0xf] }
 0x10e   : > { %6173 = vmatmul.mubr.msk.bf16.gmra.mrb[28].mxu1 %vm750_vm3, %v5318_v56  ;;  %6330 = vmatprep.mubr.msk.bf16.mxu0 %vm750_vm3, %v8084_v41  ;;  %v8732_v56 = vld [vmem:[#allocation5_spill] sm:$0xff]  ;;  %v2342_v46 = vrot.slane %v2340_v43, 5  ;;  %v3986_v19 = vsel %vm6898_vm4, %v8165_v8, %v8094_v17  ;;  %v4485_v12 = vrot.slane %v7977_v2, 5  ;;  %v8233_v62 = vrot.slane %v4021_v50, 5  ;;  %v5702_v8 = vld [vmem:[%s6872_s30 + $0x90] sm:$0xe] }
 0x10f   : > { %6178 = vmatprep.mubr.msk.bf16.mxu1 %vm750_vm3, %v6705_v6  ;;  %v2359_v41 = vsel %vm6898_vm4, %v8732_v56, %v8731_v16  ;;  %v8207_v20 = vsel %vm7124_vm7, %v5716_v22, %v4475_v44  ;;  %v4477_v31 = vrot.slane %v4475_v44, 4  ;;  %v4004_v6 = vor.u32 %v8176_v52, %v8174_v4  ;;  %v8239_v52 = vld [vmem:[%s6872_s30 + $0xc8] sm:$0x1]  ;;  %v8735_v16 = vld [vmem:[#allocation2_spill] sm:$0xff] }
 0x110   : > { %v4027_v22 = vrot.slane %v4025_v18, 4  ;;  %v2343_v17 = vor.u32 %v2342_v46, %v2339_v51  ;;  %v4009_v23 = vrot.slane %v4007_v49, 5  ;;  %v4018_v44 = vor.u32 %v4017_v63, %v4014_v38  ;;  %v8736_v51 = vld [vmem:[#allocation3_spill] sm:$0xff] }
 0x111   : > { %v8229_v42 = vsel %vm7124_vm7, %v4477_v31, %v4478_v30  ;;  %v8243_v59 = vsel %vm7124_vm7, %v5717_v37, %v4482_v47  ;;  %v4484_v30 = vrot.slane %v4482_v47, 4  ;;  %v4036_v2 = vshrl.u32 %v5656_v29, 16 }
 0x112   : > { %v5733_v33 = vcombine.low %v8207_v20, %v8229_v42  ;;  %v4039_v50 = vshll.u32 %v5656_v29, 16  ;;  %v4045_v61 = vshll.u32 %v8225_v55, 16  ;;  %v2344_v18 = vrot.slane %v2343_v17, 4  ;;  %v6708_v29 = vld [vmem:[%s6872_s30 + $0x30] sm:$0xff]  }
 0x113   : > { %v4049_v49 = vshrl.u32 %v8225_v55, 16  ;;  %v8254_v38 = vsel %vm7124_vm7, %v4484_v30, %v4485_v12  ;;  %v5718_v63 = vrot.slane %v5702_v8, 9  ;;  %v4028_v56 = vor.u32 %v4027_v22, %v8233_v62 }
 0x114   : > { %v4031_v31 = vshll.u32 %v8239_v52, 16  ;;  %v5734_v37 = vcombine.low %v8243_v59, %v8254_v38  ;;  %v5672_v46 = vcombine.low %v3976_v9, %v3986_v19  ;;  %v3995_v28 = vrot.slane %v3994_v11, 4  ;;  %v5703_v11 = vld [vmem:[%s6872_s30 + $0x9c] sm:$0xe] }
 0x115   : > { %6331 = vmatmul.mubr.msk.bf16.gmra.mrb[16].mxu0 %vm750_vm3, %v8086_v5  ;;  %v8734_v5 = vld [vmem:[#allocation15_spill] sm:$0xff]  ;;  %v4005_v47 = vrot.slane %v4004_v6, 4  ;;  %v4019_v12 = vrot.slane %v4018_v44, 4  ;;  %v4492_v8 = vrot.slane %v7986_v3, 5  ;;  %v4038_v30 = vrot.slane %v4036_v2, 4  ;;  %v6709_v19 = vld [vmem:[%s6872_s30 + $0x3c] sm:$0xff]  }
 0x116   : > { %6179 = vmatmul.mubr.msk.bf16.vlgmr.msra.gmra.mrb[0].mxu1 %vm750_vm3, %v6706_v1  ;;  %6334 = vmatprep.mubr.msk.bf16.mxu0 %vm750_vm3, %v8088_v7  ;;  %v4489_v43 = vrot.slane %v8734_v5, 5  ;;  %v2349_v7 = vsel %vm6898_vm4, %v2344_v18, %v8736_v51  ;;  %v4041_v18 = vrot.slane %v4039_v50, 5  ;;  %v8277_v5 = vrot.slane %v4045_v61, 5 }
 0x117   : > { %6381 = vmatpush3.bf16.msra.mxu1 %v8735_v16  ;;  %6182 = vmatprep.mubr.msk.bf16.mxu1 %vm750_vm3, %v6707_v21  ;;  %v8266_v1 = vcombine.low %v2349_v7, %v2359_v41  ;;  %v8270_v21 = vld [vmem:[%s6872_s30 + $0xd4] sm:$0x1]  ;;  %v4051_v9 = vrot.slane %v4049_v49, 4  ;;  %v4029_v41 = vrot.slane %v4028_v56, 4  ;;  %v4033_v6 = vrot.slane %v4031_v31, 5 }
 0x118   : > { %v8274_v22 = vsel %vm7124_vm7, %v5718_v63, %v4489_v43  ;;  %v4491_v17 = vrot.slane %v4489_v43, 4  ;;  %v4000_v63 = vsel %vm6898_vm4, %v3995_v28, %v8174_v4  ;;  %v4010_v2 = vsel %vm6898_vm4, %v4005_v47, %v4009_v23  ;;  %v6759_v16 = vld [vmem:[%s6872_s30 + $0x1c] sm:$0xf]  ;;  %v5704_v28 = vld [vmem:[%s6872_s30 + $0xa8] sm:$0xe] }
 0x119   : > { %v4055_v50 = vshll.u32 %v8270_v21, 16  ;;  %v5719_v61 = vrot.slane %v5703_v11, 9  ;;  %v4496_v49 = vrot.slane %v7974_v25, 5  ;;  %v4024_v4 = vsel %vm6898_vm4, %v4019_v12, %v8233_v62  ;;  %v5692_v62 = vld [vmem:[%s6872_s30 + $0x18] sm:$0xe]  ;;  %v6710_v47 = vld [vmem:[%s6872_s30 + $0x48] sm:$0xff]  }
 0x11a   : > { %v8283_v44 = vsel %vm7124_vm7, %v4491_v17, %v4492_v8  ;;  %v4052_v43 = vor.u32 %v4051_v9, %v8277_v5  ;;  %v4499_v23 = vrot.slane %v8019_v57, 5  ;;  %v4034_v25 = vsel %vm6898_vm4, %v4029_v41, %v4033_v6  ;;  %v6760_v11 = vld [vmem:[%s6872_s30 + $0x20] sm:$0x1] }
 0x11b   : > { %v5735_v3 = vcombine.low %v8274_v22, %v8283_v44  ;;  %v4419_v56 = vrot.slane %v6759_v16, 5  ;;  %v8309_v31 = vsel %vm7124_vm7, %v5719_v61, %v4496_v49  ;;  %v4498_v51 = vrot.slane %v4496_v49, 4  ;;  %v5705_v49 = vld [vmem:[%s6872_s30 + $0xb4] sm:$0xe] }
 0x11c   : > { %v5673_v7 = vcombine.low %v4000_v63, %v4010_v2  ;;  %v4053_v17 = vrot.slane %v4052_v43, 4  ;;  %v5720_v41 = vrot.slane %v5704_v28, 9  ;;  %v4503_v6 = vrot.slane %v8022_v34, 5  ;;  %v5693_v2 = vld [vmem:[%s6872_s30 + $0x24] sm:$0xe] }
 0x11d   : > { %6335 = vmatmul.mubr.msk.bf16.gmra.mrb[20].mxu0 %vm750_vm3, %v8121_v24  ;;  %v4042_v24 = vor.u32 %v4041_v18, %v4038_v30  ;;  %v8314_v57 = vsel %vm7124_vm7, %v4498_v51, %v4499_v23  ;;  %v6711_v30 = vld [vmem:[%s6872_s30 + $0x54] sm:$0xff]   ;;  %v5708_v18 = vrot.slane %v5692_v62, 9  ;;  %v4421_v9 = vrot.slane %v4419_v56, 4  ;;  %v6763_v28 = vld [vmem:[%s6872_s30 + $0x2c] sm:$0x1] }
 0x11e   : > { %6183 = vmatmul.mubr.msk.bf16.gmra.mrb[4].mxu1 %vm750_vm3, %v6708_v29  ;;  %6338 = vmatprep.mubr.msk.bf16.mxu0 %vm750_vm3, %v5672_v46  ;;  %v4057_v46 = vrot.slane %v4055_v50, 5  ;;  %v5674_v29 = vcombine.low %v4024_v4, %v4034_v25  ;;  %v5736_v8 = vcombine.low %v8309_v31, %v8314_v57  ;;  %v4506_v63 = vrot.slane %v8032_v48, 5  ;;  %v6761_v50 = vld [vmem:[%s6872_s30 + $0x28] sm:$0xf]  ;;  %v5694_v25 = vld [vmem:[%s6872_s30 + $0x30] sm:$0xe] }
 0x11f   : > { %6186 = vmatprep.mubr.msk.bf16.mxu1 %vm750_vm3, %v6709_v19  ;;  %v4043_v12 = vrot.slane %v4042_v24, 4  ;;  %v4422_v19 = vrot.slane %v6760_v11, 5  ;;  %v4426_v61 = vrot.slane %v6761_v50, 5  ;;  %v8337_v48 = vsel %vm7124_vm7, %v5720_v41, %v4503_v6  ;;  %v6713_v11 = vld [vmem:[%s6872_s30 + $0x6c] sm:$0xff]   ;;  %v8737_v41 = vld [vmem:[#allocation6_spill] sm:$0xff] }
 0x120   : > { %v4058_v34 = vsel %vm6898_vm4, %v4053_v17, %v4057_v46  ;;  %v4505_v24 = vrot.slane %v4503_v6, 4  ;;  %v4420_v43 = vsel %vm7124_vm7, %v5708_v18, %v4419_v56  ;;  %v5709_v51 = vrot.slane %v5693_v2, 9  ;;  %v5706_v50 = vld [vmem:[%s6872_s30 + $0xc0] sm:$0xe]  ;;  %v6777_v31 = vld [vmem:[%s6872_s30 + $0xc8] sm:$0x1] }
 0x121   : > { %v4048_v4 = vsel %vm6898_vm4, %v4043_v12, %v8277_v5  ;;  %v4423_v23 = vsel %vm7124_vm7, %v4421_v9, %v4422_v19  ;;  %v6762_v5 = vld [vmem:[%s6872_s30 + $0x34] sm:$0xf]  ;;  %v6712_v12 = vld [vmem:[%s6872_s30 + $0x60] sm:$0xff]   ;;  %v5710_v18 = vrot.slane %v5694_v25, 9  ;;  %v4513_v9 = vrot.slane %v8146_v35, 5 }
 0x122   : > { %v4433_v16 = vrot.slane %v6762_v5, 5  ;;  %v8348_v62 = vsel %vm7124_vm7, %v4505_v24, %v4506_v63  ;;  %v5675_v46 = vcombine.low %v4048_v4, %v4058_v34  ;;  %v5725_v17 = vcombine.low %v4420_v43, %v4423_v23  ;;  %v5695_v24 = vld [vmem:[%s6872_s30 + $0x3c] sm:$0xe] }
 0x123   : > { %v5737_v56 = vcombine.low %v8337_v48, %v8348_v62  ;;  %v4436_v6 = vrot.slane %v8737_v41, 5  ;;  %v4427_v35 = vsel %vm7124_vm7, %v5709_v51, %v4426_v61  ;;  %v5722_v5 = vrot.slane %v5706_v50, 9 }
 0x124   : > { %v4435_v19 = vrot.slane %v4433_v16, 4  ;;  %v4434_v23 = vsel %vm7124_vm7, %v5710_v18, %v4433_v16  ;;  %v4520_v51 = vrot.slane %v8239_v52, 5  ;;  %v2500_v57 = vshll.u32 %v6777_v31, 16 }
 0x125   : > { %6339 = vmatmul.mubr.msk.bf16.gmra.mrb[24].mxu0 %vm750_vm3, %v5673_v7  ;;  %v5721_v7 = vrot.slane %v5705_v49, 9 }
 0x126   : > { %6187 = vmatmul.mubr.msk.bf16.gmra.mrb[8].mxu1 %vm750_vm3, %v6710_v47  ;;  %6342 = vmatprep.mubr.msk.bf16.mxu0 %vm750_vm3, %v5674_v29  ;;  %v4429_v47 = vrot.slane %v6763_v28, 5  ;;  %v4510_v29 = vrot.slane %v8097_v39, 5  ;;  %v8738_v39 = vld [vmem:[#allocation7_spill] sm:$0xff]  ;;  %v4437_v25 = vsel %vm7124_vm7, %v4435_v19, %v4436_v6  ;;  %v5711_v28 = vrot.slane %v5695_v24, 9 }
 0x127   : > { %6190 = vmatprep.mubr.msk.bf16.mxu1 %vm750_vm3, %v6711_v30  ;;  %v4428_v30 = vrot.slane %v4426_v61, 4  ;;  %v4440_v49 = vrot.slane %v8738_v39, 5  ;;  %v4517_v61 = vrot.slane %v8149_v58, 5  ;;  %v6764_v39 = vld [vmem:[%s6872_s30 + $0x70] sm:$0xf]  ;;  %v4524_v24 = vrot.slane %v8225_v55, 5 }
 0x128   : > { %v8360_v63 = vsel %vm7124_vm7, %v5721_v7, %v4510_v29  ;;  %v4512_v2 = vrot.slane %v4510_v29, 4  ;;  %v5424_v7 = vld [vmem:[%s6872_s30 + $0x6c] sm:$0xf]  ;;  %v8739_v29 = vld [vmem:[#allocation8_spill] sm:$0xff] }
 0x129   : > { %v4430_v34 = vsel %vm7124_vm7, %v4428_v30, %v4429_v47  ;;  %v4442_v47 = vrot.slane %v4440_v49, 4  ;;  %v6714_v30 = vld [vmem:[%s6872_s30 + $0x78] sm:$0xff]   ;;  %v8391_v16 = vsel %vm7124_vm7, %v5722_v5, %v4517_v61  ;;  %v4519_v18 = vrot.slane %v4517_v61, 4 }
 0x12a   : > { %v8367_v4 = vsel %vm7124_vm7, %v4512_v2, %v4513_v9  ;;  %v5727_v9 = vcombine.low %v4434_v23, %v4437_v25  ;;  %v2313_v19 = vshrl.u32 %v5424_v7, 16  ;;  %v2316_v41 = vshll.u32 %v5424_v7, 16 }
 0x12b   : > { %v5738_v43 = vcombine.low %v8360_v63, %v8367_v4  ;;  %v8396_v58 = vsel %vm7124_vm7, %v4519_v18, %v4520_v51  ;;  %v4441_v6 = vsel %vm7124_vm7, %v5711_v28, %v4440_v49  ;;  %v4527_v49 = vrot.slane %v8270_v21, 5  ;;  %v6716_v51 = vld [vmem:[%s6872_s30 + $0x90] sm:$0xff]   ;;  %v6717_v21 = vld [vmem:[%s6872_s30 + $0x9c] sm:$0xff]  }
 0x12c   : > { %v5739_v50 = vcombine.low %v8391_v16, %v8396_v58  ;;  %v2315_v23 = vrot.slane %v2313_v19, 4  ;;  %v2318_v25 = vrot.slane %v2316_v41, 5  ;;  %v4526_v7 = vrot.slane %v4524_v24, 4 }
 0x12d   : > { %6343 = vmatmul.mubr.msk.bf16.gmra.mrb[28].mxu0 %vm750_vm3, %v5675_v46  ;;  %v5726_v46 = vcombine.low %v4427_v35, %v4430_v34  ;;  %v2322_v35 = vshll.u32 %v6764_v39, 16  ;;  %v2326_v34 = vshrl.u32 %v6764_v39, 16 }
 0x12e   : > { %6191 = vmatmul.mubr.msk.bf16.gmra.mrb[12].mxu1 %vm750_vm3, %v6712_v12  ;;  %6348 = vmatprep.mubr.msk.bf16.mxu0 %vm750_vm3, %v5725_v17  ;;  %v4443_v12 = vrot.slane %v8739_v29, 5  ;;  %v5707_v17 = vld [vmem:[%s6872_s30 + $0xcc] sm:$0xe]  ;;  %v8418_v55 = vsel %vm7124_vm7, %v4526_v7, %v4527_v49 }
 0x12f   : > { %6194 = vmatprep.mubr.msk.bf16.mxu1 %vm750_vm3, %v6713_v11  ;;  %v6715_v11 = vld [vmem:[%s6872_s30 + $0x84] sm:$0xff]   ;;  %v5723_v52 = vrot.slane %v5707_v17, 9  ;;  %v2328_v28 = vrot.slane %v2326_v34, 4  ;;  %v6765_v17 = vld [vmem:[%s6872_s30 + $0x74] sm:$0x1] }
 0x130   : > { %v4444_v2 = vsel %vm7124_vm7, %v4442_v47, %v4443_v12  ;;  %v5430_v47 = vld [vmem:[%s6872_s30 + $0x84] sm:$0xf]  ;;  %v2319_v12 = vor.u32 %v2318_v25, %v2315_v23  ;;  %v6719_v34 = vld [vmem:[%s6872_s30 + $0xb4] sm:$0xff]  }
 0x131   : > { %v8413_v5 = vsel %vm7124_vm7, %v5723_v52, %v4524_v24  ;;  %v5728_v61 = vcombine.low %v4441_v6, %v4444_v2  ;;  %v2364_v18 = vshll.u32 %v5430_v47, 16  ;;  %v5433_v6 = vld [vmem:[%s6872_s30 + $0x90] sm:$0xf]  ;;  %v6718_v2 = vld [vmem:[%s6872_s30 + $0xa8] sm:$0xff]  }
 0x132   : > { %v5740_v29 = vcombine.low %v8413_v5, %v8418_v55  ;;  %v2320_v52 = vrot.slane %v2319_v12, 4  ;;  %v2385_v23 = vshrl.u32 %v5433_v6, 16  ;;  %v2388_v25 = vshll.u32 %v5433_v6, 16 }
 0x133   : > { %v2418_v12 = vshll.u32 %v6768_v60, 16 }
 0x134   : > { %v2390_v14 = vrot.slane %v2388_v25, 5  ;;  %v6771_v25 = vld [vmem:[%s6872_s30 + $0xa4] sm:$0x1] }
 0x135   : > { %6349 = vmatmul.mubr.msk.bf16.vlgmr.msra.gmra.mrb[0].mxu0 %vm750_vm3, %v5726_v46  ;;  %v2324_v46 = vrot.slane %v2322_v35, 5  ;;  %v5436_v35 = vld [vmem:[%s6872_s30 + $0x9c] sm:$0xf]  ;;  %v8460_v6 = vrot.slane %v2418_v12, 5 }
 0x136   : > { %6195 = vmatmul.mubr.msk.bf16.gmra.mrb[16].mxu1 %vm750_vm3, %v6714_v30  ;;  %6352 = vmatprep.mubr.msk.bf16.mxu0 %vm750_vm3, %v5727_v9  ;;  %v2332_v30 = vshll.u32 %v6765_v17, 16  ;;  %v2361_v9 = vshrl.u32 %v5430_v47, 16  ;;  %v2412_v47 = vshll.u32 %v5436_v35, 16  ;;  %v6769_v17 = vld [vmem:[%s6872_s30 + $0x8c] sm:$0x1] }
 0x137   : > { %6198 = vmatprep.mubr.msk.bf16.mxu1 %vm750_vm3, %v6715_v11  ;;  %v2329_v13 = vor.u32 %v2328_v28, %v2324_v46  ;;  %v6766_v11 = vld [vmem:[%s6872_s30 + $0x88] sm:$0xf]  ;;  %v2325_v7 = vsel %vm6898_vm4, %v2320_v52, %v2324_v46 }
 0x138   : > { %v2370_v19 = vshll.u32 %v6766_v11, 16  ;;  %v2374_v41 = vshrl.u32 %v6766_v11, 16  ;;  %v2334_v0 = vrot.slane %v2332_v30, 5  ;;  %v2363_v36 = vrot.slane %v2361_v9, 4 }
 0x139   : > { %v2330_v39 = vrot.slane %v2329_v13, 4  ;;  %v2380_v30 = vshll.u32 %v6769_v17, 16  ;;  %v2387_v9 = vrot.slane %v2385_v23, 4  ;;  %v2414_v11 = vrot.slane %v2412_v47, 5 }
 0x13a   : > { %v8437_v24 = vrot.slane %v2370_v19, 5  ;;  %v2376_v49 = vrot.slane %v2374_v41, 4  ;;  %v6720_v19 = vld [vmem:[%s6872_s30 + $0xc0] sm:$0xff]  }
 0x13b   : > { %v2335_v46 = vsel %vm6898_vm4, %v2330_v39, %v2334_v0  ;;  %v5439_v39 = vld [vmem:[%s6872_s30 + $0xa8] sm:$0xf] }
 0x13c   : > { %v2377_v13 = vor.u32 %v2376_v49, %v8437_v24  ;;  %v5457_v41 = vcombine.low %v2325_v7, %v2335_v46  ;;  %v2428_v7 = vshll.u32 %v6771_v25, 16  ;;  %v2436_v45 = vshll.u32 %v5439_v39, 16 }
 0x13d   : > { %6353 = vmatmul.mubr.msk.bf16.gmra.mrb[4].mxu0 %vm750_vm3, %v5728_v61  ;;  %v6767_v61 = vld [vmem:[%s6872_s30 + $0x94] sm:$0xf] }
 0x13e   : > { %6199 = vmatmul.mubr.msk.bf16.gmra.mrb[20].mxu1 %vm750_vm3, %v6716_v51  ;;  %6356 = vmatprep.mubr.msk.bf16.mxu0 %vm750_vm3, %v5729_v10  ;;  %v2366_v10 = vrot.slane %v2364_v18, 5  ;;  %v2394_v51 = vshll.u32 %v6767_v61, 16  ;;  %v2398_v28 = vshrl.u32 %v6767_v61, 16  ;;  %v2378_v0 = vrot.slane %v2377_v13, 4 }
 0x13f   : > { %6202 = vmatprep.mubr.msk.bf16.mxu1 %vm750_vm3, %v6717_v21  ;;  %v2409_v21 = vshrl.u32 %v5436_v35, 16  ;;  %v6770_v35 = vld [vmem:[%s6872_s30 + $0x98] sm:$0x1]  ;;  %v2433_v61 = vshrl.u32 %v5439_v39, 16  ;;  %v5445_v39 = vld [vmem:[%s6872_s30 + $0xc0] sm:$0xf] }
 0x140   : > { %v2367_v15 = vor.u32 %v2366_v10, %v2363_v36  ;;  %v8457_v26 = vrot.slane %v2394_v51, 5  ;;  %v2382_v36 = vrot.slane %v2380_v30, 5  ;;  %v2391_v10 = vor.u32 %v2390_v14, %v2387_v9  ;;  %v5442_v51 = vld [vmem:[%s6872_s30 + $0xb4] sm:$0xf] }
 0x141   : > { %v2411_v18 = vrot.slane %v2409_v21, 4  ;;  %v2446_v21 = vshrl.u32 %v6772_v27, 16  ;;  %v2457_v20 = vshrl.u32 %v5442_v51, 16  ;;  %v2460_v42 = vshll.u32 %v5442_v51, 16 }
 0x142   : > { %v2368_v52 = vrot.slane %v2367_v15, 4  ;;  %v2383_v46 = vsel %vm6898_vm4, %v2378_v0, %v2382_v36  ;;  %v2392_v15 = vrot.slane %v2391_v10, 4  ;;  %v2430_v30 = vrot.slane %v2428_v7, 5 }
 0x143   : > { %v2415_v23 = vor.u32 %v2414_v11, %v2411_v18  ;;  %v2435_v9 = vrot.slane %v2433_v61, 4  ;;  %v2448_v11 = vrot.slane %v2446_v21, 4  ;;  %v6776_v61 = vld [vmem:[%s6872_s30 + $0xbc] sm:$0x1] }
 0x144   : > { %v2373_v47 = vsel %vm6898_vm4, %v2368_v52, %v8437_v24  ;;  %v2397_v0 = vsel %vm6898_vm4, %v2392_v15, %v8457_v26  ;;  %v2476_v22 = vshll.u32 %v6776_v61, 16 }
 0x145   : > { %6357 = vmatmul.mubr.msk.bf16.gmra.mrb[8].mxu0 %vm750_vm3, %v5730_v40  ;;  %v2422_v40 = vshrl.u32 %v6768_v60, 16  ;;  %v2416_v17 = vrot.slane %v2415_v23, 4  ;;  %v5459_v24 = vcombine.low %v2373_v47, %v2383_v46 }
 0x146   : > { %6203 = vmatmul.mubr.msk.bf16.gmra.mrb[24].mxu1 %vm750_vm3, %v6718_v2  ;;  %6360 = vmatprep.mubr.msk.bf16.mxu0 %vm750_vm3, %v5731_v54  ;;  %v2400_v54 = vrot.slane %v2398_v28, 4 }
 0x147   : > { %6206 = vmatprep.mubr.msk.bf16.mxu1 %vm750_vm3, %v6719_v34  ;;  %v2424_v2 = vrot.slane %v2422_v40, 4  ;;  %v2404_v34 = vshll.u32 %v6770_v35, 16  ;;  %v2421_v10 = vsel %vm6898_vm4, %v2416_v17, %v8460_v6  ;;  %v2502_v17 = vrot.slane %v2500_v57, 5 }
 0x148   : > { %v2401_v49 = vor.u32 %v2400_v54, %v8457_v26  ;;  %v2438_v54 = vrot.slane %v2436_v45, 5  ;;  %v6774_v26 = vld [vmem:[%s6872_s30 + $0xb0] sm:$0x1] }
 0x149   : > { %v2425_v28 = vor.u32 %v2424_v2, %v8460_v6  ;;  %v2406_v60 = vrot.slane %v2404_v34, 5  ;;  %v2452_v35 = vshll.u32 %v6774_v26, 16  ;;  %v2481_v34 = vshrl.u32 %v5445_v39, 16 }
 0x14a   : > { %v2402_v13 = vrot.slane %v2401_v49, 4  ;;  %v2439_v38 = vor.u32 %v2438_v54, %v2435_v9  ;;  %v2484_v6 = vshll.u32 %v5445_v39, 16  ;;  %v6775_v49 = vld [vmem:[%s6872_s30 + $0xc4] sm:$0xf] }
 0x14b   : > { %v2426_v14 = vrot.slane %v2425_v28, 4  ;;  %v2490_v23 = vshll.u32 %v6775_v49, 16  ;;  %v2494_v25 = vshrl.u32 %v6775_v49, 16  ;;  %v2454_v45 = vrot.slane %v2452_v35, 5 }
 0x14c   : > { %v2407_v36 = vsel %vm6898_vm4, %v2402_v13, %v2406_v60  ;;  %v2440_v51 = vrot.slane %v2439_v38, 4  ;;  %v2478_v60 = vrot.slane %v2476_v22, 5 }
 0x14d   : > { %6361 = vmatmul.mubr.msk.bf16.gmra.mrb[12].mxu0 %vm750_vm3, %v5732_v53  ;;  %v2442_v53 = vshll.u32 %v6772_v27, 16  ;;  %v2431_v59 = vsel %vm6898_vm4, %v2426_v14, %v2430_v30  ;;  %v5460_v44 = vcombine.low %v2397_v0, %v2407_v36  ;;  %v2483_v27 = vrot.slane %v2481_v34, 4  ;;  %v8566_v36 = vld [vmem:[%s8671_s3] ss:$0 sm:$0xff] }
 0x14e   : > { %6207 = vmatmul.mubr.msk.bf16.gmra.mrb[28].mxu1 %vm750_vm3, %v6720_v19  ;;  %6364 = vmatprep.mubr.msk.bf16.mxu0 %vm750_vm3, %v5733_v33  ;;  %v6773_v33 = vld [vmem:[%s6872_s30 + $0xb8] sm:$0xf]  ;;  %v2459_v19 = vrot.slane %v2457_v20, 4  ;;  %v2492_v21 = vrot.slane %v2490_v23, 5  ;;  %v2496_v47 = vrot.slane %v2494_v25, 4  ;;  %s8580_s30 = scalar_lea.vmem %s8672_s4, %s5793_s27 }
 0x14f   : > { %6228 = vmatprep.mubr.msk.bf16.mxu1 %vm750_vm3, %v5457_v41  ;;  %v2466_v12 = vshll.u32 %v6773_v33, 16  ;;  %v2470_v40 = vshrl.u32 %v6773_v33, 16  ;;  %v2444_v18 = vrot.slane %v2442_v53, 5  ;;  %v2462_v41 = vrot.slane %v2460_v42, 5 }
 0x150   : > { %v2486_v53 = vrot.slane %v2484_v6, 5 }
 0x151   : > { %v2468_v52 = vrot.slane %v2466_v12, 5  ;;  %v2472_v2 = vrot.slane %v2470_v40, 4  ;;  %v2445_v20 = vsel %vm6898_vm4, %v2440_v51, %v2444_v18  ;;  %v2497_v12 = vor.u32 %v2496_v47, %v2492_v21 }
 0x152   : > { %v2487_v33 = vor.u32 %v2486_v53, %v2483_v27 }
 0x153   : > { %v2473_v7 = vor.u32 %v2472_v2, %v2468_v52  ;;  %v2498_v13 = vrot.slane %v2497_v12, 4  ;;  %v8561_v2 = vld [vmem:[%s8670_s2] ss:$0 sm:$0xff] }
 0x154   : > { %v2488_v40 = vrot.slane %v2487_v33, 4 }
 0x155   : > { %6365 = vmatmul.mubr.msk.bf16.gmra.mrb[16].mxu0 %vm750_vm3, %v5734_v37  ;;  %v2449_v37 = vor.u32 %v2448_v11, %v2444_v18  ;;  %v2474_v15 = vrot.slane %v2473_v7, 4  ;;  %v2503_v9 = vsel %vm6898_vm4, %v2498_v13, %v2502_v17 }
 0x156   : > { %6229 = vmatmul.mubr.msk.bf16.vlgmr.msra.gmra.mrb[16].mxu1 %vm750_vm3, %v8266_v1  ;;  %6368 = vmatprep.mubr.msk.bf16.mxu0 %vm750_vm3, %v5735_v3  ;;  %v2463_v1 = vor.u32 %v2462_v41, %v2459_v19  ;;  %v5461_v3 = vcombine.low %v2421_v10, %v2431_v59  ;;  %v2493_v30 = vsel %vm6898_vm4, %v2488_v40, %v2492_v21 }
 0x157   : > { %6232 = vmatprep.mubr.msk.bf16.mxu1 %vm750_vm3, %v5459_v24  ;;  %v2450_v28 = vrot.slane %v2449_v37, 4  ;;  %v2479_v48 = vsel %vm6898_vm4, %v2474_v15, %v2478_v60  ;;  %v5464_v14 = vcombine.low %v2493_v30, %v2503_v9 }
 0x158   : > { %v2464_v46 = vrot.slane %v2463_v1, 4 }
 0x159   : > { %v2455_v42 = vsel %vm6898_vm4, %v2450_v28, %v2454_v45 }
 0x15a   : > { %v5462_v62 = vcombine.low %v2445_v20, %v2455_v42 }
 0x15d   : > { %6369 = vmatmul.mubr.msk.bf16.gmra.mrb[20].mxu0 %vm750_vm3, %v5736_v8  ;;  %v2469_v8 = vsel %vm6898_vm4, %v2464_v46, %v2468_v52 }
 0x15e   : > { %6233 = vmatmul.mubr.msk.bf16.gmra.mrb[20].mxu1 %vm750_vm3, %v5460_v44  ;;  %6372 = vmatprep.mubr.msk.bf16.mxu0 %vm750_vm3, %v5737_v56  ;;  %v5463_v56 = vcombine.low %v2469_v8, %v2479_v48 }
 0x15f   : > { %6236 = vmatprep.mubr.msk.bf16.mxu1 %vm750_vm3, %v5461_v3 }
 0x165   : > { %6373 = vmatmul.mubr.msk.bf16.gmra.mrb[24].mxu0 %vm750_vm3, %v5738_v43 }
 0x166   : > { %6237 = vmatmul.mubr.msk.bf16.gmra.mrb[24].mxu1 %vm750_vm3, %v5462_v62  ;;  %6376 = vmatprep.mubr.msk.bf16.mxu0 %vm750_vm3, %v5739_v50 }
 0x167   : > { %6240 = vmatprep.mubr.msk.bf16.mxu1 %vm750_vm3, %v5463_v56 }
 0x16d   : > { %6377 = vmatmul.mubr.msk.bf16.gmra.mrb[28].mxu0 %vm750_vm3, %v5740_v29 }
 0x16e   : > { %6241 = vmatmul.mubr.msk.bf16.gmra.mrb[28].mxu1 %vm750_vm3, %v5464_v14 }
 0x1e9   : > { %v6180_v63 = vpop.f32.mrb[0].mxu1 }
 0x1ea   : > { %v1913_v4 = vpop.f32.mrb[1].mxu1 }
 0x1eb   : > { %v6181_v43 = vpop.f32.mrb[2].mxu1 }
 0x1ec   : > { %v1916_v16 = vpop.f32.mrb[3].mxu1 }
 0x1f1   : > { %v6184_v58 = vpop.f32.mrb[4].mxu1 }
 0x1f2   : > { %v1929_v50 = vpop.f32.mrb[5].mxu1 }
 0x1f3   : > { %v6185_v54 = vpop.f32.mrb[6].mxu1 }
 0x1f4   : > { %v1932_v18 = vpop.f32.mrb[7].mxu1 }
 0x1f9   : > { %v6188_v11 = vpop.f32.mrb[8].mxu1 }
 0x1fa   : > { %v1945_v24 = vpop.f32.mrb[9].mxu1 }
 0x1fb   : > { %v6189_v32 = vpop.f32.mrb[10].mxu1 }
 0x1fc   : > { %v8548_v19 = vpop.f32.mrb[11].mxu1 }
 0x201   : > { %v8550_v41 = vpop.f32.mrb[12].mxu1 }
 0x202   : > { %v8552_v5 = vpop.f32.mrb[13].mxu1 }
 0x203   : > { %v8554_v55 = vpop.f32.mrb[14].mxu1 }
 0x204   : > { %v8556_v29 = vpop.f32.mrb[15].mxu1 }
 0x208   : > { %v6350_v52 = vpop.f32.mrb[0].mxu0 }
 0x209   : > { %v6382_v39 = vadd.f32 %v6350_v52, %v6180_v63  ;;  %v4664_v0 = vpop.f32.mrb[1].mxu0 }
 0x20a   : > { %v6383_v10 = vadd.f32 %v4664_v0, %v1913_v4  ;;  %v6351_v59 = vpop.f32.mrb[2].mxu0 }
 0x20b   : > { %v4832_v38 = vmul.f32 %v6382_v39, %v8561_v2  ;;  %v6384_v37 = vadd.f32 %v6351_v59, %v6181_v43  ;;  %v4667_v26 = vpop.f32.mrb[3].mxu0 }
 0x20c   : > { %v4830_v35 = vmul.f32 %v6383_v10, %v8561_v2  ;;  %v6385_v34 = vadd.f32 %v4667_v26, %v1916_v16 }
 0x20d   : > { %v4871_v6 = vadd.f32 %v8566_v36, %v4832_v38  ;;  %v4833_v49 = vmul.f32 %v6384_v37, %v8561_v2 }
 0x20e   : > { %v4869_v23 = vadd.f32 %v8566_v36, %v4830_v35  ;;  %v4831_v25 = vmul.f32 %v6385_v34, %v8561_v2 }
 0x20f   : > { %v4872_v1 = vadd.f32 %v8566_v36, %v4833_v49  ;;  %v4903_v22 = vmax.f32 %v4871_v6, 0.0 }
 0x210   : > { %v4870_v7 = vadd.f32 %v8566_v36, %v4831_v25  ;;  %v6354_v61 = vpop.f32.mrb[4].mxu0  ;;  %v4901_v28 = vmax.f32 %v4869_v23, 0.0 }
 0x211   : > { %v4904_v44 = vmax.f32 %v4872_v1, 0.0  ;;  %v6386_v3 = vadd.f32 %v6354_v61, %v6184_v58  ;;  %v4680_v51 = vpop.f32.mrb[5].mxu0 }
 0x212   : > { %v4902_v45 = vmax.f32 %v4870_v7, 0.0  ;;  %v6387_v27 = vadd.f32 %v4680_v51, %v1929_v50  ;;  %v6355_v53 = vpop.f32.mrb[6].mxu0 }
 0x213   : > { %v5834_v21 = vpack.c.bf16 %v4904_v44, %v4903_v22  ;;  %v4836_v47 = vmul.f32 %v6386_v3, %v8561_v2  ;;  %v6388_v46 = vadd.f32 %v6355_v53, %v6185_v54  ;;  %v4683_v15 = vpop.f32.mrb[7].mxu0 }
 0x214   : > { %v5829_v60 = vpack.c.bf16 %v4902_v45, %v4901_v28  ;;  %v4834_v20 = vmul.f32 %v6387_v27, %v8561_v2  ;;  %v6389_v42 = vadd.f32 %v4683_v15, %v1932_v18 }
 0x215   : > { %5906 = vst [vmem:[%s8580_s30 + $0x8] sm:$0xff] %v5834_v21   ;;  %v4875_v33 = vadd.f32 %v8566_v36, %v4836_v47  ;;  %v4837_v12 = vmul.f32 %v6388_v46, %v8561_v2 }
 0x216   : > { %5830 = vst [vmem:[%s8580_s30] sm:$0xff] %v5829_v60   ;;  %v4873_v31 = vadd.f32 %v8566_v36, %v4834_v20  ;;  %v4835_v57 = vmul.f32 %v6389_v42, %v8561_v2 }
 0x217   : > { %v4876_v8 = vadd.f32 %v8566_v36, %v4837_v12  ;;  %v4907_v56 = vmax.f32 %v4875_v33, 0.0 }
 0x218   : > { %v4874_v48 = vadd.f32 %v8566_v36, %v4835_v57  ;;  %v6358_v62 = vpop.f32.mrb[8].mxu0  ;;  %v4905_v30 = vmax.f32 %v4873_v31, 0.0 }
 0x219   : > { %v4908_v40 = vmax.f32 %v4876_v8, 0.0  ;;  %v6390_v13 = vadd.f32 %v6358_v62, %v6188_v11  ;;  %v4696_v17 = vpop.f32.mrb[9].mxu0 }
 0x21a   : > { %v4906_v9 = vmax.f32 %v4874_v48, 0.0  ;;  %v6391_v14 = vadd.f32 %v4696_v17, %v1945_v24  ;;  %v6359_v63 = vpop.f32.mrb[10].mxu0 }
 0x21b   : > { %v5844_v4 = vpack.c.bf16 %v4908_v40, %v4907_v56  ;;  %v4840_v43 = vmul.f32 %v6390_v13, %v8561_v2  ;;  %v6392_v16 = vadd.f32 %v6359_v63, %v6189_v32  ;;  %v4699_v58 = vpop.f32.mrb[11].mxu0 }
 0x21c   : > { %v5839_v50 = vpack.c.bf16 %v4906_v9, %v4905_v30  ;;  %v4838_v54 = vmul.f32 %v6391_v14, %v8561_v2  ;;  %v6393_v18 = vadd.f32 %v4699_v58, %v8548_v19 }
 0x21d   : > { %5908 = vst [vmem:[%s8580_s30 + $0x18] sm:$0xff] %v5844_v4   ;;  %v4879_v52 = vadd.f32 %v8566_v36, %v4840_v43  ;;  %v4841_v11 = vmul.f32 %v6392_v16, %v8561_v2 }
 0x21e   : > { %5907 = vst [vmem:[%s8580_s30 + $0x10] sm:$0xff] %v5839_v50   ;;  %v4877_v39 = vadd.f32 %v8566_v36, %v4838_v54  ;;  %v4839_v24 = vmul.f32 %v6393_v18, %v8561_v2 }
 0x21f   : > { %v4880_v0 = vadd.f32 %v8566_v36, %v4841_v11  ;;  %v4911_v59 = vmax.f32 %v4879_v52, 0.0 }
 0x220   : > { %v4878_v32 = vadd.f32 %v8566_v36, %v4839_v24  ;;  %v6362_v10 = vpop.f32.mrb[12].mxu0  ;;  %v4909_v26 = vmax.f32 %v4877_v39, 0.0 }
 0x221   : > { %v4912_v38 = vmax.f32 %v4880_v0, 0.0  ;;  %v6394_v19 = vadd.f32 %v6362_v10, %v8550_v41  ;;  %v4712_v37 = vpop.f32.mrb[13].mxu0 }
 0x222   : > { %v4910_v35 = vmax.f32 %v4878_v32, 0.0  ;;  %v6395_v34 = vadd.f32 %v4712_v37, %v8552_v5  ;;  %v6363_v6 = vpop.f32.mrb[14].mxu0 }
 0x223   : > { %v5854_v49 = vpack.c.bf16 %v4912_v38, %v4911_v59  ;;  %v4844_v23 = vmul.f32 %v6394_v19, %v8561_v2  ;;  %v6396_v25 = vadd.f32 %v6363_v6, %v8554_v55  ;;  %v4715_v1 = vpop.f32.mrb[15].mxu0 }
 0x224   : > { %v5849_v7 = vpack.c.bf16 %v4910_v35, %v4909_v26  ;;  %v4842_v61 = vmul.f32 %v6395_v34, %v8561_v2  ;;  %v6397_v22 = vadd.f32 %v4715_v1, %v8556_v29 }
 0x225   : > { %5910 = vst [vmem:[%s8580_s30 + $0x28] sm:$0xff] %v5854_v49   ;;  %v4883_v41 = vadd.f32 %v8566_v36, %v4844_v23  ;;  %v4845_v44 = vmul.f32 %v6396_v25, %v8561_v2 }
 0x226   : > { %5909 = vst [vmem:[%s8580_s30 + $0x20] sm:$0xff] %v5849_v7   ;;  %v4881_v5 = vadd.f32 %v8566_v36, %v4842_v61  ;;  %v4843_v3 = vmul.f32 %v6397_v22, %v8561_v2 }
 0x227   : > { %v4884_v51 = vadd.f32 %v8566_v36, %v4845_v44  ;;  %v4915_v45 = vmax.f32 %v4883_v41, 0.0 }
 0x228   : > { %v4882_v55 = vadd.f32 %v8566_v36, %v4843_v3  ;;  %v6366_v28 = vpop.f32.mrb[16].mxu0  ;;  %v4913_v21 = vmax.f32 %v4881_v5, 0.0 }
 0x229   : > { %v4916_v27 = vmax.f32 %v4884_v51, 0.0  ;;  %v6230_v53 = vpop.f32.mrb[16].mxu1  ;;  %v4728_v29 = vpop.f32.mrb[17].mxu0 }
 0x22a   : > { %v4914_v47 = vmax.f32 %v4882_v55, 0.0  ;;  %v6398_v46 = vadd.f32 %v6366_v28, %v6230_v53  ;;  %v2703_v15 = vpop.f32.mrb[17].mxu1  ;;  %v6367_v60 = vpop.f32.mrb[18].mxu0 }
 0x22b   : > { %v5864_v20 = vpack.c.bf16 %v4916_v27, %v4915_v45  ;;  %v6399_v42 = vadd.f32 %v4728_v29, %v2703_v15  ;;  %v6231_v33 = vpop.f32.mrb[18].mxu1  ;;  %v4731_v12 = vpop.f32.mrb[19].mxu0 }
 0x22c   : > { %v5859_v31 = vpack.c.bf16 %v4914_v47, %v4913_v21  ;;  %v4848_v57 = vmul.f32 %v6398_v46, %v8561_v2  ;;  %v6400_v8 = vadd.f32 %v6367_v60, %v6231_v33  ;;  %v2706_v48 = vpop.f32.mrb[19].mxu1 }
 0x22d   : > { %5912 = vst [vmem:[%s8580_s30 + $0x38] sm:$0xff] %v5864_v20   ;;  %v4846_v62 = vmul.f32 %v6399_v42, %v8561_v2  ;;  %v6401_v56 = vadd.f32 %v4731_v12, %v2706_v48 }
 0x22e   : > { %5911 = vst [vmem:[%s8580_s30 + $0x30] sm:$0xff] %v5859_v31   ;;  %v4887_v40 = vadd.f32 %v8566_v36, %v4848_v57  ;;  %v4849_v13 = vmul.f32 %v6400_v8, %v8561_v2 }
 0x22f   : > { %v4885_v17 = vadd.f32 %v8566_v36, %v4846_v62  ;;  %v4847_v30 = vmul.f32 %v6401_v56, %v8561_v2 }
 0x230   : > { %v4888_v9 = vadd.f32 %v8566_v36, %v4849_v13  ;;  %v6370_v14 = vpop.f32.mrb[20].mxu0  ;;  %v4919_v16 = vmax.f32 %v4887_v40, 0.0 }
 0x231   : > { %v4886_v63 = vadd.f32 %v8566_v36, %v4847_v30  ;;  %v6234_v4 = vpop.f32.mrb[20].mxu1  ;;  %v4744_v43 = vpop.f32.mrb[21].mxu0  ;;  %v4917_v52 = vmax.f32 %v4885_v17, 0.0 }
 0x232   : > { %v4920_v58 = vmax.f32 %v4888_v9, 0.0  ;;  %v6402_v50 = vadd.f32 %v6370_v14, %v6234_v4  ;;  %v2719_v54 = vpop.f32.mrb[21].mxu1  ;;  %v6371_v18 = vpop.f32.mrb[22].mxu0 }
 0x233   : > { %v4918_v11 = vmax.f32 %v4886_v63, 0.0  ;;  %v6403_v39 = vadd.f32 %v4744_v43, %v2719_v54  ;;  %v6235_v24 = vpop.f32.mrb[22].mxu1  ;;  %v4747_v0 = vpop.f32.mrb[23].mxu0 }
 0x234   : > { %v5874_v32 = vpack.c.bf16 %v4920_v58, %v4919_v16  ;;  %v4852_v10 = vmul.f32 %v6402_v50, %v8561_v2  ;;  %v6404_v59 = vadd.f32 %v6371_v18, %v6235_v24  ;;  %v2722_v38 = vpop.f32.mrb[23].mxu1 }
 0x235   : > { %v5869_v19 = vpack.c.bf16 %v4918_v11, %v4917_v52  ;;  %v4850_v37 = vmul.f32 %v6403_v39, %v8561_v2  ;;  %v6405_v26 = vadd.f32 %v4747_v0, %v2722_v38 }
 0x236   : > { %5914 = vst [vmem:[%s8580_s30 + $0x48] sm:$0xff] %v5874_v32   ;;  %v4891_v35 = vadd.f32 %v8566_v36, %v4852_v10  ;;  %v4853_v34 = vmul.f32 %v6404_v59, %v8561_v2 }
 0x237   : > { %5913 = vst [vmem:[%s8580_s30 + $0x40] sm:$0xff] %v5869_v19   ;;  %v4889_v6 = vadd.f32 %v8566_v36, %v4850_v37  ;;  %v4851_v49 = vmul.f32 %v6405_v26, %v8561_v2 }
 0x238   : > { %v4892_v23 = vadd.f32 %v8566_v36, %v4853_v34  ;;  %v6374_v25 = vpop.f32.mrb[24].mxu0  ;;  %v4923_v22 = vmax.f32 %v4891_v35, 0.0 }
 0x239   : > { %v4890_v1 = vadd.f32 %v8566_v36, %v4851_v49  ;;  %v6238_v7 = vpop.f32.mrb[24].mxu1  ;;  %v4760_v61 = vpop.f32.mrb[25].mxu0  ;;  %v4921_v51 = vmax.f32 %v4889_v6, 0.0 }
 0x23a   : > { %v4924_v41 = vmax.f32 %v4892_v23, 0.0  ;;  %v6406_v44 = vadd.f32 %v6374_v25, %v6238_v7  ;;  %v2735_v5 = vpop.f32.mrb[25].mxu1  ;;  %v6375_v3 = vpop.f32.mrb[26].mxu0 }
 0x23b   : > { %v4922_v55 = vmax.f32 %v4890_v1, 0.0  ;;  %v6407_v28 = vadd.f32 %v4760_v61, %v2735_v5  ;;  %v6239_v45 = vpop.f32.mrb[26].mxu1  ;;  %v4763_v27 = vpop.f32.mrb[27].mxu0 }
 0x23c   : > { %v5884_v53 = vpack.c.bf16 %v4924_v41, %v4923_v22  ;;  %v4856_v29 = vmul.f32 %v6406_v44, %v8561_v2  ;;  %v6408_v21 = vadd.f32 %v6375_v3, %v6239_v45  ;;  %v2738_v47 = vpop.f32.mrb[27].mxu1 }
 0x23d   : > { %v5879_v46 = vpack.c.bf16 %v4922_v55, %v4921_v51  ;;  %v4854_v15 = vmul.f32 %v6407_v28, %v8561_v2  ;;  %v6409_v60 = vadd.f32 %v4763_v27, %v2738_v47 }
 0x23e   : > { %5916 = vst [vmem:[%s8580_s30 + $0x58] sm:$0xff] %v5884_v53   ;;  %v4895_v20 = vadd.f32 %v8566_v36, %v4856_v29  ;;  %v4857_v42 = vmul.f32 %v6408_v21, %v8561_v2 }
 0x23f   : > { %5915 = vst [vmem:[%s8580_s30 + $0x50] sm:$0xff] %v5879_v46   ;;  %v4893_v33 = vadd.f32 %v8566_v36, %v4854_v15  ;;  %v4855_v12 = vmul.f32 %v6409_v60, %v8561_v2 }
 0x240   : > { %v4896_v31 = vadd.f32 %v8566_v36, %v4857_v42  ;;  %v6378_v57 = vpop.f32.mrb[28].mxu0  ;;  %v4927_v56 = vmax.f32 %v4895_v20, 0.0 }
 0x241   : > { %v4894_v8 = vadd.f32 %v8566_v36, %v4855_v12  ;;  %v6242_v48 = vpop.f32.mrb[28].mxu1  ;;  %v4776_v62 = vpop.f32.mrb[29].mxu0  ;;  %v4925_v9 = vmax.f32 %v4893_v33, 0.0 }
 0x242   : > { %v4928_v40 = vmax.f32 %v4896_v31, 0.0  ;;  %v6410_v13 = vadd.f32 %v6378_v57, %v6242_v48  ;;  %v2751_v17 = vpop.f32.mrb[29].mxu1  ;;  %v6379_v30 = vpop.f32.mrb[30].mxu0 }
 0x243   : > { %v4926_v14 = vmax.f32 %v4894_v8, 0.0  ;;  %v6411_v63 = vadd.f32 %v4776_v62, %v2751_v17  ;;  %v6243_v4 = vpop.f32.mrb[30].mxu1  ;;  %v4779_v43 = vpop.f32.mrb[31].mxu0 }
 0x244   : > { %v5894_v16 = vpack.c.bf16 %v4928_v40, %v4927_v56  ;;  %v4860_v58 = vmul.f32 %v6410_v13, %v8561_v2  ;;  %v6412_v50 = vadd.f32 %v6379_v30, %v6243_v4  ;;  %v2754_v54 = vpop.f32.mrb[31].mxu1 }
 0x245   : > { %v5889_v18 = vpack.c.bf16 %v4926_v14, %v4925_v9  ;;  %v4858_v52 = vmul.f32 %v6411_v63, %v8561_v2  ;;  %v6413_v11 = vadd.f32 %v4779_v43, %v2754_v54 }
 0x246   : > { %5918 = vst [vmem:[%s8580_s30 + $0x68] sm:$0xff] %v5894_v16   ;;  %v4899_v39 = vadd.f32 %v8566_v36, %v4860_v58  ;;  %v4861_v24 = vmul.f32 %v6412_v50, %v8561_v2 }
 0x247   : > { %5917 = vst [vmem:[%s8580_s30 + $0x60] sm:$0xff] %v5889_v18   ;;  %v4897_v0 = vadd.f32 %v8566_v36, %v4858_v52  ;;  %v4859_v32 = vmul.f32 %v6413_v11, %v8561_v2 }
 0x248   : > { %v4900_v10 = vadd.f32 %v8566_v36, %v4861_v24  ;;  %v4931_v38 = vmax.f32 %v4899_v39, 0.0 }
 0x249   : > { %v4898_v59 = vadd.f32 %v8566_v36, %v4859_v32  ;;  %v4929_v37 = vmax.f32 %v4897_v0, 0.0 }
 0x24a   : > { %v4932_v19 = vmax.f32 %v4900_v10, 0.0 }
 0x24b   : > { %v4930_v26 = vmax.f32 %v4898_v59, 0.0 }
 0x24c   : > { %v5904_v35 = vpack.c.bf16 %v4932_v19, %v4931_v38 }
 0x24d   : > { %v5899_v34 = vpack.c.bf16 %v4930_v26, %v4929_v37 }
 0x24e   : > { %5920 = vst [vmem:[%s8580_s30 + $0x78] sm:$0xff] %v5904_v35  }
 0x24f   : > { %5919 = vst [vmem:[%s8580_s30 + $0x70] sm:$0xff] %v5899_v34  }
 0x250 PF: > { %s14_s17 = sadd.s32 1, %s6800_s17   ;;  %s8740_s15 = smov %s6796_s16 }
 0x251   : > { %p11_p5 = scmp.ge.s32.totalorder %s14_s17, 4   ;;  %s8741_s16 = smov %s8743_s18 }
 0x253   :  { %13 = sbr.rel (!%p11_p5) target bundleno = 2 (0x2), region = 85 }

</bundles_post_ra>
